<compile_context>
chip_gen: v7x
topology: tpu7x:2x2x1
jax: 0.10.0
libtpu: 0.0.40
codegen_flags: <defaults>
</compile_context>

<pallas_src>
import jax
import jax.numpy as jnp
import numpy as np
from jax.experimental import pallas as pl
from jax.experimental.pallas import tpu as pltpu


# ----------------------------- Pallas kernel ------------------------------


def _graph_cde_kernel(x0_ref, slope_ref, fi_ref,
                      w_init_ref, b_init_ref, a_wg_ref, b_g_ref,
                      w_last_ref, b_last_ref, expand_ref, msum_ref,
                      out_ref):
    """One grid step = one batch tile; the whole time axis runs in an in-kernel fori_loop.

    Flattened layouts (batch rows x state-major lanes), K = E*D:
      x0_ref     (BT, S*D)       slope_ref (L, BT, S*D)     fi_ref (BT, 1) int32
      w_init_ref (S*D, S*E)      b_init_ref (1, S*E)
      a_wg_ref   (S*E, S*H) == kron(A_hat^T, W_g)           b_g_ref (1, S*H)
      w_last_ref (S*H, S*K)      b_last_ref (1, S*K)
      expand_ref (S*D, S*K) 0/1 slope lane-expansion        msum_ref (S*K, S*E) 0/1 group-sum
      out_ref    (BT, S*E)   (lane-dense, = e at time final_index-1)
    """
    L = slope_ref.shape[0]

    # emb_init: e0 = x0 @ blockdiag(W_init) + b_init   (per-state Linear(D, E))
    e0 = jnp.dot(x0_ref[...], w_init_ref[...],
                 preferred_element_type=jnp.float32) + b_init_ref[...]
    fi = fi_ref[...]                      # (BT, 1) final_index per batch row
    out0 = e0                             # covers final_index - 1 == 0

    def step(t, carry):
        e, out = carry
        # GCN: h = tanh(A_hat @ e @ W_g + b_g)  ==  tanh(e_flat @ kron(A^T, W_g) + b_g)
        h = jnp.tanh(jnp.dot(e, a_wg_ref[...],
                             preferred_element_type=jnp.float32) + b_g_ref[...])
        # per-state Linear(H, E*D) + tanh -> vector field F (S, E, D), flattened to S*K lanes
        f = jnp.tanh(jnp.dot(h, w_last_ref[...],
                             preferred_element_type=jnp.float32) + b_last_ref[...])
        # dX/dt on [t-1, t] (linear interpolation), lane-expanded (BT, S*D) -> (BT, S*K)
        slope_t = jnp.dot(slope_ref[t], expand_ref[...],
                          preferred_element_type=jnp.float32)
        # de[n, e] = sum_d F[n, e, d] * dX[n, d]   (group-sum of D lanes per embedding col)
        de = jnp.dot(f * slope_t, msum_ref[...],
                     preferred_element_type=jnp.float32)
        e = e + de                        # Euler step, unit knot spacing
        # 'eT' selection: keep the state at grid time final_index - 1
        out = jnp.where(jnp.broadcast_to(fi - 1 == t, e.shape), e, out)
        return e, out

    # unroll short sequences so the LLO scheduler can overlap MXU/EUP/VPU across steps
    _, out = jax.lax.fori_loop(1, L, step, (e0, out0), unroll=(L <= 32))
    out_ref[...] = out


# ------------------------------ JAX wrapper -------------------------------


def _block_diag(blocks):
    """(S, a, b) -> (S*a, S*b) block-diagonal matrix."""
    S, a, b = blocks.shape
    out = jnp.zeros((S, a, S, b), blocks.dtype)
    out = out.at[jnp.arange(S), :, jnp.arange(S), :].set(blocks)
    return out.reshape(S * a, S * b)


def graph_cde_forward(x, final_index, params):
    """x: (B, S, L, D) float32; final_index: (B,) int. Returns (eT (B, S, E), reg dict)."""
    B, S, L, D = x.shape
    E, H = params["w_g"].shape
    K = E * D
    SD, SE, SH, SK = S * D, S * E, S * H, S * K

    # Batch tiling: fold BT batches into the matmul M dimension; grid over batch tiles,
    # marked "parallel" so v7x can shard tiles across its 2 TensorCores.
    BT = B if B <= 8 else 8
    Bp = -(-B // BT) * BT
    fi = jnp.asarray(final_index, jnp.int32)
    if Bp != B:
        x = jnp.concatenate([x, jnp.zeros((Bp - B, S, L, D), x.dtype)], axis=0)
        fi = jnp.concatenate([fi, jnp.ones((Bp - B,), jnp.int32)], axis=0)
    nb = Bp // BT

    # --- glue: linear-interpolation slopes (dX/dt piecewise constant), time-major, un-tiled ---
    diff = x[:, :, 1:, :] - x[:, :, :-1, :]                           # (Bp, S, L-1, D)
    slopes = jnp.concatenate(
        [jnp.zeros((Bp, S, 1, D), x.dtype), diff], axis=2)            # (Bp, S, L, D); slot 0 unused
    slopes = jnp.transpose(slopes, (2, 0, 1, 3)).reshape(L, Bp, SD)   # (L, Bp, S*D)
    x0_flat = x[:, :, 0, :].reshape(Bp, SD)
    fi_col = fi.reshape(Bp, 1)

    # --- one-time constant folding of the per-state / graph layers into dense matrices ---
    f32 = jnp.float32
    w_init_bd = _block_diag(params["w_init"].astype(f32))             # (S*D, S*E)
    b_init_flat = params["b_init"].reshape(1, SE).astype(f32)
    a_wg = jnp.kron(params["a_hat"].T.astype(f32),
                    params["w_g"].astype(f32))                        # (S*E, S*H)
    b_g_tiled = jnp.tile(params["b_g"].astype(f32), (1, S))           # (1, S*H)
    w_last_bd = _block_diag(params["w_last"].astype(f32))             # (S*H, S*K)
    b_last_flat = params["b_last"].reshape(1, SK).astype(f32)
    # slope lane-expansion: column n*K + e*D + d picks slope lane n*D + d (for all e)
    expand = jnp.kron(jnp.eye(S, dtype=f32),
                      jnp.tile(jnp.eye(D, dtype=f32), (1, E)))        # (S*D, S*K)
    # group-sum: lanes n*K + e*D + (0..D-1)  ->  embedding lane n*E + e
    msum_small = (jnp.arange(K)[:, None] // D
                  == jnp.arange(E)[None, :]).astype(f32)              # (K, E)
    msum_bd = jnp.kron(jnp.eye(S, dtype=f32), msum_small)             # (S*K, S*E)

    out = pl.pallas_call(
        _graph_cde_kernel,
        out_shape=jax.ShapeDtypeStruct((Bp, SE), jnp.float32),
        grid_spec=pltpu.PrefetchScalarGridSpec(
            num_scalar_prefetch=0,
            grid=(nb,),
            in_specs=[
                pl.BlockSpec((BT, SD), lambda b: (b, 0)),             # x0 (flattened)
                pl.BlockSpec((L, BT, SD), lambda b: (0, b, 0)),       # slopes (time-major)
                pl.BlockSpec((BT, 1), lambda b: (b, 0)),              # final_index
                pl.BlockSpec((SD, SE), lambda b: (0, 0)),             # blockdiag W_init
                pl.BlockSpec((1, SE), lambda b: (0, 0)),              # b_init
                pl.BlockSpec((SE, SH), lambda b: (0, 0)),             # kron(A_hat^T, W_g)
                pl.BlockSpec((1, SH), lambda b: (0, 0)),              # b_g (tiled over states)
                pl.BlockSpec((SH, SK), lambda b: (0, 0)),             # blockdiag W_last
                pl.BlockSpec((1, SK), lambda b: (0, 0)),              # b_last
                pl.BlockSpec((SD, SK), lambda b: (0, 0)),             # slope lane-expansion
                pl.BlockSpec((SK, SE), lambda b: (0, 0)),             # group-sum
            ],
            out_specs=pl.BlockSpec((BT, SE), lambda b: (b, 0)),
        ),
        compiler_params=pltpu.CompilerParams(
            dimension_semantics=("parallel",)),
    )(x0_flat, slopes, fi_col, w_init_bd, b_init_flat, a_wg, b_g_tiled,
      w_last_bd, b_last_flat, expand, msum_bd)

    # return_type == 'eT': solution at grid time final_index[b] - 1 (selected in-kernel).
    # Note: final_index == 0 keeps e0 here (reference wraps to the last step); both are
    # out-of-spec inputs for the original module.
    eT = out[:B].reshape(B, S, E)
    reg = {}   # no kinetic-regularization outputs when emb_kinetic / return_kinetic is False
    return eT, reg


# --------------------------- params & reference ---------------------------


def init_params(key, S, D, E, H):
    ks = jax.random.split(key, 6)
    w_init = jax.random.normal(ks[0], (S, D, E), jnp.float32) / np.sqrt(D)
    b_init = jax.random.normal(ks[1], (S, E), jnp.float32) * 0.1
    w_g = jax.random.normal(ks[2], (E, H), jnp.float32) / np.sqrt(E)
    b_g = jax.random.normal(ks[3], (1, H), jnp.float32) * 0.1
    w_last = jax.random.normal(ks[4], (S, H, E * D), jnp.float32) / np.sqrt(H)
    b_last = jax.random.normal(ks[5], (S, E * D), jnp.float32) * 0.1
    # graph over the S "state" nodes: ring edges + self loops, GCN symmetric normalization
    adj = np.zeros((S, S), np.float32)
    idx = np.arange(S)
    adj[idx, (idx + 1) % S] = 1.0
    adj[(idx + 1) % S, idx] = 1.0
    adj = adj + np.eye(S, dtype=np.float32)
    dinv = 1.0 / np.sqrt(adj.sum(axis=1))
    a_hat = jnp.asarray(adj * dinv[:, None] * dinv[None, :])
    return dict(w_init=w_init, b_init=b_init, w_g=w_g, b_g=b_g,
                w_last=w_last, b_last=b_last, a_hat=a_hat)


def reference_forward(x, final_index, p):
    """Pure-JAX reference of the same forward (for a correctness check)."""
    B, S, L, D = x.shape
    E, _ = p["w_g"].shape
    e = jnp.einsum("bsd,sde->bse", x[:, :, 0, :], p["w_init"]) + p["b_init"][None]
    e_all = [e]
    for k in range(1, L):
        slope = x[:, :, k, :] - x[:, :, k - 1, :]                     # (B, S, D)
        ag = jnp.einsum("mn,bne->bme", p["a_hat"], e)
        h = jnp.tanh(jnp.einsum("bse,eh->bsh", ag, p["w_g"]) + p["b_g"][None])
        f = jnp.tanh(jnp.einsum("bsh,shk->bsk", h, p["w_last"]) + p["b_last"][None])
        F = f.reshape(B, S, E, D)
        e = e + jnp.einsum("bsed,bsd->bse", F, slope)
        e_all.append(e)
    e_all = jnp.stack(e_all, axis=1)                                  # (B, L, S, E)
    fi = jnp.asarray(final_index)
    return e_all[jnp.arange(B), fi - 1]


# ---------------------------------- main -----------------------------------


if __name__ == "__main__":
    B, S, L, D = 2, 4, 8, 4        # batch, num_states, sequence length, per-state feature
    E, H = 32, 32                  # emb_dim, graph hidden dim

    key = jax.random.PRNGKey(0)
    k_x, k_p = jax.random.split(key)
    x = 0.3 * jax.random.normal(k_x, (B, S, L, D), jnp.float32)
    final_index = jnp.array([L, L - 2], dtype=jnp.int32)
    params = init_params(k_p, S, D, E, H)

    eT, reg = graph_cde_forward(x, final_index, params)
    eT = jax.block_until_ready(eT)

    eT_ref = jax.block_until_ready(reference_forward(x, final_index, params))
    np.testing.assert_allclose(np.asarray(eT), np.asarray(eT_ref), rtol=1e-3, atol=1e-3)

    print("KERNEL_OK")
</pallas_src>

<mosaic_0001>
module attributes {stable_mosaic.version = 11 : i64} {
  func.func @_graph_cde_kernel(%arg0: i32, %arg1: memref<2x16xf32, #tpu.memory_space<vmem>>, %arg2: memref<8x2x16xf32, #tpu.memory_space<vmem>>, %arg3: memref<2x1xi32, #tpu.memory_space<vmem>>, %arg4: memref<16x128xf32, #tpu.memory_space<vmem>>, %arg5: memref<1x128xf32, #tpu.memory_space<vmem>>, %arg6: memref<128x128xf32, #tpu.memory_space<vmem>>, %arg7: memref<1x128xf32, #tpu.memory_space<vmem>>, %arg8: memref<128x512xf32, #tpu.memory_space<vmem>>, %arg9: memref<1x512xf32, #tpu.memory_space<vmem>>, %arg10: memref<16x512xf32, #tpu.memory_space<vmem>>, %arg11: memref<512x128xf32, #tpu.memory_space<vmem>>, %arg12: memref<2x128xf32, #tpu.memory_space<vmem>>) attributes {dimension_semantics = [#tpu.dimension_semantics<parallel>], iteration_bounds = array<i64: 1>, scalar_prefetch = 0 : i64, scratch_operands = 0 : i64, tpu.core_type = #tpu.core_type<tc>, window_params = [{transform_indices = @transform_0, window_bounds = array<i64: 2, 16>}, {transform_indices = @transform_1, window_bounds = array<i64: 8, 2, 16>}, {transform_indices = @transform_2, window_bounds = array<i64: 2, 1>}, {pipeline_mode = #tpu.pipeline_mode<synchronous>, transform_indices = @transform_3, window_bounds = array<i64: 16, 128>}, {pipeline_mode = #tpu.pipeline_mode<synchronous>, transform_indices = @transform_4, window_bounds = array<i64: 1, 128>}, {pipeline_mode = #tpu.pipeline_mode<synchronous>, transform_indices = @transform_5, window_bounds = array<i64: 128, 128>}, {pipeline_mode = #tpu.pipeline_mode<synchronous>, transform_indices = @transform_6, window_bounds = array<i64: 1, 128>}, {pipeline_mode = #tpu.pipeline_mode<synchronous>, transform_indices = @transform_7, window_bounds = array<i64: 128, 512>}, {pipeline_mode = #tpu.pipeline_mode<synchronous>, transform_indices = @transform_8, window_bounds = array<i64: 1, 512>}, {pipeline_mode = #tpu.pipeline_mode<synchronous>, transform_indices = @transform_9, window_bounds = array<i64: 16, 512>}, {pipeline_mode = #tpu.pipeline_mode<synchronous>, transform_indices = @transform_10, window_bounds = array<i64: 512, 128>}, {transform_indices = @transform_11, window_bounds = array<i64: 2, 128>}]} {
    %c0 = arith.constant 0 : index
    %c0_0 = arith.constant 0 : index
    %0 = vector.load %arg1[%c0, %c0_0] : memref<2x16xf32, #tpu.memory_space<vmem>>, vector<2x16xf32>
    %c0_1 = arith.constant 0 : index
    %c0_2 = arith.constant 0 : index
    %1 = vector.load %arg4[%c0_1, %c0_2] : memref<16x128xf32, #tpu.memory_space<vmem>>, vector<16x128xf32>
    %cst = arith.constant dense<0.000000e+00> : vector<2x128xf32>
    %2 = tpu.matmul %0, %1, %cst {dimension_numbers = #tpu.dot_dimension_numbers<[1], [0], [0], [1], [0, 0, 1, 1], [], []>} : vector<2x16xf32>, vector<16x128xf32>, vector<2x128xf32> -> vector<2x128xf32>
    %c0_3 = arith.constant 0 : index
    %c0_4 = arith.constant 0 : index
    %3 = vector.load %arg5[%c0_3, %c0_4] : memref<1x128xf32, #tpu.memory_space<vmem>>, vector<1x128xf32>
    %4 = vector.broadcast %3 : vector<1x128xf32> to vector<2x128xf32>
    %5 = arith.addf %2, %4 : vector<2x128xf32>
    %c0_5 = arith.constant 0 : index
    %c0_6 = arith.constant 0 : index
    %6 = vector.load %arg3[%c0_5, %c0_6] : memref<2x1xi32, #tpu.memory_space<vmem>>, vector<2x1xi32>
    %c1_i32 = arith.constant 1 : i32
    %c0_7 = arith.constant 0 : index
    %c0_8 = arith.constant 0 : index
    %7 = vector.load %arg6[%c0_7, %c0_8] : memref<128x128xf32, #tpu.memory_space<vmem>>, vector<128x128xf32>
    %cst_9 = arith.constant dense<0.000000e+00> : vector<2x128xf32>
    %8 = tpu.matmul %5, %7, %cst_9 {dimension_numbers = #tpu.dot_dimension_numbers<[1], [0], [0], [1], [0, 0, 1, 1], [], []>} : vector<2x128xf32>, vector<128x128xf32>, vector<2x128xf32> -> vector<2x128xf32>
    %c0_10 = arith.constant 0 : index
    %c0_11 = arith.constant 0 : index
    %9 = vector.load %arg7[%c0_10, %c0_11] : memref<1x128xf32, #tpu.memory_space<vmem>>, vector<1x128xf32>
    %10 = vector.broadcast %9 : vector<1x128xf32> to vector<2x128xf32>
    %11 = arith.addf %8, %10 : vector<2x128xf32>
    %12 = math.tanh %11 : vector<2x128xf32>
    %c0_12 = arith.constant 0 : index
    %c0_13 = arith.constant 0 : index
    %13 = vector.load %arg8[%c0_12, %c0_13] : memref<128x512xf32, #tpu.memory_space<vmem>>, vector<128x512xf32>
    %cst_14 = arith.constant dense<0.000000e+00> : vector<2x512xf32>
    %14 = tpu.matmul %12, %13, %cst_14 {dimension_numbers = #tpu.dot_dimension_numbers<[1], [0], [0], [1], [0, 0, 1, 1], [], []>} : vector<2x128xf32>, vector<128x512xf32>, vector<2x512xf32> -> vector<2x512xf32>
    %c0_15 = arith.constant 0 : index
    %c0_16 = arith.constant 0 : index
    %15 = vector.load %arg9[%c0_15, %c0_16] : memref<1x512xf32, #tpu.memory_space<vmem>>, vector<1x512xf32>
    %16 = vector.broadcast %15 : vector<1x512xf32> to vector<2x512xf32>
    %17 = arith.addf %14, %16 : vector<2x512xf32>
    %18 = math.tanh %17 : vector<2x512xf32>
    %19 = arith.index_cast %c1_i32 : i32 to index
    %c0_17 = arith.constant 0 : index
    %c0_18 = arith.constant 0 : index
    %20 = vector.load %arg2[%19, %c0_17, %c0_18] : memref<8x2x16xf32, #tpu.memory_space<vmem>>, vector<1x2x16xf32>
    %21 = vector.shape_cast %20 : vector<1x2x16xf32> to vector<2x16xf32>
    %c0_19 = arith.constant 0 : index
    %c0_20 = arith.constant 0 : index
    %22 = vector.load %arg10[%c0_19, %c0_20] : memref<16x512xf32, #tpu.memory_space<vmem>>, vector<16x512xf32>
    %cst_21 = arith.constant dense<0.000000e+00> : vector<2x512xf32>
    %23 = tpu.matmul %21, %22, %cst_21 {dimension_numbers = #tpu.dot_dimension_numbers<[1], [0], [0], [1], [0, 0, 1, 1], [], []>} : vector<2x16xf32>, vector<16x512xf32>, vector<2x512xf32> -> vector<2x512xf32>
    %24 = arith.mulf %18, %23 : vector<2x512xf32>
    %c0_22 = arith.constant 0 : index
    %c0_23 = arith.constant 0 : index
    %25 = vector.load %arg11[%c0_22, %c0_23] : memref<512x128xf32, #tpu.memory_space<vmem>>, vector<512x128xf32>
    %cst_24 = arith.constant dense<0.000000e+00> : vector<2x128xf32>
    %26 = tpu.matmul %24, %25, %cst_24 {dimension_numbers = #tpu.dot_dimension_numbers<[1], [0], [0], [1], [0, 0, 1, 1], [], []>} : vector<2x512xf32>, vector<512x128xf32>, vector<2x128xf32> -> vector<2x128xf32>
    %27 = arith.addf %5, %26 : vector<2x128xf32>
    %c1_i32_25 = arith.constant 1 : i32
    %28 = vector.broadcast %c1_i32_25 : i32 to vector<2x1xi32>
    %29 = arith.subi %6, %28 : vector<2x1xi32>
    %30 = vector.broadcast %c1_i32 : i32 to vector<2x1xi32>
    %31 = arith.cmpi eq, %29, %30 : vector<2x1xi32>
    %32 = vector.shape_cast %31 : vector<2x1xi1> to vector<2x1xi1>
    %33 = vector.broadcast %32 : vector<2x1xi1> to vector<2x128xi1>
    %34 = arith.select %33, %27, %5 : vector<2x128xi1>, vector<2x128xf32>
    %c2_i32 = arith.constant 2 : i32
    %c0_26 = arith.constant 0 : index
    %c0_27 = arith.constant 0 : index
    %35 = vector.load %arg6[%c0_26, %c0_27] : memref<128x128xf32, #tpu.memory_space<vmem>>, vector<128x128xf32>
    %cst_28 = arith.constant dense<0.000000e+00> : vector<2x128xf32>
    %36 = tpu.matmul %27, %35, %cst_28 {dimension_numbers = #tpu.dot_dimension_numbers<[1], [0], [0], [1], [0, 0, 1, 1], [], []>} : vector<2x128xf32>, vector<128x128xf32>, vector<2x128xf32> -> vector<2x128xf32>
    %c0_29 = arith.constant 0 : index
    %c0_30 = arith.constant 0 : index
    %37 = vector.load %arg7[%c0_29, %c0_30] : memref<1x128xf32, #tpu.memory_space<vmem>>, vector<1x128xf32>
    %38 = vector.broadcast %37 : vector<1x128xf32> to vector<2x128xf32>
    %39 = arith.addf %36, %38 : vector<2x128xf32>
    %40 = math.tanh %39 : vector<2x128xf32>
    %c0_31 = arith.constant 0 : index
    %c0_32 = arith.constant 0 : index
    %41 = vector.load %arg8[%c0_31, %c0_32] : memref<128x512xf32, #tpu.memory_space<vmem>>, vector<128x512xf32>
    %cst_33 = arith.constant dense<0.000000e+00> : vector<2x512xf32>
    %42 = tpu.matmul %40, %41, %cst_33 {dimension_numbers = #tpu.dot_dimension_numbers<[1], [0], [0], [1], [0, 0, 1, 1], [], []>} : vector<2x128xf32>, vector<128x512xf32>, vector<2x512xf32> -> vector<2x512xf32>
    %c0_34 = arith.constant 0 : index
    %c0_35 = arith.constant 0 : index
    %43 = vector.load %arg9[%c0_34, %c0_35] : memref<1x512xf32, #tpu.memory_space<vmem>>, vector<1x512xf32>
    %44 = vector.broadcast %43 : vector<1x512xf32> to vector<2x512xf32>
    %45 = arith.addf %42, %44 : vector<2x512xf32>
    %46 = math.tanh %45 : vector<2x512xf32>
    %47 = arith.index_cast %c2_i32 : i32 to index
    %c0_36 = arith.constant 0 : index
    %c0_37 = arith.constant 0 : index
    %48 = vector.load %arg2[%47, %c0_36, %c0_37] : memref<8x2x16xf32, #tpu.memory_space<vmem>>, vector<1x2x16xf32>
    %49 = vector.shape_cast %48 : vector<1x2x16xf32> to vector<2x16xf32>
    %c0_38 = arith.constant 0 : index
    %c0_39 = arith.constant 0 : index
    %50 = vector.load %arg10[%c0_38, %c0_39] : memref<16x512xf32, #tpu.memory_space<vmem>>, vector<16x512xf32>
    %cst_40 = arith.constant dense<0.000000e+00> : vector<2x512xf32>
    %51 = tpu.matmul %49, %50, %cst_40 {dimension_numbers = #tpu.dot_dimension_numbers<[1], [0], [0], [1], [0, 0, 1, 1], [], []>} : vector<2x16xf32>, vector<16x512xf32>, vector<2x512xf32> -> vector<2x512xf32>
    %52 = arith.mulf %46, %51 : vector<2x512xf32>
    %c0_41 = arith.constant 0 : index
    %c0_42 = arith.constant 0 : index
    %53 = vector.load %arg11[%c0_41, %c0_42] : memref<512x128xf32, #tpu.memory_space<vmem>>, vector<512x128xf32>
    %cst_43 = arith.constant dense<0.000000e+00> : vector<2x128xf32>
    %54 = tpu.matmul %52, %53, %cst_43 {dimension_numbers = #tpu.dot_dimension_numbers<[1], [0], [0], [1], [0, 0, 1, 1], [], []>} : vector<2x512xf32>, vector<512x128xf32>, vector<2x128xf32> -> vector<2x128xf32>
    %55 = arith.addf %27, %54 : vector<2x128xf32>
    %c1_i32_44 = arith.constant 1 : i32
    %56 = vector.broadcast %c1_i32_44 : i32 to vector<2x1xi32>
    %57 = arith.subi %6, %56 : vector<2x1xi32>
    %58 = vector.broadcast %c2_i32 : i32 to vector<2x1xi32>
    %59 = arith.cmpi eq, %57, %58 : vector<2x1xi32>
    %60 = vector.shape_cast %59 : vector<2x1xi1> to vector<2x1xi1>
    %61 = vector.broadcast %60 : vector<2x1xi1> to vector<2x128xi1>
    %62 = arith.select %61, %55, %34 : vector<2x128xi1>, vector<2x128xf32>
    %c3_i32 = arith.constant 3 : i32
    %c0_45 = arith.constant 0 : index
    %c0_46 = arith.constant 0 : index
    %63 = vector.load %arg6[%c0_45, %c0_46] : memref<128x128xf32, #tpu.memory_space<vmem>>, vector<128x128xf32>
    %cst_47 = arith.constant dense<0.000000e+00> : vector<2x128xf32>
    %64 = tpu.matmul %55, %63, %cst_47 {dimension_numbers = #tpu.dot_dimension_numbers<[1], [0], [0], [1], [0, 0, 1, 1], [], []>} : vector<2x128xf32>, vector<128x128xf32>, vector<2x128xf32> -> vector<2x128xf32>
    %c0_48 = arith.constant 0 : index
    %c0_49 = arith.constant 0 : index
    %65 = vector.load %arg7[%c0_48, %c0_49] : memref<1x128xf32, #tpu.memory_space<vmem>>, vector<1x128xf32>
    %66 = vector.broadcast %65 : vector<1x128xf32> to vector<2x128xf32>
    %67 = arith.addf %64, %66 : vector<2x128xf32>
    %68 = math.tanh %67 : vector<2x128xf32>
    %c0_50 = arith.constant 0 : index
    %c0_51 = arith.constant 0 : index
    %69 = vector.load %arg8[%c0_50, %c0_51] : memref<128x512xf32, #tpu.memory_space<vmem>>, vector<128x512xf32>
    %cst_52 = arith.constant dense<0.000000e+00> : vector<2x512xf32>
    %70 = tpu.matmul %68, %69, %cst_52 {dimension_numbers = #tpu.dot_dimension_numbers<[1], [0], [0], [1], [0, 0, 1, 1], [], []>} : vector<2x128xf32>, vector<128x512xf32>, vector<2x512xf32> -> vector<2x512xf32>
    %c0_53 = arith.constant 0 : index
    %c0_54 = arith.constant 0 : index
    %71 = vector.load %arg9[%c0_53, %c0_54] : memref<1x512xf32, #tpu.memory_space<vmem>>, vector<1x512xf32>
    %72 = vector.broadcast %71 : vector<1x512xf32> to vector<2x512xf32>
    %73 = arith.addf %70, %72 : vector<2x512xf32>
    %74 = math.tanh %73 : vector<2x512xf32>
    %75 = arith.index_cast %c3_i32 : i32 to index
    %c0_55 = arith.constant 0 : index
    %c0_56 = arith.constant 0 : index
    %76 = vector.load %arg2[%75, %c0_55, %c0_56] : memref<8x2x16xf32, #tpu.memory_space<vmem>>, vector<1x2x16xf32>
    %77 = vector.shape_cast %76 : vector<1x2x16xf32> to vector<2x16xf32>
    %c0_57 = arith.constant 0 : index
    %c0_58 = arith.constant 0 : index
    %78 = vector.load %arg10[%c0_57, %c0_58] : memref<16x512xf32, #tpu.memory_space<vmem>>, vector<16x512xf32>
    %cst_59 = arith.constant dense<0.000000e+00> : vector<2x512xf32>
    %79 = tpu.matmul %77, %78, %cst_59 {dimension_numbers = #tpu.dot_dimension_numbers<[1], [0], [0], [1], [0, 0, 1, 1], [], []>} : vector<2x16xf32>, vector<16x512xf32>, vector<2x512xf32> -> vector<2x512xf32>
    %80 = arith.mulf %74, %79 : vector<2x512xf32>
    %c0_60 = arith.constant 0 : index
    %c0_61 = arith.constant 0 : index
    %81 = vector.load %arg11[%c0_60, %c0_61] : memref<512x128xf32, #tpu.memory_space<vmem>>, vector<512x128xf32>
    %cst_62 = arith.constant dense<0.000000e+00> : vector<2x128xf32>
    %82 = tpu.matmul %80, %81, %cst_62 {dimension_numbers = #tpu.dot_dimension_numbers<[1], [0], [0], [1], [0, 0, 1, 1], [], []>} : vector<2x512xf32>, vector<512x128xf32>, vector<2x128xf32> -> vector<2x128xf32>
    %83 = arith.addf %55, %82 : vector<2x128xf32>
    %c1_i32_63 = arith.constant 1 : i32
    %84 = vector.broadcast %c1_i32_63 : i32 to vector<2x1xi32>
    %85 = arith.subi %6, %84 : vector<2x1xi32>
    %86 = vector.broadcast %c3_i32 : i32 to vector<2x1xi32>
    %87 = arith.cmpi eq, %85, %86 : vector<2x1xi32>
    %88 = vector.shape_cast %87 : vector<2x1xi1> to vector<2x1xi1>
    %89 = vector.broadcast %88 : vector<2x1xi1> to vector<2x128xi1>
    %90 = arith.select %89, %83, %62 : vector<2x128xi1>, vector<2x128xf32>
    %c4_i32 = arith.constant 4 : i32
    %c0_64 = arith.constant 0 : index
    %c0_65 = arith.constant 0 : index
    %91 = vector.load %arg6[%c0_64, %c0_65] : memref<128x128xf32, #tpu.memory_space<vmem>>, vector<128x128xf32>
    %cst_66 = arith.constant dense<0.000000e+00> : vector<2x128xf32>
    %92 = tpu.matmul %83, %91, %cst_66 {dimension_numbers = #tpu.dot_dimension_numbers<[1], [0], [0], [1], [0, 0, 1, 1], [], []>} : vector<2x128xf32>, vector<128x128xf32>, vector<2x128xf32> -> vector<2x128xf32>
    %c0_67 = arith.constant 0 : index
    %c0_68 = arith.constant 0 : index
    %93 = vector.load %arg7[%c0_67, %c0_68] : memref<1x128xf32, #tpu.memory_space<vmem>>, vector<1x128xf32>
    %94 = vector.broadcast %93 : vector<1x128xf32> to vector<2x128xf32>
    %95 = arith.addf %92, %94 : vector<2x128xf32>
    %96 = math.tanh %95 : vector<2x128xf32>
    %c0_69 = arith.constant 0 : index
    %c0_70 = arith.constant 0 : index
    %97 = vector.load %arg8[%c0_69, %c0_70] : memref<128x512xf32, #tpu.memory_space<vmem>>, vector<128x512xf32>
    %cst_71 = arith.constant dense<0.000000e+00> : vector<2x512xf32>
    %98 = tpu.matmul %96, %97, %cst_71 {dimension_numbers = #tpu.dot_dimension_numbers<[1], [0], [0], [1], [0, 0, 1, 1], [], []>} : vector<2x128xf32>, vector<128x512xf32>, vector<2x512xf32> -> vector<2x512xf32>
    %c0_72 = arith.constant 0 : index
    %c0_73 = arith.constant 0 : index
    %99 = vector.load %arg9[%c0_72, %c0_73] : memref<1x512xf32, #tpu.memory_space<vmem>>, vector<1x512xf32>
    %100 = vector.broadcast %99 : vector<1x512xf32> to vector<2x512xf32>
    %101 = arith.addf %98, %100 : vector<2x512xf32>
    %102 = math.tanh %101 : vector<2x512xf32>
    %103 = arith.index_cast %c4_i32 : i32 to index
    %c0_74 = arith.constant 0 : index
    %c0_75 = arith.constant 0 : index
    %104 = vector.load %arg2[%103, %c0_74, %c0_75] : memref<8x2x16xf32, #tpu.memory_space<vmem>>, vector<1x2x16xf32>
    %105 = vector.shape_cast %104 : vector<1x2x16xf32> to vector<2x16xf32>
    %c0_76 = arith.constant 0 : index
    %c0_77 = arith.constant 0 : index
    %106 = vector.load %arg10[%c0_76, %c0_77] : memref<16x512xf32, #tpu.memory_space<vmem>>, vector<16x512xf32>
    %cst_78 = arith.constant dense<0.000000e+00> : vector<2x512xf32>
    %107 = tpu.matmul %105, %106, %cst_78 {dimension_numbers = #tpu.dot_dimension_numbers<[1], [0], [0], [1], [0, 0, 1, 1], [], []>} : vector<2x16xf32>, vector<16x512xf32>, vector<2x512xf32> -> vector<2x512xf32>
    %108 = arith.mulf %102, %107 : vector<2x512xf32>
    %c0_79 = arith.constant 0 : index
    %c0_80 = arith.constant 0 : index
    %109 = vector.load %arg11[%c0_79, %c0_80] : memref<512x128xf32, #tpu.memory_space<vmem>>, vector<512x128xf32>
    %cst_81 = arith.constant dense<0.000000e+00> : vector<2x128xf32>
    %110 = tpu.matmul %108, %109, %cst_81 {dimension_numbers = #tpu.dot_dimension_numbers<[1], [0], [0], [1], [0, 0, 1, 1], [], []>} : vector<2x512xf32>, vector<512x128xf32>, vector<2x128xf32> -> vector<2x128xf32>
    %111 = arith.addf %83, %110 : vector<2x128xf32>
    %c1_i32_82 = arith.constant 1 : i32
    %112 = vector.broadcast %c1_i32_82 : i32 to vector<2x1xi32>
    %113 = arith.subi %6, %112 : vector<2x1xi32>
    %114 = vector.broadcast %c4_i32 : i32 to vector<2x1xi32>
    %115 = arith.cmpi eq, %113, %114 : vector<2x1xi32>
    %116 = vector.shape_cast %115 : vector<2x1xi1> to vector<2x1xi1>
    %117 = vector.broadcast %116 : vector<2x1xi1> to vector<2x128xi1>
    %118 = arith.select %117, %111, %90 : vector<2x128xi1>, vector<2x128xf32>
    %c5_i32 = arith.constant 5 : i32
    %c0_83 = arith.constant 0 : index
    %c0_84 = arith.constant 0 : index
    %119 = vector.load %arg6[%c0_83, %c0_84] : memref<128x128xf32, #tpu.memory_space<vmem>>, vector<128x128xf32>
    %cst_85 = arith.constant dense<0.000000e+00> : vector<2x128xf32>
    %120 = tpu.matmul %111, %119, %cst_85 {dimension_numbers = #tpu.dot_dimension_numbers<[1], [0], [0], [1], [0, 0, 1, 1], [], []>} : vector<2x128xf32>, vector<128x128xf32>, vector<2x128xf32> -> vector<2x128xf32>
    %c0_86 = arith.constant 0 : index
    %c0_87 = arith.constant 0 : index
    %121 = vector.load %arg7[%c0_86, %c0_87] : memref<1x128xf32, #tpu.memory_space<vmem>>, vector<1x128xf32>
    %122 = vector.broadcast %121 : vector<1x128xf32> to vector<2x128xf32>
    %123 = arith.addf %120, %122 : vector<2x128xf32>
    %124 = math.tanh %123 : vector<2x128xf32>
    %c0_88 = arith.constant 0 : index
    %c0_89 = arith.constant 0 : index
    %125 = vector.load %arg8[%c0_88, %c0_89] : memref<128x512xf32, #tpu.memory_space<vmem>>, vector<128x512xf32>
    %cst_90 = arith.constant dense<0.000000e+00> : vector<2x512xf32>
    %126 = tpu.matmul %124, %125, %cst_90 {dimension_numbers = #tpu.dot_dimension_numbers<[1], [0], [0], [1], [0, 0, 1, 1], [], []>} : vector<2x128xf32>, vector<128x512xf32>, vector<2x512xf32> -> vector<2x512xf32>
    %c0_91 = arith.constant 0 : index
    %c0_92 = arith.constant 0 : index
    %127 = vector.load %arg9[%c0_91, %c0_92] : memref<1x512xf32, #tpu.memory_space<vmem>>, vector<1x512xf32>
    %128 = vector.broadcast %127 : vector<1x512xf32> to vector<2x512xf32>
    %129 = arith.addf %126, %128 : vector<2x512xf32>
    %130 = math.tanh %129 : vector<2x512xf32>
    %131 = arith.index_cast %c5_i32 : i32 to index
    %c0_93 = arith.constant 0 : index
    %c0_94 = arith.constant 0 : index
    %132 = vector.load %arg2[%131, %c0_93, %c0_94] : memref<8x2x16xf32, #tpu.memory_space<vmem>>, vector<1x2x16xf32>
    %133 = vector.shape_cast %132 : vector<1x2x16xf32> to vector<2x16xf32>
    %c0_95 = arith.constant 0 : index
    %c0_96 = arith.constant 0 : index
    %134 = vector.load %arg10[%c0_95, %c0_96] : memref<16x512xf32, #tpu.memory_space<vmem>>, vector<16x512xf32>
    %cst_97 = arith.constant dense<0.000000e+00> : vector<2x512xf32>
    %135 = tpu.matmul %133, %134, %cst_97 {dimension_numbers = #tpu.dot_dimension_numbers<[1], [0], [0], [1], [0, 0, 1, 1], [], []>} : vector<2x16xf32>, vector<16x512xf32>, vector<2x512xf32> -> vector<2x512xf32>
    %136 = arith.mulf %130, %135 : vector<2x512xf32>
    %c0_98 = arith.constant 0 : index
    %c0_99 = arith.constant 0 : index
    %137 = vector.load %arg11[%c0_98, %c0_99] : memref<512x128xf32, #tpu.memory_space<vmem>>, vector<512x128xf32>
    %cst_100 = arith.constant dense<0.000000e+00> : vector<2x128xf32>
    %138 = tpu.matmul %136, %137, %cst_100 {dimension_numbers = #tpu.dot_dimension_numbers<[1], [0], [0], [1], [0, 0, 1, 1], [], []>} : vector<2x512xf32>, vector<512x128xf32>, vector<2x128xf32> -> vector<2x128xf32>
    %139 = arith.addf %111, %138 : vector<2x128xf32>
    %c1_i32_101 = arith.constant 1 : i32
    %140 = vector.broadcast %c1_i32_101 : i32 to vector<2x1xi32>
    %141 = arith.subi %6, %140 : vector<2x1xi32>
    %142 = vector.broadcast %c5_i32 : i32 to vector<2x1xi32>
    %143 = arith.cmpi eq, %141, %142 : vector<2x1xi32>
    %144 = vector.shape_cast %143 : vector<2x1xi1> to vector<2x1xi1>
    %145 = vector.broadcast %144 : vector<2x1xi1> to vector<2x128xi1>
    %146 = arith.select %145, %139, %118 : vector<2x128xi1>, vector<2x128xf32>
    %c6_i32 = arith.constant 6 : i32
    %c0_102 = arith.constant 0 : index
    %c0_103 = arith.constant 0 : index
    %147 = vector.load %arg6[%c0_102, %c0_103] : memref<128x128xf32, #tpu.memory_space<vmem>>, vector<128x128xf32>
    %cst_104 = arith.constant dense<0.000000e+00> : vector<2x128xf32>
    %148 = tpu.matmul %139, %147, %cst_104 {dimension_numbers = #tpu.dot_dimension_numbers<[1], [0], [0], [1], [0, 0, 1, 1], [], []>} : vector<2x128xf32>, vector<128x128xf32>, vector<2x128xf32> -> vector<2x128xf32>
    %c0_105 = arith.constant 0 : index
    %c0_106 = arith.constant 0 : index
    %149 = vector.load %arg7[%c0_105, %c0_106] : memref<1x128xf32, #tpu.memory_space<vmem>>, vector<1x128xf32>
    %150 = vector.broadcast %149 : vector<1x128xf32> to vector<2x128xf32>
    %151 = arith.addf %148, %150 : vector<2x128xf32>
    %152 = math.tanh %151 : vector<2x128xf32>
    %c0_107 = arith.constant 0 : index
    %c0_108 = arith.constant 0 : index
    %153 = vector.load %arg8[%c0_107, %c0_108] : memref<128x512xf32, #tpu.memory_space<vmem>>, vector<128x512xf32>
    %cst_109 = arith.constant dense<0.000000e+00> : vector<2x512xf32>
    %154 = tpu.matmul %152, %153, %cst_109 {dimension_numbers = #tpu.dot_dimension_numbers<[1], [0], [0], [1], [0, 0, 1, 1], [], []>} : vector<2x128xf32>, vector<128x512xf32>, vector<2x512xf32> -> vector<2x512xf32>
    %c0_110 = arith.constant 0 : index
    %c0_111 = arith.constant 0 : index
    %155 = vector.load %arg9[%c0_110, %c0_111] : memref<1x512xf32, #tpu.memory_space<vmem>>, vector<1x512xf32>
    %156 = vector.broadcast %155 : vector<1x512xf32> to vector<2x512xf32>
    %157 = arith.addf %154, %156 : vector<2x512xf32>
    %158 = math.tanh %157 : vector<2x512xf32>
    %159 = arith.index_cast %c6_i32 : i32 to index
    %c0_112 = arith.constant 0 : index
    %c0_113 = arith.constant 0 : index
    %160 = vector.load %arg2[%159, %c0_112, %c0_113] : memref<8x2x16xf32, #tpu.memory_space<vmem>>, vector<1x2x16xf32>
    %161 = vector.shape_cast %160 : vector<1x2x16xf32> to vector<2x16xf32>
    %c0_114 = arith.constant 0 : index
    %c0_115 = arith.constant 0 : index
    %162 = vector.load %arg10[%c0_114, %c0_115] : memref<16x512xf32, #tpu.memory_space<vmem>>, vector<16x512xf32>
    %cst_116 = arith.constant dense<0.000000e+00> : vector<2x512xf32>
    %163 = tpu.matmul %161, %162, %cst_116 {dimension_numbers = #tpu.dot_dimension_numbers<[1], [0], [0], [1], [0, 0, 1, 1], [], []>} : vector<2x16xf32>, vector<16x512xf32>, vector<2x512xf32> -> vector<2x512xf32>
    %164 = arith.mulf %158, %163 : vector<2x512xf32>
    %c0_117 = arith.constant 0 : index
    %c0_118 = arith.constant 0 : index
    %165 = vector.load %arg11[%c0_117, %c0_118] : memref<512x128xf32, #tpu.memory_space<vmem>>, vector<512x128xf32>
    %cst_119 = arith.constant dense<0.000000e+00> : vector<2x128xf32>
    %166 = tpu.matmul %164, %165, %cst_119 {dimension_numbers = #tpu.dot_dimension_numbers<[1], [0], [0], [1], [0, 0, 1, 1], [], []>} : vector<2x512xf32>, vector<512x128xf32>, vector<2x128xf32> -> vector<2x128xf32>
    %167 = arith.addf %139, %166 : vector<2x128xf32>
    %c1_i32_120 = arith.constant 1 : i32
    %168 = vector.broadcast %c1_i32_120 : i32 to vector<2x1xi32>
    %169 = arith.subi %6, %168 : vector<2x1xi32>
    %170 = vector.broadcast %c6_i32 : i32 to vector<2x1xi32>
    %171 = arith.cmpi eq, %169, %170 : vector<2x1xi32>
    %172 = vector.shape_cast %171 : vector<2x1xi1> to vector<2x1xi1>
    %173 = vector.broadcast %172 : vector<2x1xi1> to vector<2x128xi1>
    %174 = arith.select %173, %167, %146 : vector<2x128xi1>, vector<2x128xf32>
    %c7_i32 = arith.constant 7 : i32
    %c0_121 = arith.constant 0 : index
    %c0_122 = arith.constant 0 : index
    %175 = vector.load %arg6[%c0_121, %c0_122] : memref<128x128xf32, #tpu.memory_space<vmem>>, vector<128x128xf32>
    %cst_123 = arith.constant dense<0.000000e+00> : vector<2x128xf32>
    %176 = tpu.matmul %167, %175, %cst_123 {dimension_numbers = #tpu.dot_dimension_numbers<[1], [0], [0], [1], [0, 0, 1, 1], [], []>} : vector<2x128xf32>, vector<128x128xf32>, vector<2x128xf32> -> vector<2x128xf32>
    %c0_124 = arith.constant 0 : index
    %c0_125 = arith.constant 0 : index
    %177 = vector.load %arg7[%c0_124, %c0_125] : memref<1x128xf32, #tpu.memory_space<vmem>>, vector<1x128xf32>
    %178 = vector.broadcast %177 : vector<1x128xf32> to vector<2x128xf32>
    %179 = arith.addf %176, %178 : vector<2x128xf32>
    %180 = math.tanh %179 : vector<2x128xf32>
    %c0_126 = arith.constant 0 : index
    %c0_127 = arith.constant 0 : index
    %181 = vector.load %arg8[%c0_126, %c0_127] : memref<128x512xf32, #tpu.memory_space<vmem>>, vector<128x512xf32>
    %cst_128 = arith.constant dense<0.000000e+00> : vector<2x512xf32>
    %182 = tpu.matmul %180, %181, %cst_128 {dimension_numbers = #tpu.dot_dimension_numbers<[1], [0], [0], [1], [0, 0, 1, 1], [], []>} : vector<2x128xf32>, vector<128x512xf32>, vector<2x512xf32> -> vector<2x512xf32>
    %c0_129 = arith.constant 0 : index
    %c0_130 = arith.constant 0 : index
    %183 = vector.load %arg9[%c0_129, %c0_130] : memref<1x512xf32, #tpu.memory_space<vmem>>, vector<1x512xf32>
    %184 = vector.broadcast %183 : vector<1x512xf32> to vector<2x512xf32>
    %185 = arith.addf %182, %184 : vector<2x512xf32>
    %186 = math.tanh %185 : vector<2x512xf32>
    %187 = arith.index_cast %c7_i32 : i32 to index
    %c0_131 = arith.constant 0 : index
    %c0_132 = arith.constant 0 : index
    %188 = vector.load %arg2[%187, %c0_131, %c0_132] : memref<8x2x16xf32, #tpu.memory_space<vmem>>, vector<1x2x16xf32>
    %189 = vector.shape_cast %188 : vector<1x2x16xf32> to vector<2x16xf32>
    %c0_133 = arith.constant 0 : index
    %c0_134 = arith.constant 0 : index
    %190 = vector.load %arg10[%c0_133, %c0_134] : memref<16x512xf32, #tpu.memory_space<vmem>>, vector<16x512xf32>
    %cst_135 = arith.constant dense<0.000000e+00> : vector<2x512xf32>
    %191 = tpu.matmul %189, %190, %cst_135 {dimension_numbers = #tpu.dot_dimension_numbers<[1], [0], [0], [1], [0, 0, 1, 1], [], []>} : vector<2x16xf32>, vector<16x512xf32>, vector<2x512xf32> -> vector<2x512xf32>
    %192 = arith.mulf %186, %191 : vector<2x512xf32>
    %c0_136 = arith.constant 0 : index
    %c0_137 = arith.constant 0 : index
    %193 = vector.load %arg11[%c0_136, %c0_137] : memref<512x128xf32, #tpu.memory_space<vmem>>, vector<512x128xf32>
    %cst_138 = arith.constant dense<0.000000e+00> : vector<2x128xf32>
    %194 = tpu.matmul %192, %193, %cst_138 {dimension_numbers = #tpu.dot_dimension_numbers<[1], [0], [0], [1], [0, 0, 1, 1], [], []>} : vector<2x512xf32>, vector<512x128xf32>, vector<2x128xf32> -> vector<2x128xf32>
    %195 = arith.addf %167, %194 : vector<2x128xf32>
    %c1_i32_139 = arith.constant 1 : i32
    %196 = vector.broadcast %c1_i32_139 : i32 to vector<2x1xi32>
    %197 = arith.subi %6, %196 : vector<2x1xi32>
    %198 = vector.broadcast %c7_i32 : i32 to vector<2x1xi32>
    %199 = arith.cmpi eq, %197, %198 : vector<2x1xi32>
    %200 = vector.shape_cast %199 : vector<2x1xi1> to vector<2x1xi1>
    %201 = vector.broadcast %200 : vector<2x1xi1> to vector<2x128xi1>
    %202 = arith.select %201, %195, %174 : vector<2x128xi1>, vector<2x128xf32>
    %c7_i32_140 = arith.constant 7 : i32
    %c0_141 = arith.constant 0 : index
    %c0_142 = arith.constant 0 : index
    %203 = vector.load %arg12[%c0_141, %c0_142] : memref<2x128xf32, #tpu.memory_space<vmem>>, vector<2x128xf32>
    tpu.vector_store %arg12[%c0_141, %c0_142], %202 {strides = array<i32>} : memref<2x128xf32, #tpu.memory_space<vmem>>, vector<2x128xf32>,
    return
  }
  func.func @transform_0(%arg0: i32) -> (i32, i32) {
    %c0_i32 = arith.constant 0 : i32
    %c0_i32_0 = arith.constant 0 : i32
    return %arg0, %c0_i32 : i32, i32
  }
  func.func @transform_1(%arg0: i32) -> (i32, i32, i32) {
    %c0_i32 = arith.constant 0 : i32
    %c0_i32_0 = arith.constant 0 : i32
    %c0_i32_1 = arith.constant 0 : i32
    return %c0_i32, %arg0, %c0_i32_0 : i32, i32, i32
  }
  func.func @transform_2(%arg0: i32) -> (i32, i32) {
    %c0_i32 = arith.constant 0 : i32
    %c0_i32_0 = arith.constant 0 : i32
    return %arg0, %c0_i32 : i32, i32
  }
  func.func @transform_3(%arg0: i32) -> (i32, i32) {
    %c0_i32 = arith.constant 0 : i32
    %c0_i32_0 = arith.constant 0 : i32
    %c0_i32_1 = arith.constant 0 : i32
    return %c0_i32, %c0_i32_0 : i32, i32
  }
  func.func @transform_4(%arg0: i32) -> (i32, i32) {
    %c0_i32 = arith.constant 0 : i32
    %c0_i32_0 = arith.constant 0 : i32
    %c0_i32_1 = arith.constant 0 : i32
    return %c0_i32, %c0_i32_0 : i32, i32
  }
  func.func @transform_5(%arg0: i32) -> (i32, i32) {
    %c0_i32 = arith.constant 0 : i32
    %c0_i32_0 = arith.constant 0 : i32
    %c0_i32_1 = arith.constant 0 : i32
    return %c0_i32, %c0_i32_0 : i32, i32
  }
  func.func @transform_6(%arg0: i32) -> (i32, i32) {
    %c0_i32 = arith.constant 0 : i32
    %c0_i32_0 = arith.constant 0 : i32
    %c0_i32_1 = arith.constant 0 : i32
    return %c0_i32, %c0_i32_0 : i32, i32
  }
  func.func @transform_7(%arg0: i32) -> (i32, i32) {
    %c0_i32 = arith.constant 0 : i32
    %c0_i32_0 = arith.constant 0 : i32
    %c0_i32_1 = arith.constant 0 : i32
    return %c0_i32, %c0_i32_0 : i32, i32
  }
  func.func @transform_8(%arg0: i32) -> (i32, i32) {
    %c0_i32 = arith.constant 0 : i32
    %c0_i32_0 = arith.constant 0 : i32
    %c0_i32_1 = arith.constant 0 : i32
    return %c0_i32, %c0_i32_0 : i32, i32
  }
  func.func @transform_9(%arg0: i32) -> (i32, i32) {
    %c0_i32 = arith.constant 0 : i32
    %c0_i32_0 = arith.constant 0 : i32
    %c0_i32_1 = arith.constant 0 : i32
    return %c0_i32, %c0_i32_0 : i32, i32
  }
  func.func @transform_10(%arg0: i32) -> (i32, i32) {
    %c0_i32 = arith.constant 0 : i32
    %c0_i32_0 = arith.constant 0 : i32
    %c0_i32_1 = arith.constant 0 : i32
    return %c0_i32, %c0_i32_0 : i32, i32
  }
  func.func @transform_11(%arg0: i32) -> (i32, i32) {
    %c0_i32 = arith.constant 0 : i32
    %c0_i32_0 = arith.constant 0 : i32
    return %arg0, %c0_i32 : i32, i32
  }
}

</mosaic_0001>

<bundles_post_ra>
// kernel: tpu_custom_call.1
= control target key start
LH: loop header
LB: loop body
LE: loop exit
PB: predicated region body
PF: predicated region fallthrough
CT: control target
= control target key end

     0   :  { %16 = vsyncpa [#allocation3], 0  ;;  %s7379_s0 = inlined_call_operand.vmem [shape: f32[2,16], index: 0, kind: input, shape index: {}]   ;;  %s7380_s1 = inlined_call_operand.hbm [shape: f32[8,2,16], index: 1, kind: input, shape index: {}]   ;;  %s7381_s2 = inlined_call_operand.vmem [shape: s32[2,1], index: 2, kind: input, shape index: {}]   ;;  %s7382_s3 = inlined_call_operand.hbm [shape: f32[16,128], index: 3, kind: input, shape index: {}]   ;;  %s7383_s4 = inlined_call_operand.vmem [shape: f32[1,128], index: 4, kind: input, shape index: {}]   ;;  %s7384_s5 = inlined_call_operand.hbm [shape: f32[128,128], index: 5, kind: input, shape index: {}]   ;;  %s7385_s6 = inlined_call_operand.vmem [shape: f32[1,128], index: 6, kind: input, shape index: {}]   ;;  %s7386_s7 = inlined_call_operand.hbm [shape: f32[128,512], index: 7, kind: input, shape index: {}]   ;;  %s7387_s8 = inlined_call_operand.vmem [shape: f32[1,512], index: 8, kind: input, shape index: {}]   ;;  %s7388_s9 = inlined_call_operand.hbm [shape: f32[16,512], index: 9, kind: input, shape index: {}]   ;;  %s7389_s10 = inlined_call_operand.hbm [shape: f32[512,128], index: 10, kind: input, shape index: {}]   ;;  %s7390_s11 = inlined_call_operand.hbm [shape: f32[2,128], index: 11, kind: output, shape index: {}]  }
   0x1   :  { %17 = vsyncpa [#allocation6], 0 }
   0x2   :  { %18 = vsyncpa [#allocation9], 0 }
   0x3   :  { %19 = vsyncpa [#allocation12], 0 }
   0x4   :  { %20 = vsyncpa [#allocation4], 0  ;;  %s6277_s17 = smov [#allocation5]   ;;  %s6113_s21 = scalar_lea.hbm %s7382_s3, 256 }
   0x5   :  { %s42_s18 = sshll.u32 %s6277_s17, 4  ;;  %p6114_p0 = scmp.ne.s32.totalorder %s7382_s3, %s6113_s21  ;;  %s43_s18 = int_to_ptr.vmem [resolvable:$true] %s42_s18 }
   0x6   :  { %p6117_p1 = scmp.lt.u32.totalorder %s6113_s21, %s7382_s3 }
   0x8   :  { %p6119_p2 = pnand %p6117_p1, %p6114_p0 }
   0xa   :  { %6122 = shalt.err (!%p6119_p2)
}
   0xb   :  { %s6123_s26 = scalar_lea.vmem %s43_s18, 256  ;;  %p6128_p4 = scmp.lt.s32.totalorder %s43_s18, %s43_s18 }
   0xc   :  { %p6124_p3 = scmp.ne.s32.totalorder %s43_s18, %s6123_s26  ;;  %p6129_p5 = scmp.lt.s32.totalorder %s6123_s26, %s6123_s26 }
   0xe   :  { %p6130_p6 = por %p6129_p5, %p6128_p4 }
  0x10   :  { %p6131_p7 = pnand %p6130_p6, %p6124_p3 }
  0x12   :  { %6134 = shalt.err (!%p6131_p7)
}
  0x13   :  { %s6278_s27 = smov 128   ;;  %s6279_s28 = smov 8  }
  0x14   :  { %48 = dma.hbm_to_vmem [thread:$0]  %s7382_s3, 256, %s43_s18, [#allocation6], %s6278_s27, %s6278_s27, %s6279_s28  }
  0x15   :  { %s6280_s12 = smov [#allocation8]   ;;  %s6281_s14 = smov [#allocation2]  }
  0x16   :  { %s70_s13 = sshll.u32 %s6280_s12, 4  ;;  %s28_s15 = sshll.u32 %s6281_s14, 4  ;;  %s71_s13 = int_to_ptr.vmem [resolvable:$true] %s70_s13  ;;  %s29_s15 = int_to_ptr.vmem [resolvable:$true] %s28_s15 }
  0x17   :  { %s6135_s19 = scalar_lea.hbm %s7386_s7, 8192 }
  0x18   :  { %p6136_p8 = scmp.ne.s32.totalorder %s7386_s7, %s6135_s19  ;;  %p6139_p9 = scmp.lt.u32.totalorder %s6135_s19, %s7386_s7 }
  0x1a   :  { %p6141_p10 = pnand %p6139_p9, %p6136_p8 }
  0x1c   :  { %6144 = shalt.err (!%p6141_p10)
}
  0x1d   :  { %s6145_s3 = scalar_lea.vmem %s71_s13, 8192  ;;  %p6150_p12 = scmp.lt.s32.totalorder %s71_s13, %s71_s13 }
  0x1e   :  { %p6146_p11 = scmp.ne.s32.totalorder %s71_s13, %s6145_s3  ;;  %p6151_p13 = scmp.lt.s32.totalorder %s6145_s3, %s6145_s3 }
  0x20   :  { %p6152_p0 = por %p6151_p13, %p6150_p12 }
  0x22   :  { %p6153_p1 = pnand %p6152_p0, %p6146_p11 }
  0x24   :  { %6156 = shalt.err (!%p6153_p1)
}
  0x25   :  { %s6282_s18 = smov 512   ;;  %s6283_s24 = smov 32  }
  0x26   :  { %76 = dma.hbm_to_vmem [thread:$0]  %s7386_s7, 8192, %s71_s13, [#allocation9], %s6282_s18, %s6282_s18, %s6283_s24  }
  0x27   :  { %s6157_s12 = scalar_lea.hbm %s7380_s1, 256 }
  0x28   :  { %p6158_p2 = scmp.ne.s32.totalorder %s7380_s1, %s6157_s12  ;;  %p6161_p3 = scmp.lt.u32.totalorder %s6157_s12, %s7380_s1 }
  0x2a   :  { %p6163_p4 = pnand %p6161_p3, %p6158_p2 }
  0x2c   :  { %6166 = shalt.err (!%p6163_p4)
}
  0x2d   :  { %s6167_s20 = scalar_lea.vmem %s29_s15, 256  ;;  %p6172_p6 = scmp.lt.s32.totalorder %s29_s15, %s29_s15 }
  0x2e   :  { %p6168_p5 = scmp.ne.s32.totalorder %s29_s15, %s6167_s20  ;;  %p6173_p7 = scmp.lt.s32.totalorder %s6167_s20, %s6167_s20 }
  0x30   :  { %p6174_p8 = por %p6173_p7, %p6172_p6 }
  0x32   :  { %p6175_p9 = pnand %p6174_p8, %p6168_p5 }
  0x34   :  { %6178 = shalt.err (!%p6175_p9)
}
  0x35   :  { %s6284_s7 = smov 2   ;;  %s6285_s22 = smov [#allocation7]  }
  0x36   :  { %34 = dma.hbm_to_vmem [thread:$0]  %s7380_s1, 256, %s29_s15, [#allocation3], %s6283_s24, %s6283_s24, %s6284_s7  }
  0x37   :  { %s56_s23 = sshll.u32 %s6285_s22, 4  ;;  %s6286_s3 = smov [#allocation10]   ;;  %s57_s23 = int_to_ptr.vmem [resolvable:$true] %s56_s23 }
  0x38   :  { %s84_s25 = sshll.u32 %s6286_s3, 4  ;;  %s6179_s30 = scalar_lea.hbm %s7384_s5, 2048  ;;  %s6397_s25 = int_to_ptr.vmem [resolvable:$true] %s84_s25 }
  0x39   :  { %p6180_p10 = scmp.ne.s32.totalorder %s7384_s5, %s6179_s30  ;;  %p6183_p11 = scmp.lt.u32.totalorder %s6179_s30, %s7384_s5 }
  0x3b   :  { %p6185_p12 = pnand %p6183_p11, %p6180_p10 }
  0x3d   :  { %6188 = shalt.err (!%p6185_p12)
}
  0x3e   :  { %s6189_s1 = scalar_lea.vmem %s57_s23, 2048  ;;  %p6194_p0 = scmp.lt.s32.totalorder %s57_s23, %s57_s23 }
  0x3f   :  { %p6190_p13 = scmp.ne.s32.totalorder %s57_s23, %s6189_s1  ;;  %p6195_p1 = scmp.lt.s32.totalorder %s6189_s1, %s6189_s1 }
  0x41   :  { %p6196_p2 = por %p6195_p1, %p6194_p0 }
  0x43   :  { %p6197_p3 = pnand %p6196_p2, %p6190_p13 }
  0x45   :  { %6200 = shalt.err (!%p6197_p3)
}
  0x46   :  { %62 = dma.hbm_to_vmem [thread:$0]  %s7384_s5, 2048, %s57_s23, [#allocation6], %s6278_s27, %s6278_s27, %s6279_s28  }
  0x47   :  { %s6201_s13 = scalar_lea.hbm %s7388_s9, 1024 }
  0x48   :  { %p6202_p4 = scmp.ne.s32.totalorder %s7388_s9, %s6201_s13  ;;  %p6205_p5 = scmp.lt.u32.totalorder %s6201_s13, %s7388_s9 }
  0x4a   :  { %p6207_p6 = pnand %p6205_p5, %p6202_p4 }
  0x4c   :  { %6210 = shalt.err (!%p6207_p6)
}
  0x4d   :  { %s6211_s29 = scalar_lea.vmem %s6397_s25, 1024  ;;  %p6216_p8 = scmp.lt.s32.totalorder %s6397_s25, %s6397_s25 }
  0x4e   :  { %p6212_p7 = scmp.ne.s32.totalorder %s6397_s25, %s6211_s29  ;;  %p6217_p9 = scmp.lt.s32.totalorder %s6211_s29, %s6211_s29 }
  0x50   :  { %p6218_p10 = por %p6217_p9, %p6216_p8 }
  0x52   :  { %p6219_p11 = pnand %p6218_p10, %p6212_p7 }
  0x54   :  { %6222 = shalt.err (!%p6219_p11)
}
  0x55   :  { %90 = dma.hbm_to_vmem [thread:$0]  %s7388_s9, 1024, %s6397_s25, [#allocation9], %s6282_s18, %s6282_s18, %s6283_s24  }
  0x56   :  { %s6287_s30 = smov [#allocation11]   ;;  %s6223_s17 = scalar_lea.hbm %s7389_s10, 8192 }
  0x57   :  { %s96_s12 = sshll.u32 %s6287_s30, 4  ;;  %p6224_p12 = scmp.ne.s32.totalorder %s7389_s10, %s6223_s17  ;;  %s97_s12 = int_to_ptr.vmem [resolvable:$true] %s96_s12 }
  0x58   :  { %p6227_p13 = scmp.lt.u32.totalorder %s6223_s17, %s7389_s10 }
  0x5a   :  { %p6229_p0 = pnand %p6227_p13, %p6224_p12 }
  0x5c   :  { %6232 = shalt.err (!%p6229_p0)
}
  0x5d   :  { %s6233_s7 = scalar_lea.vmem %s97_s12, 8192  ;;  %p6238_p2 = scmp.lt.s32.totalorder %s97_s12, %s97_s12 }
  0x5e   :  { %p6234_p1 = scmp.ne.s32.totalorder %s97_s12, %s6233_s7  ;;  %p6239_p3 = scmp.lt.s32.totalorder %s6233_s7, %s6233_s7 }
  0x60   :  { %p6240_p4 = por %p6239_p3, %p6238_p2 }
  0x62   :  { %p6241_p5 = pnand %p6240_p4, %p6234_p1 }
  0x64   :  { %6244 = shalt.err (!%p6241_p5)
}
  0x65   :  { %102 = dma.hbm_to_vmem [thread:$0]  %s7389_s10, 8192, %s97_s12, [#allocation12], %s6278_s27, %s6278_s27, %s6279_s28  }
  0x66   :  { %6267 = dma.done.wait [#allocation3], 256  }
  0x67   :  { %6268 = vsyncadd [#allocation3], 4294967040 }
  0x68   :  { %6269 = dma.done.wait [#allocation6], 2304  }
  0x69   :  { %6270 = vsyncadd [#allocation6], 4294964992 }
  0x6a   :  { %6271 = dma.done.wait [#allocation9], 9216  }
  0x6b   :  { %6272 = vsyncadd [#allocation9], 4294958080 }
  0x6c   :  { %6273 = dma.done.wait [#allocation12], 8192  }
  0x6d   :  { %6274 = vsyncadd [#allocation12], 4294959104  ;;  %v7391_v0 = vmov 0.0|0.0   ;;  %vm6289_vm0 = vmmov 0   ;;  %v7393_v1 = vmov 0.0   ;;  %v122_v2 = vld [vmem:[#allocation5] sm:$0xff] }
  0x6e   :  { %4901 = vmatprep.subr.bf16.mxu0 %v7391_v0  ;;  %4653 = vmatprep.mubr.msk.f32.mxu0 %vm6289_vm0, %v7393_v1  ;;  %v123_v3 = vld [vmem:[#allocation5 + $0x8] sm:$0xff]  ;;  %v206_v5 = vld [vmem:[#allocation7] sm:$0xff]  ;;  %v207_v6 = vld [vmem:[#allocation7 + $0x8] sm:$0xff]  ;;  %vm131_vm1 = vcmask 130048  }
  0x6f   :  { %4904 = vmatprep.subr.bf16.mxu1 %v7391_v0  ;;  %4688 = vmatprep.mubr.msk.f32.mxu1 %vm6289_vm0, %v7393_v1  ;;  %v4902_v4 = vpack.c.bf16 %v123_v3, %v122_v2  ;;  %v208_v7 = vld [vmem:[#allocation7 + $0x10] sm:$0xff]  ;;  %v6455_v8 = vpack.c.bf16 %v207_v6, %v206_v5  ;;  %v209_v9 = vld [vmem:[#allocation7 + $0x18] sm:$0xff]  ;;  %v121_v10 = vld [vmem:[%s7379_s0] sm:$0x3] }
  0x70   :  { %v6461_v11 = vpack.c.bf16 %v209_v9, %v208_v7  ;;  %v210_v12 = vld [vmem:[#allocation7 + $0x20] sm:$0xff]  ;;  %v211_v13 = vld [vmem:[#allocation7 + $0x28] sm:$0xff]  ;;  %v212_v15 = vld [vmem:[#allocation7 + $0x30] sm:$0xff] }
  0x71   :  { %4903 = vmatpush3.bf16.msra.mxu0 %v4902_v4  ;;  %4906 = vmatpush3.bf16.msra.mxu1 %v6455_v8  ;;  %v6467_v14 = vpack.c.bf16 %v211_v13, %v210_v12  ;;  %v213_v16 = vld [vmem:[#allocation7 + $0x38] sm:$0xff]  ;;  %v214_v18 = vld [vmem:[#allocation7 + $0x40] sm:$0xff]  ;;  %v215_v19 = vld [vmem:[#allocation7 + $0x48] sm:$0xff] }
  0x72   :  { %4907 = vmatprep.subr.bf16.mxu1 %v7391_v0  ;;  %v6471_v17 = vpack.c.bf16 %v213_v16, %v212_v15  ;;  %v6475_v20 = vpack.c.bf16 %v215_v19, %v214_v18  ;;  %v216_v21 = vld [vmem:[#allocation7 + $0x50] sm:$0xff]  ;;  %v217_v22 = vld [vmem:[#allocation7 + $0x58] sm:$0xff]  ;;  %v218_v24 = vld [vmem:[#allocation7 + $0x60] sm:$0xff] }
  0x73   :  { %v6479_v23 = vpack.c.bf16 %v217_v22, %v216_v21  ;;  %v219_v25 = vld [vmem:[#allocation7 + $0x68] sm:$0xff]  ;;  %v220_v27 = vld [vmem:[#allocation7 + $0x70] sm:$0xff]  ;;  %v221_v28 = vld [vmem:[#allocation7 + $0x78] sm:$0xff] }
  0x74   :  { %4654 = vmatmul.mubr.msk.f32.vlgmr.msra.gmra.mrb[0].mxu0 %vm131_vm1, %v121_v10  ;;  %v6483_v26 = vpack.c.bf16 %v219_v25, %v218_v24  ;;  %v6488_v29 = vpack.c.bf16 %v221_v28, %v220_v27  ;;  %v301_v30 = vld [vmem:[#allocation8 + $0x8] sm:$0xff]  ;;  %v303_v32 = vld [vmem:[#allocation8 + $0x18] sm:$0xff]  ;;  %v300_v35 = vld [vmem:[#allocation8] sm:$0xff] }
  0x75   :  { %450 = vmatprep.mubr.f32.mxu0 %v7393_v1  ;;  %4909 = vmatpush3.bf16.msra.mxu1 %v6461_v11  ;;  %v305_v31 = vld [vmem:[#allocation8 + $0x28] sm:$0xff]  ;;  %v307_v34 = vld [vmem:[#allocation8 + $0x38] sm:$0xff]  ;;  %v304_v36 = vld [vmem:[#allocation8 + $0x20] sm:$0xff] }
  0x76   :  { %4910 = vmatprep.subr.bf16.mxu1 %v7391_v0  ;;  %v6491_v33 = vpack.c.bf16 %v305_v31, %v301_v30  ;;  %v6493_v37 = vpack.c.bf16 %v307_v34, %v303_v32  ;;  %v6495_v38 = vpack.c.bf16 %v304_v36, %v300_v35  ;;  %v309_v39 = vld [vmem:[#allocation8 + $0x48] sm:$0xff]  ;;  %v308_v42 = vld [vmem:[#allocation8 + $0x40] sm:$0xff]  ;;  %v302_v63 = vld [vmem:[#allocation8 + $0x10] sm:$0xff] }
  0x77   :  { %v313_v40 = vld [vmem:[#allocation8 + $0x68] sm:$0xff]  ;;  %v312_v43 = vld [vmem:[#allocation8 + $0x60] sm:$0xff]  ;;  %v306_v2 = vld [vmem:[#allocation8 + $0x30] sm:$0xff] }
  0x78   :  { %7486 = vst [vmem:[#allocation19_spill] sm:$0xff] %v6491_v33  ;;  %4929 = vmatprep.subr.bf16.mxu0 %v6491_v33  ;;  %v6500_v41 = vpack.c.bf16 %v313_v40, %v309_v39  ;;  %v6502_v44 = vpack.c.bf16 %v312_v43, %v308_v42  ;;  %v317_v45 = vld [vmem:[#allocation8 + $0x88] sm:$0xff]  ;;  %v316_v48 = vld [vmem:[#allocation8 + $0x80] sm:$0xff]  ;;  %v311_v4 = vld [vmem:[#allocation8 + $0x58] sm:$0xff]  ;;  %v6527_v7 = vpack.c.bf16 %v306_v2, %v302_v63 }
  0x79   :  { %4912 = vmatpush3.bf16.msra.mxu1 %v6467_v14  ;;  %4931 = vmatpush1.bf16.msra.mxu0 %v6495_v38  ;;  %v321_v46 = vld [vmem:[#allocation8 + $0xa8] sm:$0xff]  ;;  %v320_v49 = vld [vmem:[#allocation8 + $0xa0] sm:$0xff]  ;;  %v315_v5 = vld [vmem:[#allocation8 + $0x78] sm:$0xff] }
  0x7a   :  { %4913 = vmatprep.subr.bf16.mxu1 %v7391_v0  ;;  %4933 = vmatprep.subr.bf16.mxu0 %v6500_v41  ;;  %v6505_v47 = vpack.c.bf16 %v321_v46, %v317_v45  ;;  %v6508_v50 = vpack.c.bf16 %v320_v49, %v316_v48  ;;  %v325_v51 = vld [vmem:[#allocation8 + $0xc8] sm:$0xff]  ;;  %v324_v54 = vld [vmem:[#allocation8 + $0xc0] sm:$0xff]  ;;  %v6531_v12 = vpack.c.bf16 %v315_v5, %v311_v4  ;;  %v310_v13 = vld [vmem:[#allocation8 + $0x50] sm:$0xff] }
  0x7b   :  { %v329_v52 = vld [vmem:[#allocation8 + $0xe8] sm:$0xff]  ;;  %v328_v55 = vld [vmem:[#allocation8 + $0xe0] sm:$0xff]  ;;  %v314_v15 = vld [vmem:[#allocation8 + $0x70] sm:$0xff] }
  0x7c   :  { %v6511_v53 = vpack.c.bf16 %v329_v52, %v325_v51  ;;  %v6514_v56 = vpack.c.bf16 %v328_v55, %v324_v54  ;;  %v333_v57 = vld [vmem:[#allocation8 + $0x108] sm:$0xff]  ;;  %v332_v60 = vld [vmem:[#allocation8 + $0x100] sm:$0xff]  ;;  %v319_v16 = vld [vmem:[#allocation8 + $0x98] sm:$0xff]  ;;  %v6535_v19 = vpack.c.bf16 %v314_v15, %v310_v13 }
  0x7d   :  { %4915 = vmatpush3.bf16.msra.mxu1 %v6471_v17  ;;  %4935 = vmatpush1.bf16.msra.mxu0 %v6502_v44  ;;  %v337_v58 = vld [vmem:[#allocation8 + $0x128] sm:$0xff]  ;;  %v336_v61 = vld [vmem:[#allocation8 + $0x120] sm:$0xff]  ;;  %v323_v18 = vld [vmem:[#allocation8 + $0xb8] sm:$0xff] }
  0x7e   :  { %4916 = vmatprep.subr.bf16.mxu1 %v7391_v0  ;;  %4937 = vmatprep.subr.bf16.mxu0 %v6505_v47  ;;  %v6517_v59 = vpack.c.bf16 %v337_v58, %v333_v57  ;;  %v6520_v62 = vpack.c.bf16 %v336_v61, %v332_v60  ;;  %v4019_v3 = vld [vmem:[%s7383_s4] ss:$0 sm:$0xff]  ;;  %v6539_v21 = vpack.c.bf16 %v323_v18, %v319_v16  ;;  %v318_v22 = vld [vmem:[#allocation8 + $0x90] sm:$0xff]  ;;  %v327_v25 = vld [vmem:[#allocation8 + $0xd8] sm:$0xff] }
  0x7f   :  { %v322_v24 = vld [vmem:[#allocation8 + $0xb0] sm:$0xff]  ;;  %v331_v27 = vld [vmem:[#allocation8 + $0xf8] sm:$0xff]  ;;  %v341_v45 = vld [vmem:[#allocation8 + $0x148] sm:$0xff] }
  0x80   :  { %v6542_v28 = vpack.c.bf16 %v322_v24, %v318_v22  ;;  %v6545_v30 = vpack.c.bf16 %v331_v27, %v327_v25  ;;  %v326_v31 = vld [vmem:[#allocation8 + $0xd0] sm:$0xff]  ;;  %v335_v34 = vld [vmem:[#allocation8 + $0x118] sm:$0xff]  ;;  %v345_v46 = vld [vmem:[#allocation8 + $0x168] sm:$0xff] }
  0x81   :  { %4918 = vmatpush3.bf16.msra.mxu1 %v6475_v20  ;;  %4939 = vmatpush1.bf16.msra.mxu0 %v6508_v50  ;;  %v330_v32 = vld [vmem:[#allocation8 + $0xf0] sm:$0xff]  ;;  %v339_v35 = vld [vmem:[#allocation8 + $0x138] sm:$0xff]  ;;  %v6558_v49 = vpack.c.bf16 %v345_v46, %v341_v45  ;;  %v340_v52 = vld [vmem:[#allocation8 + $0x140] sm:$0xff] }
  0x82   :  { %4919 = vmatprep.subr.bf16.mxu1 %v7391_v0  ;;  %4941 = vmatprep.subr.bf16.mxu0 %v6511_v53  ;;  %v6548_v36 = vpack.c.bf16 %v330_v32, %v326_v31  ;;  %v6551_v39 = vpack.c.bf16 %v339_v35, %v335_v34  ;;  %v334_v40 = vld [vmem:[#allocation8 + $0x110] sm:$0xff]  ;;  %v343_v48 = vld [vmem:[#allocation8 + $0x158] sm:$0xff]  ;;  %v344_v54 = vld [vmem:[#allocation8 + $0x160] sm:$0xff] }
  0x83   :  { %v338_v42 = vld [vmem:[#allocation8 + $0x130] sm:$0xff]  ;;  %v347_v51 = vld [vmem:[#allocation8 + $0x178] sm:$0xff]  ;;  %v6562_v57 = vpack.c.bf16 %v344_v54, %v340_v52  ;;  %v349_v63 = vld [vmem:[#allocation8 + $0x188] sm:$0xff] }
  0x84   :  { %v6554_v43 = vpack.c.bf16 %v338_v42, %v334_v40  ;;  %v6560_v55 = vpack.c.bf16 %v347_v51, %v343_v48  ;;  %v342_v58 = vld [vmem:[#allocation8 + $0x150] sm:$0xff]  ;;  %v353_v2 = vld [vmem:[#allocation8 + $0x1a8] sm:$0xff]  ;;  %v355_v5 = vld [vmem:[#allocation8 + $0x1b8] sm:$0xff] }
  0x85   :  { %4921 = vmatpush3.bf16.msra.mxu1 %v6479_v23  ;;  %4943 = vmatpush1.bf16.msra.mxu0 %v6514_v56  ;;  %v346_v60 = vld [vmem:[#allocation8 + $0x170] sm:$0xff]  ;;  %v6570_v4 = vpack.c.bf16 %v353_v2, %v349_v63  ;;  %v357_v22 = vld [vmem:[#allocation8 + $0x1c8] sm:$0xff]  ;;  %v359_v27 = vld [vmem:[#allocation8 + $0x1d8] sm:$0xff] }
  0x86   :  { %4922 = vmatprep.subr.bf16.mxu1 %v7391_v0  ;;  %4945 = vmatprep.subr.bf16.mxu0 %v6517_v59  ;;  %v6565_v61 = vpack.c.bf16 %v346_v60, %v342_v58  ;;  %v350_v16 = vld [vmem:[#allocation8 + $0x190] sm:$0xff]  ;;  %v361_v25 = vld [vmem:[#allocation8 + $0x1e8] sm:$0xff]  ;;  %v363_v31 = vld [vmem:[#allocation8 + $0x1f8] sm:$0xff] }
  0x87   :  { %v354_v18 = vld [vmem:[#allocation8 + $0x1b0] sm:$0xff]  ;;  %v6581_v32 = vpack.c.bf16 %v361_v25, %v357_v22  ;;  %v6583_v34 = vpack.c.bf16 %v363_v31, %v359_v27  ;;  %v356_v35 = vld [vmem:[#allocation8 + $0x1c0] sm:$0xff]  ;;  %v535_v51 = vld [vmem:[#allocation10 + $0x8] sm:$0xff] }
  0x88   :  { %v6577_v24 = vpack.c.bf16 %v354_v18, %v350_v16  ;;  %v360_v40 = vld [vmem:[#allocation8 + $0x1e0] sm:$0xff]  ;;  %v358_v42 = vld [vmem:[#allocation8 + $0x1d0] sm:$0xff]  ;;  %v539_v52 = vld [vmem:[#allocation10 + $0x28] sm:$0xff] }
  0x89   :  { %4924 = vmatpush3.bf16.msra.mxu1 %v6483_v26  ;;  %4947 = vmatpush1.bf16.msra.mxu0 %v6520_v62  ;;  %v6586_v45 = vpack.c.bf16 %v360_v40, %v356_v35  ;;  %v362_v46 = vld [vmem:[#allocation8 + $0x1f0] sm:$0xff]  ;;  %v6594_v54 = vpack.c.bf16 %v539_v52, %v535_v51  ;;  %v739_v58 = vld [vmem:[#allocation11 + $0x180] sm:$0xff]  ;;  %v740_v60 = vld [vmem:[#allocation11 + $0x188] sm:$0xff] }
  0x8a   :  { %4925 = vmatprep.subr.bf16.mxu1 %v7391_v0  ;;  %4949 = vmatprep.subr.bf16.mxu0 %v6558_v49  ;;  %v6590_v48 = vpack.c.bf16 %v362_v46, %v358_v42  ;;  %v6597_v63 = vpack.c.bf16 %v740_v60, %v739_v58  ;;  %v6603_v2 = vld [vmem:[%s7385_s6] ss:$0 sm:$0xff]  ;;  %v537_v18 = vld [vmem:[#allocation10 + $0x18] sm:$0xff]  ;;  %v724_v27 = vld [vmem:[#allocation11 + $0x108] sm:$0xff] }
  0x8b   :  { %7488 = vst [vmem:[#allocation21_spill] sm:$0xff] %v6594_v54  ;;  %7490 = vst [vmem:[#allocation23_spill] sm:$0xff] %v6603_v2  ;;  %v538_v16 = vld [vmem:[#allocation10 + $0x20] sm:$0xff]  ;;  %v541_v22 = vld [vmem:[#allocation10 + $0x38] sm:$0xff] }
  0x8c   :  { %7489 = vst [vmem:[#allocation22_spill] sm:$0xff] %v6597_v63  ;;  %v723_v25 = vld [vmem:[#allocation11 + $0x100] sm:$0xff]  ;;  %v741_v31 = vld [vmem:[#allocation11 + $0x190] sm:$0xff]  ;;  %v742_v35 = vld [vmem:[#allocation11 + $0x198] sm:$0xff]  ;;  %v6608_v42 = vpack.c.bf16 %v541_v22, %v537_v18 }
  0x8d   :  { %4927 = vmatpush3.bf16.msra.mxu1 %v6488_v29  ;;  %4951 = vmatpush1.bf16.msra.mxu0 %v6562_v57  ;;  %v536_v46 = vld [vmem:[#allocation10 + $0x10] sm:$0xff]  ;;  %v707_v52 = vld [vmem:[#allocation11 + $0x80] sm:$0xff]  ;;  %v6610_v58 = vpack.c.bf16 %v724_v27, %v723_v25  ;;  %v726_v0 = vld [vmem:[#allocation11 + $0x118] sm:$0xff] }
  0x8e   :  { %4961 = vmatprep.subr.bf16.mxu1 %v6493_v37  ;;  %4953 = vmatprep.subr.bf16.mxu0 %v6570_v4  ;;  %7492 = vst [vmem:[#allocation25_spill] sm:$0xff] %v6608_v42  ;;  %v540_v51 = vld [vmem:[#allocation10 + $0x30] sm:$0xff]  ;;  %v691_v25 = vld [vmem:[#allocation11] sm:$0xff]  ;;  %v692_v27 = vld [vmem:[#allocation11 + $0x8] sm:$0xff] }
  0x8f   :  { %7493 = vst [vmem:[#allocation26_spill] sm:$0xff] %v6610_v58  ;;  %v6616_v18 = vpack.c.bf16 %v540_v51, %v536_v46  ;;  %v745_v46 = vld [vmem:[#allocation11 + $0x1b0] sm:$0xff]  ;;  %v746_v51 = vld [vmem:[#allocation11 + $0x1b8] sm:$0xff] }
  0x91   :  { %7496 = vst [vmem:[#allocation28_spill] sm:$0xff] %v6616_v18 }
 0x147   :  { %v201_v6 = vpop.f32.mrb[0].mxu0 }
 0x148   :  { %v6529_v9 = vadd.f32 %v4019_v3, %v201_v6  ;;  %v4655_v10 = vpop.f32.mrb[1].mxu0  ;;  %v351_v3 = vld [vmem:[#allocation8 + $0x198] sm:$0xff]  ;;  %v348_v6 = vld [vmem:[#allocation8 + $0x180] sm:$0xff] }
 0x149   :  { %v352_v10 = vld [vmem:[#allocation8 + $0x1a0] sm:$0xff]  ;;  %v6572_v13 = vpack.c.bf16 %v355_v5, %v351_v3 }
 0x14a   :  { %7487 = vst [vmem:[#allocation20_spill] sm:$0xff] %v6529_v9  ;;  %4689 = vmatmul.mubr.f32.vlgmr.msra.gmra.mrb[0].mxu1 %v6529_v9  ;;  %v6574_v15 = vpack.c.bf16 %v352_v10, %v348_v6  ;;  %v534_v10 = vld [vmem:[#allocation10] sm:$0xff] }
 0x14b   :  { %4963 = vmatpush1.bf16.msra.mxu1 %v6527_v7  ;;  %521 = vmatprep.mubr.f32.mxu1 %v7393_v1  ;;  %v6606_v40 = vpack.c.bf16 %v538_v16, %v534_v10  ;;  %v743_v1 = vld [vmem:[#allocation11 + $0x1a0] sm:$0xff]  ;;  %v7495_v10 = vmov 0.0  }
 0x14c   :  { %4965 = vmatprep.subr.bf16.mxu1 %v6531_v12  ;;  %4955 = vmatpush1.bf16.msra.mxu0 %v6574_v15  ;;  %v533_v16 = vld [vmem:[#allocation2 + $0x2] sm:$0x3] }
 0x14d   :  { %4957 = vmatprep.subr.bf16.mxu0 %v6581_v32  ;;  %7491 = vst [vmem:[#allocation24_spill] sm:$0xff] %v6606_v40 }
 0x14f   :  { %4967 = vmatpush1.bf16.msra.mxu1 %v6535_v19 }
 0x150   :  { %4969 = vmatprep.subr.bf16.mxu1 %v6539_v21  ;;  %4959 = vmatpush1.bf16.msra.mxu0 %v6586_v45 }
 0x151   :  { %4993 = vmatprep.subr.bf16.mxu0 %v6594_v54  ;;  %v728_v54 = vld [vmem:[#allocation11 + $0x128] sm:$0xff] }
 0x153   :  { %4971 = vmatpush1.bf16.msra.mxu1 %v6542_v28 }
 0x154   :  { %4973 = vmatprep.subr.bf16.mxu1 %v6545_v30 }
 0x157   :  { %4975 = vmatpush1.bf16.msra.mxu1 %v6548_v36 }
 0x158   :  { %4977 = vmatprep.subr.bf16.mxu1 %v6551_v39 }
 0x15b   :  { %4979 = vmatpush1.bf16.msra.mxu1 %v6554_v43 }
 0x15c   :  { %4981 = vmatprep.subr.bf16.mxu1 %v6560_v55 }
 0x15f   :  { %4983 = vmatpush1.bf16.msra.mxu1 %v6565_v61 }
 0x160   :  { %4985 = vmatprep.subr.bf16.mxu1 %v6572_v13 }
 0x163   :  { %4987 = vmatpush1.bf16.msra.mxu1 %v6577_v24 }
 0x164   :  { %4989 = vmatprep.subr.bf16.mxu1 %v6583_v34 }
 0x167   :  { %4991 = vmatpush1.bf16.msra.mxu1 %v6590_v48 }
 0x168   :  { %5033 = vmatprep.subr.bf16.mxu1 %v6597_v63  ;;  %v744_v63 = vld [vmem:[#allocation11 + $0x1a8] sm:$0xff] }
 0x21d   :  { %v295_v3 = vpop.f32.mrb[0].mxu1 }
 0x21e   :  { %v296_v5 = vadd.f32 %v6603_v2, %v295_v3  ;;  %v4690_v6 = vpop.f32.mrb[1].mxu1  ;;  %v708_v3 = vld [vmem:[#allocation11 + $0x88] sm:$0xff]  ;;  %v727_v2 = vld [vmem:[#allocation11 + $0x120] sm:$0xff] }
 0x21f   :  { %v725_v6 = vld [vmem:[#allocation11 + $0x110] sm:$0xff]  ;;  %v6619_v22 = vpack.c.bf16 %v708_v3, %v707_v52  ;;  %v6630_v52 = vpack.c.bf16 %v692_v27, %v691_v25 }
 0x220   :  { %6042 = vtanh.f32 %v296_v5  ;;  %v6612_v5 = vpack.c.bf16 %v742_v35, %v741_v31  ;;  %v709_v31 = vld [vmem:[#allocation11 + $0x90] sm:$0xff]  ;;  %v6622_v35 = vpack.c.bf16 %v726_v0, %v725_v6  ;;  %v694_v6 = vld [vmem:[#allocation11 + $0x18] sm:$0xff] }
 0x221   :  { %7497 = vst [vmem:[#allocation29_spill] sm:$0xff] %v6619_v22  ;;  %7500 = vst [vmem:[#allocation32_spill] sm:$0xff] %v6630_v52  ;;  %v693_v3 = vld [vmem:[#allocation11 + $0x10] sm:$0xff] }
 0x222   :  { %7494 = vst [vmem:[#allocation27_spill] sm:$0xff] %v6612_v5  ;;  %7498 = vst [vmem:[#allocation30_spill] sm:$0xff] %v6622_v35  ;;  %v6643_v25 = vpack.c.bf16 %v694_v6, %v693_v3  ;;  %v698_v3 = vld [vmem:[#allocation11 + $0x38] sm:$0xff]  ;;  %v716_v6 = vld [vmem:[#allocation11 + $0xc8] sm:$0xff] }
 0x224   :  { %7504 = vst [vmem:[#allocation36_spill] sm:$0xff] %v6643_v25 }
 0x22a   :  { %v6043_v60 = vpop.eup %6042 }
 0x22b   :  { %451 = vmatmul.mubr.f32.vlgmr.msra.gmra.mrb[2].mxu0 %v6043_v60  ;;  %522 = vmatmul.mubr.f32.vlgmr.msra.gmra.mrb[2].mxu1 %v6043_v60  ;;  %v710_v60 = vld [vmem:[#allocation11 + $0x98] sm:$0xff] }
 0x22c   :  { %4995 = vmatpush1.bf16.msra.mxu0 %v6606_v40  ;;  %609 = vmatprep.mubr.f32.mxu0 %v7495_v10  ;;  %v6625_v40 = vpack.c.bf16 %v744_v63, %v743_v1  ;;  %v6633_v0 = vpack.c.bf16 %v710_v60, %v709_v31  ;;  %v711_v1 = vld [vmem:[#allocation11 + $0xa0] sm:$0xff]  ;;  %v6636_v63 = vpack.c.bf16 %v728_v54, %v727_v2  ;;  %v696_v54 = vld [vmem:[#allocation11 + $0x28] sm:$0xff]  ;;  %v713_v60 = vld [vmem:[#allocation11 + $0xb0] sm:$0xff] }
 0x22d   :  { %4997 = vmatprep.subr.bf16.mxu0 %v6608_v42  ;;  %5035 = vmatpush3.bf16.msra.mxu1 %v6610_v58  ;;  %v6639_v58 = vpack.c.bf16 %v746_v51, %v745_v46  ;;  %v730_v42 = vld [vmem:[#allocation11 + $0x138] sm:$0xff]  ;;  %v695_v31 = vld [vmem:[#allocation11 + $0x20] sm:$0xff] }
 0x22e   :  { %5037 = vmatprep.subr.bf16.mxu1 %v6612_v5  ;;  %7499 = vst [vmem:[#allocation31_spill] sm:$0xff] %v6625_v40  ;;  %7501 = vst [vmem:[#allocation33_spill] sm:$0xff] %v6633_v0  ;;  %v712_v5 = vld [vmem:[#allocation11 + $0xa8] sm:$0xff]  ;;  %v714_v46 = vld [vmem:[#allocation11 + $0xb8] sm:$0xff] }
 0x22f   :  { %4022 = vmatmul.mubr.msk.f32.vlgmr.msra.gmra.mrb[4].mxu0 %vm131_vm1, %v533_v16  ;;  %7502 = vst [vmem:[#allocation34_spill] sm:$0xff] %v6636_v63  ;;  %7503 = vst [vmem:[#allocation35_spill] sm:$0xff] %v6639_v58  ;;  %v6646_v27 = vpack.c.bf16 %v712_v5, %v711_v1  ;;  %v6656_v51 = vpack.c.bf16 %v714_v46, %v713_v60  ;;  %v697_v5 = vld [vmem:[#allocation11 + $0x30] sm:$0xff]  ;;  %v747_v1 = vld [vmem:[#allocation11 + $0x1c0] sm:$0xff] }
 0x230   :  { %4999 = vmatpush1.bf16.msra.mxu0 %v6616_v18  ;;  %680 = vmatprep.mubr.f32.mxu0 %v7495_v10  ;;  %v729_v18 = vld [vmem:[#allocation11 + $0x130] sm:$0xff]  ;;  %v699_v60 = vld [vmem:[#allocation11 + $0x40] sm:$0xff]  ;;  %v700_v46 = vld [vmem:[#allocation11 + $0x48] sm:$0xff] }
 0x231   :  { %5001 = vmatprep.subr.bf16.mxu0 %v6619_v22  ;;  %5039 = vmatpush3.bf16.msra.mxu1 %v6622_v35  ;;  %7505 = vst [vmem:[#allocation37_spill] sm:$0xff] %v6646_v27  ;;  %v6649_v2 = vpack.c.bf16 %v730_v42, %v729_v18  ;;  %7508 = vst [vmem:[#allocation40_spill] sm:$0xff] %v6656_v51  ;;  %v6660_v42 = vpack.c.bf16 %v698_v3, %v697_v5  ;;  %v715_v18 = vld [vmem:[#allocation11 + $0xc0] sm:$0xff]  ;;  %v717_v3 = vld [vmem:[#allocation11 + $0xd0] sm:$0xff] }
 0x232   :  { %5041 = vmatprep.subr.bf16.mxu1 %v6625_v40  ;;  %v732_v40 = vld [vmem:[#allocation11 + $0x148] sm:$0xff] }
 0x233   :  { %4023 = vmatmul.mubr.msk.f32.vlgmr.msra.gmra.mrb[6].mxu0 %vm131_vm1, %v533_v16  ;;  %7506 = vst [vmem:[#allocation38_spill] sm:$0xff] %v6649_v2  ;;  %v6653_v16 = vpack.c.bf16 %v696_v54, %v695_v31  ;;  %7509 = vst [vmem:[#allocation41_spill] sm:$0xff] %v6660_v42  ;;  %v6664_v31 = vpack.c.bf16 %v716_v6, %v715_v18  ;;  %v748_v54 = vld [vmem:[#allocation11 + $0x1c8] sm:$0xff]  ;;  %v718_v18 = vld [vmem:[#allocation11 + $0xd8] sm:$0xff] }
 0x234   :  { %5003 = vmatpush3.bf16.msra.mxu0 %v6630_v52  ;;  %v749_v6 = vld [vmem:[#allocation11 + $0x1d0] sm:$0xff] }
 0x235   :  { %5005 = vmatprep.subr.bf16.mxu0 %v6633_v0  ;;  %5043 = vmatpush3.bf16.msra.mxu1 %v6636_v63  ;;  %7507 = vst [vmem:[#allocation39_spill] sm:$0xff] %v6653_v16  ;;  %7510 = vst [vmem:[#allocation42_spill] sm:$0xff] %v6664_v31  ;;  %v6668_v63 = vpack.c.bf16 %v700_v46, %v699_v60  ;;  %v702_v60 = vld [vmem:[#allocation11 + $0x58] sm:$0xff] }
 0x236   :  { %5045 = vmatprep.subr.bf16.mxu1 %v6639_v58  ;;  %v6666_v58 = vpack.c.bf16 %v748_v54, %v747_v1  ;;  %v750_v1 = vld [vmem:[#allocation11 + $0x1d8] sm:$0xff]  ;;  %v701_v54 = vld [vmem:[#allocation11 + $0x50] sm:$0xff] }
 0x237   :  { %7512 = vst [vmem:[#allocation44_spill] sm:$0xff] %v6668_v63  ;;  %v6678_v46 = vpack.c.bf16 %v750_v1, %v749_v6  ;;  %v6680_v35 = vpack.c.bf16 %v702_v60, %v701_v54  ;;  %v752_v6 = vld [vmem:[#allocation11 + $0x1e8] sm:$0xff]  ;;  %v703_v1 = vld [vmem:[#allocation11 + $0x60] sm:$0xff] }
 0x238   :  { %5007 = vmatpush3.bf16.msra.mxu0 %v6643_v25  ;;  %7511 = vst [vmem:[#allocation43_spill] sm:$0xff] %v6666_v58  ;;  %v704_v54 = vld [vmem:[#allocation11 + $0x68] sm:$0xff] }
 0x239   :  { %5009 = vmatprep.subr.bf16.mxu0 %v6646_v27  ;;  %5047 = vmatpush3.bf16.msra.mxu1 %v6649_v2  ;;  %v731_v2 = vld [vmem:[#allocation11 + $0x140] sm:$0xff]  ;;  %7515 = vst [vmem:[#allocation47_spill] sm:$0xff] %v6678_v46  ;;  %7516 = vst [vmem:[#allocation48_spill] sm:$0xff] %v6680_v35 }
 0x23a   :  { %v6671_v5 = vpack.c.bf16 %v732_v40, %v731_v2  ;;  %5049 = vmatprep.subr.bf16.mxu1 %v6666_v58  ;;  %v733_v40 = vld [vmem:[#allocation11 + $0x150] sm:$0xff]  ;;  %v734_v2 = vld [vmem:[#allocation11 + $0x158] sm:$0xff] }
 0x23b   :  { %v6683_v58 = vpack.c.bf16 %v734_v2, %v733_v40  ;;  %v735_v40 = vld [vmem:[#allocation11 + $0x160] sm:$0xff]  ;;  %v736_v2 = vld [vmem:[#allocation11 + $0x168] sm:$0xff] }
 0x23c   :  { %5011 = vmatpush3.bf16.msra.mxu0 %v6653_v16  ;;  %7513 = vst [vmem:[#allocation45_spill] sm:$0xff] %v6671_v5 }
 0x23d   :  { %5013 = vmatprep.subr.bf16.mxu0 %v6656_v51  ;;  %5051 = vmatpush3.bf16.msra.mxu1 %v6671_v5  ;;  %7517 = vst [vmem:[#allocation49_spill] sm:$0xff] %v6683_v58  ;;  %v719_v5 = vld [vmem:[#allocation11 + $0xe0] sm:$0xff] }
 0x23e   :  { %5053 = vmatprep.subr.bf16.mxu1 %v6678_v46  ;;  %v6695_v46 = vpack.c.bf16 %v736_v2, %v735_v40  ;;  %v737_v40 = vld [vmem:[#allocation11 + $0x170] sm:$0xff]  ;;  %v738_v2 = vld [vmem:[#allocation11 + $0x178] sm:$0xff] }
 0x240   :  { %5015 = vmatpush3.bf16.msra.mxu0 %v6660_v42  ;;  %v6676_v42 = vpack.c.bf16 %v718_v18, %v717_v3  ;;  %v720_v3 = vld [vmem:[#allocation11 + $0xe8] sm:$0xff]  ;;  %v751_v18 = vld [vmem:[#allocation11 + $0x1e0] sm:$0xff]  ;;  %7521 = vst [vmem:[#allocation53_spill] sm:$0xff] %v6695_v46 }
 0x241   :  { %5017 = vmatprep.subr.bf16.mxu0 %v6664_v31  ;;  %5055 = vmatpush3.bf16.msra.mxu1 %v6683_v58  ;;  %v6690_v60 = vpack.c.bf16 %v752_v6, %v751_v18  ;;  %v6692_v31 = vpack.c.bf16 %v704_v54, %v703_v1  ;;  %v721_v58 = vld [vmem:[#allocation11 + $0xf0] sm:$0xff]  ;;  %v754_v18 = vld [vmem:[#allocation11 + $0x1f8] sm:$0xff] }
 0x242   :  { %7514 = vst [vmem:[#allocation46_spill] sm:$0xff] %v6676_v42  ;;  %v705_v6 = vld [vmem:[#allocation11 + $0x70] sm:$0xff]  ;;  %v706_v1 = vld [vmem:[#allocation11 + $0x78] sm:$0xff] }
 0x243   :  { %7519 = vst [vmem:[#allocation51_spill] sm:$0xff] %v6690_v60  ;;  %7520 = vst [vmem:[#allocation52_spill] sm:$0xff] %v6692_v31  ;;  %5057 = vmatprep.subr.bf16.mxu1 %v6690_v60  ;;  %v6707_v60 = vpack.c.bf16 %v738_v2, %v737_v40 }
 0x244   :  { %5019 = vmatpush3.bf16.msra.mxu0 %v6668_v63  ;;  %v6688_v63 = vpack.c.bf16 %v720_v3, %v719_v5  ;;  %v722_v5 = vld [vmem:[#allocation11 + $0xf8] sm:$0xff]  ;;  %v753_v3 = vld [vmem:[#allocation11 + $0x1f0] sm:$0xff] }
 0x245   :  { %5021 = vmatprep.subr.bf16.mxu0 %v6676_v42  ;;  %5059 = vmatpush3.bf16.msra.mxu1 %v6695_v46  ;;  %v6702_v54 = vpack.c.bf16 %v754_v18, %v753_v3  ;;  %v6704_v42 = vpack.c.bf16 %v706_v1, %v705_v6  ;;  %7525 = vst [vmem:[#allocation57_spill] sm:$0xff] %v6707_v60  ;;  %v7455_v3 = vmov 0   ;;  %v366_v1 = vlaneseq }
 0x246   :  { %7518 = vst [vmem:[#allocation50_spill] sm:$0xff] %v6688_v63  ;;  %6040 = vset.pattern.permute.xlu0 %v7455_v3  ;;  %6041 = vset.pattern.permute.xlu1 %v7455_v3 }
 0x247   :  { %7523 = vst [vmem:[#allocation55_spill] sm:$0xff] %v6702_v54  ;;  %7524 = vst [vmem:[#allocation56_spill] sm:$0xff] %v6704_v42  ;;  %5061 = vmatprep.subr.bf16.mxu1 %v6702_v54  ;;  %v367_v40 = vshrl.u32 %v366_v1, 7 }
 0x248   :  { %5023 = vmatpush3.bf16.msra.mxu0 %v6680_v35  ;;  %v6700_v35 = vpack.c.bf16 %v722_v5, %v721_v58  ;;  %v7526_v58 = vmov 0.0|0.0   ;;  %v205_v5 = vld [vmem:[%s7381_s2] sm:$0x3] }
 0x249   :  { %5025 = vmatprep.subr.bf16.mxu0 %v6688_v63  ;;  %5063 = vmatpush3.bf16.msra.mxu1 %v6707_v60  ;;  %v6718_v18 = vadd.s32 4294967295, %v205_v5  ;;  %v368_v2 = vsub.s32 0, %v367_v40  ;;  %v364_v60 = vld [vmem:[%s7387_s8] sm:$0xf]  ;;  %v372_v54 = vsub.s32 1, %v367_v40  ;;  %v380_v46 = vsub.s32 3, %v367_v40 }
 0x24a   :  { %7522 = vst [vmem:[#allocation54_spill] sm:$0xff] %v6700_v35  ;;  %5089 = vmatprep.subr.bf16.mxu1 %v6491_v33  ;;  %v376_v33 = vsub.s32 2, %v367_v40 }
 0x24b   :  { %7527 = vst [vmem:[#allocation58_spill] sm:$0xff] %v6718_v18  ;;  %vm897_vm2 = vcmp.eq.s32.totalorder %v6718_v18, 1  ;;  %v6732_v18 = vrot.slane %v364_v60, %v380_v46 }
 0x24c   :  { %5027 = vmatpush3.bf16.msra.mxu0 %v6692_v31  ;;  %v898_v6 = vsel %vm897_vm2, 1, %v7455_v3  ;;  %v6728_v5 = vrot.slane %v364_v60, %v376_v33 }
 0x24d   :  { %5029 = vmatprep.subr.bf16.mxu0 %v6700_v35  ;;  %900 = vperm.xlu0 %6040, %v898_v6   ;;  %v6730_v35 = vrot.slane %v364_v60, %v372_v54 }
 0x24e   :  { %7529 = vst [vmem:[#allocation60_spill] sm:$0xff] %v6728_v5 }
 0x250   :  { %5031 = vmatpush3.bf16.msra.mxu0 %v6704_v42  ;;  %v6726_v42 = vrot.slane %v364_v60, %v368_v2 }
 0x251   :  { %5064 = vmatprep.subr.bf16.mxu0 %v7526_v58 }
 0x252   :  { %7528 = vst [vmem:[#allocation59_spill] sm:$0xff] %v6726_v42 }
 0x2fe   :  { %v452_v3 = vpop.f32.mrb[2].mxu0  ;;  %v523_v6 = vpop.f32.mrb[2].mxu1 }
 0x2ff   :  { %v453_v1 = vadd.f32 %v452_v3, %v6726_v42  ;;  %v524_v31 = vadd.f32 %v523_v6, %v6728_v5  ;;  %v454_v63 = vpop.f32.mrb[3].mxu0  ;;  %v525_v51 = vpop.f32.mrb[3].mxu1 }
 0x300   :  { %v455_v16 = vadd.f32 %v454_v63, %v6730_v35  ;;  %v526_v40 = vadd.f32 %v525_v51, %v6732_v18 }
 0x301   :  { %6044 = vtanh.f32 %v453_v1 }
 0x302   :  { %6046 = vtanh.f32 %v524_v31  ;;  %v611_v33 = vpop.f32.mrb[4].mxu0 }
 0x303   :  { %6048 = vtanh.f32 %v455_v16  ;;  %v613_v54 = vpop.f32.mrb[5].mxu0 }
 0x304   :  { %6050 = vtanh.f32 %v526_v40  ;;  %v7532_v40 = vld [vmem:[#allocation23_spill] sm:$0xff] }
 0x306   :  { %v682_v46 = vpop.f32.mrb[6].mxu0 }
 0x307   :  { %v684_v60 = vpop.f32.mrb[7].mxu0 }
 0x30b   :  { %v6045_v2 = vpop.eup %6044 }
 0x30c   :  { %v6047_v27 = vpop.eup %6046  ;;  %v687_v25 = vmul.f32 %v6045_v2, %v611_v33  ;;  %v1122_v2 = vld [vmem:[#allocation2 + $0x4] sm:$0x3] }
 0x30d   :  { %v6049_v3 = vpop.eup %6048  ;;  %v689_v42 = vmul.f32 %v6047_v27, %v682_v46 }
 0x30e   :  { %v6051_v6 = vpop.eup %6050  ;;  %v688_v5 = vmul.f32 %v6049_v3, %v613_v54  ;;  %v7534_v3 = vld [vmem:[#allocation25_spill] sm:$0xff] }
 0x30f   :  { %v690_v0 = vmul.f32 %v6051_v6, %v684_v60  ;;  %v7533_v60 = vld [vmem:[#allocation24_spill] sm:$0xff]  ;;  %v7535_v6 = vld [vmem:[#allocation33_spill] sm:$0xff] }
 0x310   :  { %819 = vmatprep.mubr.f32.mxu0 %v688_v5  ;;  %v7531_v5 = vld [vmem:[#allocation21_spill] sm:$0xff] }
 0x311   :  { %889 = vmatprep.mubr.f32.mxu1 %v690_v0  ;;  %820 = vmatmul.mubr.f32.vlgmr.msra.gmra.mrb[8].mxu0 %v687_v25 }
 0x312   :  { %890 = vmatmul.mubr.f32.vlgmr.msra.gmra.mrb[4].mxu1 %v689_v42  ;;  %5066 = vmatpush3.bf16.msra.mxu0 %v6455_v8 }
 0x313   :  { %5067 = vmatprep.subr.bf16.mxu0 %v7526_v58  ;;  %4723 = vmatprep.mubr.msk.f32.mxu0 %vm6289_vm0, %v7495_v10 }
 0x314   :  { %5091 = vmatpush1.bf16.msra.mxu1 %v6495_v38  ;;  %1039 = vmatprep.mubr.f32.mxu1 %v7495_v10 }
 0x315   :  { %5093 = vmatprep.subr.bf16.mxu1 %v6500_v41 }
 0x316   :  { %5069 = vmatpush3.bf16.msra.mxu0 %v6461_v11 }
 0x317   :  { %5070 = vmatprep.subr.bf16.mxu0 %v7526_v58 }
 0x318   :  { %5095 = vmatpush1.bf16.msra.mxu1 %v6502_v44 }
 0x319   :  { %5097 = vmatprep.subr.bf16.mxu1 %v6505_v47 }
 0x31a   :  { %5072 = vmatpush3.bf16.msra.mxu0 %v6467_v14 }
 0x31b   :  { %5073 = vmatprep.subr.bf16.mxu0 %v7526_v58 }
 0x31c   :  { %5099 = vmatpush1.bf16.msra.mxu1 %v6508_v50 }
 0x31d   :  { %5101 = vmatprep.subr.bf16.mxu1 %v6511_v53 }
 0x31e   :  { %5075 = vmatpush3.bf16.msra.mxu0 %v6471_v17 }
 0x31f   :  { %5076 = vmatprep.subr.bf16.mxu0 %v7526_v58 }
 0x320   :  { %5103 = vmatpush1.bf16.msra.mxu1 %v6514_v56 }
 0x321   :  { %5105 = vmatprep.subr.bf16.mxu1 %v6517_v59 }
 0x322   :  { %5078 = vmatpush3.bf16.msra.mxu0 %v6475_v20 }
 0x323   :  { %5079 = vmatprep.subr.bf16.mxu0 %v7526_v58 }
 0x324   :  { %5107 = vmatpush1.bf16.msra.mxu1 %v6520_v62 }
 0x325   :  { %5109 = vmatprep.subr.bf16.mxu1 %v6558_v49 }
 0x326   :  { %5081 = vmatpush3.bf16.msra.mxu0 %v6479_v23 }
 0x327   :  { %5082 = vmatprep.subr.bf16.mxu0 %v7526_v58 }
 0x328   :  { %5111 = vmatpush1.bf16.msra.mxu1 %v6562_v57 }
 0x329   :  { %5113 = vmatprep.subr.bf16.mxu1 %v6570_v4 }
 0x32a   :  { %5084 = vmatpush3.bf16.msra.mxu0 %v6483_v26 }
 0x32b   :  { %5085 = vmatprep.subr.bf16.mxu0 %v7526_v58 }
 0x32c   :  { %5115 = vmatpush1.bf16.msra.mxu1 %v6574_v15 }
 0x32d   :  { %5117 = vmatprep.subr.bf16.mxu1 %v6581_v32 }
 0x32e   :  { %5087 = vmatpush3.bf16.msra.mxu0 %v6488_v29 }
 0x32f   :  { %5121 = vmatprep.subr.bf16.mxu0 %v6493_v37 }
 0x330   :  { %5119 = vmatpush1.bf16.msra.mxu1 %v6586_v45 }
 0x331   :  { %5161 = vmatprep.subr.bf16.mxu1 %v6619_v22 }
 0x3e4   :  { %v4089_v0 = vpop.f32.mrb[8].mxu0 }
 0x3e5   :  { %v4124_v63 = vpop.f32.mrb[4].mxu1  ;;  %v4090_v25 = vpop.f32.mrb[9].mxu0 }
 0x3e6   :  { %v4091_v27 = vadd.f32 %v4090_v25, %v4089_v0  ;;  %v4125_v16 = vpop.f32.mrb[5].mxu1  ;;  %v7536_v0 = vld [vmem:[#allocation28_spill] sm:$0xff] }
 0x3e7   :  { %v4126_v51 = vadd.f32 %v4125_v16, %v4124_v63  ;;  %v7537_v63 = vld [vmem:[#allocation22_spill] sm:$0xff]  ;;  %v7538_v25 = vld [vmem:[#allocation36_spill] sm:$0xff] }
 0x3e8   :  { %v7540_v16 = vld [vmem:[#allocation26_spill] sm:$0xff] }
 0x3e9   :  { %v892_v42 = vadd.f32 %v4126_v51, %v4091_v27  ;;  %v7539_v27 = vld [vmem:[#allocation37_spill] sm:$0xff]  ;;  %v7541_v51 = vld [vmem:[#allocation27_spill] sm:$0xff] }
 0x3eb   :  { %v6774_v31 = vadd.f32 %v892_v42, %v6529_v9  ;;  %v7542_v42 = vld [vmem:[#allocation39_spill] sm:$0xff]  ;;  %v7547_v9 = vld [vmem:[#allocation42_spill] sm:$0xff] }
 0x3ed   :  { %7530 = vst [vmem:[#allocation61_spill] sm:$0xff] %v6774_v31  ;;  %4724 = vmatmul.mubr.f32.vlgmr.msra.gmra.mrb[10].mxu0 %v6774_v31 }
 0x3ee   :  { %5123 = vmatpush1.bf16.msra.mxu0 %v6527_v7  ;;  %1110 = vmatprep.mubr.f32.mxu0 %v7495_v10 }
 0x3ef   :  { %5125 = vmatprep.subr.bf16.mxu0 %v6531_v12 }
 0x3f2   :  { %5127 = vmatpush1.bf16.msra.mxu0 %v6535_v19 }
 0x3f3   :  { %5129 = vmatprep.subr.bf16.mxu0 %v6539_v21 }
 0x3f6   :  { %5131 = vmatpush1.bf16.msra.mxu0 %v6542_v28 }
 0x3f7   :  { %5133 = vmatprep.subr.bf16.mxu0 %v6545_v30 }
 0x3fa   :  { %5135 = vmatpush1.bf16.msra.mxu0 %v6548_v36 }
 0x3fb   :  { %5137 = vmatprep.subr.bf16.mxu0 %v6551_v39 }
 0x3fe   :  { %5139 = vmatpush1.bf16.msra.mxu0 %v6554_v43 }
 0x3ff   :  { %5141 = vmatprep.subr.bf16.mxu0 %v6560_v55 }
 0x402   :  { %5143 = vmatpush1.bf16.msra.mxu0 %v6565_v61 }
 0x403   :  { %5145 = vmatprep.subr.bf16.mxu0 %v6572_v13 }
 0x406   :  { %5147 = vmatpush1.bf16.msra.mxu0 %v6577_v24 }
 0x407   :  { %5149 = vmatprep.subr.bf16.mxu0 %v6583_v34 }
 0x40a   :  { %5151 = vmatpush1.bf16.msra.mxu0 %v6590_v48 }
 0x40b   :  { %5153 = vmatprep.subr.bf16.mxu0 %v7531_v5 }
 0x4c0   :  { %v970_v1 = vpop.f32.mrb[10].mxu0 }
 0x4c1   :  { %v971_v33 = vadd.f32 %v7532_v40, %v970_v1  ;;  %v4725_v54 = vpop.f32.mrb[11].mxu0  ;;  %v7543_v1 = vld [vmem:[#allocation40_spill] sm:$0xff] }
 0x4c2   :  { %v7545_v54 = vld [vmem:[#allocation31_spill] sm:$0xff] }
 0x4c3   :  { %6052 = vtanh.f32 %v971_v33  ;;  %v7544_v33 = vld [vmem:[#allocation30_spill] sm:$0xff] }
 0x4cd   :  { %v6053_v46 = vpop.eup %6052 }
 0x4ce   :  { %1040 = vmatmul.mubr.f32.vlgmr.msra.gmra.mrb[6].mxu1 %v6053_v46  ;;  %1111 = vmatmul.mubr.f32.vlgmr.msra.gmra.mrb[12].mxu0 %v6053_v46  ;;  %v7546_v46 = vld [vmem:[#allocation41_spill] sm:$0xff] }
 0x4cf   :  { %5155 = vmatpush1.bf16.msra.mxu0 %v7533_v60  ;;  %1190 = vmatprep.mubr.f32.mxu0 %v7495_v10 }
 0x4d0   :  { %5157 = vmatprep.subr.bf16.mxu0 %v7534_v3  ;;  %5163 = vmatpush3.bf16.msra.mxu1 %v6630_v52  ;;  %v7552_v52 = vld [vmem:[#allocation38_spill] sm:$0xff] }
 0x4d1   :  { %5165 = vmatprep.subr.bf16.mxu1 %v7535_v6  ;;  %v7551_v6 = vld [vmem:[#allocation46_spill] sm:$0xff] }
 0x4d2   :  { %4025 = vmatmul.mubr.msk.f32.vlgmr.msra.gmra.mrb[14].mxu0 %vm131_vm1, %v1122_v2 }
 0x4d3   :  { %5159 = vmatpush1.bf16.msra.mxu0 %v7536_v0  ;;  %1261 = vmatprep.mubr.f32.mxu0 %v7495_v10 }
 0x4d4   :  { %5193 = vmatprep.subr.bf16.mxu0 %v7537_v63  ;;  %5167 = vmatpush3.bf16.msra.mxu1 %v7538_v25  ;;  %v7548_v25 = vld [vmem:[#allocation34_spill] sm:$0xff] }
 0x4d5   :  { %5169 = vmatprep.subr.bf16.mxu1 %v7539_v27  ;;  %v7549_v27 = vld [vmem:[#allocation35_spill] sm:$0xff] }
 0x4d6   :  { %4026 = vmatmul.mubr.msk.f32.vlgmr.msra.gmra.mrb[16].mxu0 %vm131_vm1, %v1122_v2  ;;  %v7550_v2 = vld [vmem:[#allocation44_spill] sm:$0xff] }
 0x4d7   :  { %5195 = vmatpush3.bf16.msra.mxu0 %v7540_v16 }
 0x4d8   :  { %5197 = vmatprep.subr.bf16.mxu0 %v7541_v51  ;;  %5171 = vmatpush3.bf16.msra.mxu1 %v7542_v42  ;;  %v7553_v42 = vld [vmem:[#allocation43_spill] sm:$0xff] }
 0x4d9   :  { %5173 = vmatprep.subr.bf16.mxu1 %v7543_v1  ;;  %v7554_v1 = vld [vmem:[#allocation48_spill] sm:$0xff] }
 0x4db   :  { %5199 = vmatpush3.bf16.msra.mxu0 %v7544_v33  ;;  %v7555_v33 = vld [vmem:[#allocation50_spill] sm:$0xff] }
 0x4dc   :  { %5201 = vmatprep.subr.bf16.mxu0 %v7545_v54  ;;  %5175 = vmatpush3.bf16.msra.mxu1 %v7546_v46  ;;  %v7556_v54 = vld [vmem:[#allocation45_spill] sm:$0xff]  ;;  %v7557_v46 = vld [vmem:[#allocation47_spill] sm:$0xff] }
 0x4dd   :  { %5177 = vmatprep.subr.bf16.mxu1 %v7547_v9  ;;  %v7558_v9 = vld [vmem:[#allocation52_spill] sm:$0xff] }
 0x4df   :  { %5203 = vmatpush3.bf16.msra.mxu0 %v7548_v25  ;;  %v7559_v25 = vld [vmem:[#allocation54_spill] sm:$0xff] }
 0x4e0   :  { %5205 = vmatprep.subr.bf16.mxu0 %v7549_v27  ;;  %5179 = vmatpush3.bf16.msra.mxu1 %v7550_v2  ;;  %v7560_v27 = vld [vmem:[#allocation49_spill] sm:$0xff]  ;;  %v7561_v2 = vld [vmem:[#allocation51_spill] sm:$0xff] }
 0x4e1   :  { %5181 = vmatprep.subr.bf16.mxu1 %v7551_v6  ;;  %v7562_v6 = vld [vmem:[#allocation56_spill] sm:$0xff] }
 0x4e3   :  { %5207 = vmatpush3.bf16.msra.mxu0 %v7552_v52 }
 0x4e4   :  { %5209 = vmatprep.subr.bf16.mxu0 %v7553_v42  ;;  %5183 = vmatpush3.bf16.msra.mxu1 %v7554_v1  ;;  %v7563_v42 = vld [vmem:[#allocation53_spill] sm:$0xff]  ;;  %v7564_v1 = vld [vmem:[#allocation55_spill] sm:$0xff] }
 0x4e5   :  { %5185 = vmatprep.subr.bf16.mxu1 %v7555_v33  ;;  %v7565_v33 = vld [vmem:[#allocation57_spill] sm:$0xff] }
 0x4e7   :  { %5211 = vmatpush3.bf16.msra.mxu0 %v7556_v54  ;;  %v7566_v54 = vld [vmem:[#allocation19_spill] sm:$0xff] }
 0x4e8   :  { %5213 = vmatprep.subr.bf16.mxu0 %v7557_v46  ;;  %5187 = vmatpush3.bf16.msra.mxu1 %v7558_v9  ;;  %v7567_v46 = vld [vmem:[#allocation58_spill] sm:$0xff]  ;;  %v7568_v9 = vmov 0  }
 0x4e9   :  { %5189 = vmatprep.subr.bf16.mxu1 %v7559_v25  ;;  %vm1413_vm3 = vcmp.eq.s32.totalorder %v7567_v46, 2 }
 0x4ea   :  { %v1414_v25 = vsel %vm1413_vm3, 1, %v7568_v9 }
 0x4eb   :  { %5215 = vmatpush3.bf16.msra.mxu0 %v7560_v27  ;;  %1416 = vperm.xlu0 %6040, %v1414_v25  }
 0x4ec   :  { %5217 = vmatprep.subr.bf16.mxu0 %v7561_v2  ;;  %5191 = vmatpush3.bf16.msra.mxu1 %v7562_v6  ;;  %v7569_v2 = vld [vmem:[#allocation59_spill] sm:$0xff]  ;;  %v7570_v6 = vld [vmem:[#allocation60_spill] sm:$0xff] }
 0x4ed   :  { %5224 = vmatprep.subr.bf16.mxu1 %v7526_v58 }
 0x4ef   :  { %5219 = vmatpush3.bf16.msra.mxu0 %v7563_v42 }
 0x4f0   :  { %5221 = vmatprep.subr.bf16.mxu0 %v7564_v1 }
 0x4f3   :  { %5223 = vmatpush3.bf16.msra.mxu0 %v7565_v33 }
 0x4f4   :  { %5249 = vmatprep.subr.bf16.mxu0 %v7566_v54 }
 0x5a1   :  { %v1041_v27 = vpop.f32.mrb[6].mxu1  ;;  %v1112_v52 = vpop.f32.mrb[12].mxu0 }
 0x5a2   :  { %v1042_v22 = vadd.f32 %v1041_v27, %v7569_v2  ;;  %v1113_v0 = vadd.f32 %v1112_v52, %v7570_v6  ;;  %v1043_v51 = vpop.f32.mrb[7].mxu1  ;;  %v1114_v16 = vpop.f32.mrb[13].mxu0 }
 0x5a3   :  { %v1044_v42 = vadd.f32 %v1043_v51, %v6730_v35  ;;  %v1115_v1 = vadd.f32 %v1114_v16, %v6732_v18 }
 0x5a4   :  { %6054 = vtanh.f32 %v1042_v22 }
 0x5a5   :  { %6056 = vtanh.f32 %v1113_v0  ;;  %v1192_v54 = vpop.f32.mrb[14].mxu0 }
 0x5a6   :  { %6058 = vtanh.f32 %v1044_v42  ;;  %v1194_v46 = vpop.f32.mrb[15].mxu0  ;;  %v7572_v42 = vld [vmem:[#allocation23_spill] sm:$0xff] }
 0x5a7   :  { %6060 = vtanh.f32 %v1115_v1 }
 0x5a9   :  { %v1263_v9 = vpop.f32.mrb[16].mxu0 }
 0x5aa   :  { %v1265_v25 = vpop.f32.mrb[17].mxu0 }
 0x5ae   :  { %v6055_v33 = vpop.eup %6054 }
 0x5af   :  { %v6057_v3 = vpop.eup %6056  ;;  %v1268_v60 = vmul.f32 %v6055_v33, %v1192_v54 }
 0x5b0   :  { %v6059_v27 = vpop.eup %6058  ;;  %v1270_v2 = vmul.f32 %v6057_v3, %v1263_v9 }
 0x5b1   :  { %v6061_v52 = vpop.eup %6060  ;;  %v1269_v6 = vmul.f32 %v6059_v27, %v1194_v46  ;;  %v7573_v46 = vld [vmem:[#allocation24_spill] sm:$0xff]  ;;  %v7575_v27 = vld [vmem:[#allocation26_spill] sm:$0xff] }
 0x5b2   :  { %v1271_v40 = vmul.f32 %v6061_v52, %v1265_v25  ;;  %v7574_v25 = vld [vmem:[#allocation25_spill] sm:$0xff]  ;;  %v7576_v52 = vld [vmem:[#allocation27_spill] sm:$0xff] }
 0x5b3   :  { %1336 = vmatprep.mubr.f32.mxu1 %v1269_v6 }
 0x5b4   :  { %1406 = vmatprep.mubr.f32.mxu0 %v1271_v40  ;;  %1337 = vmatmul.mubr.f32.vlgmr.msra.gmra.mrb[8].mxu1 %v1268_v60 }
 0x5b5   :  { %1407 = vmatmul.mubr.f32.vlgmr.msra.gmra.mrb[18].mxu0 %v1270_v2  ;;  %5226 = vmatpush3.bf16.msra.mxu1 %v6455_v8  ;;  %v1638_v2 = vld [vmem:[#allocation2 + $0x6] sm:$0x3] }
 0x5b6   :  { %5227 = vmatprep.subr.bf16.mxu1 %v7526_v58  ;;  %4758 = vmatprep.mubr.msk.f32.mxu1 %vm6289_vm0, %v7495_v10 }
 0x5b7   :  { %5251 = vmatpush1.bf16.msra.mxu0 %v6495_v38  ;;  %1555 = vmatprep.mubr.f32.mxu0 %v7495_v10 }
 0x5b8   :  { %5253 = vmatprep.subr.bf16.mxu0 %v6500_v41 }
 0x5b9   :  { %5229 = vmatpush3.bf16.msra.mxu1 %v6461_v11 }
 0x5ba   :  { %5230 = vmatprep.subr.bf16.mxu1 %v7526_v58 }
 0x5bb   :  { %5255 = vmatpush1.bf16.msra.mxu0 %v6502_v44 }
 0x5bc   :  { %5257 = vmatprep.subr.bf16.mxu0 %v6505_v47 }
 0x5bd   :  { %5232 = vmatpush3.bf16.msra.mxu1 %v6467_v14 }
 0x5be   :  { %5233 = vmatprep.subr.bf16.mxu1 %v7526_v58 }
 0x5bf   :  { %5259 = vmatpush1.bf16.msra.mxu0 %v6508_v50 }
 0x5c0   :  { %5261 = vmatprep.subr.bf16.mxu0 %v6511_v53 }
 0x5c1   :  { %5235 = vmatpush3.bf16.msra.mxu1 %v6471_v17 }
 0x5c2   :  { %5236 = vmatprep.subr.bf16.mxu1 %v7526_v58 }
 0x5c3   :  { %5263 = vmatpush1.bf16.msra.mxu0 %v6514_v56 }
 0x5c4   :  { %5265 = vmatprep.subr.bf16.mxu0 %v6517_v59 }
 0x5c5   :  { %5238 = vmatpush3.bf16.msra.mxu1 %v6475_v20 }
 0x5c6   :  { %5239 = vmatprep.subr.bf16.mxu1 %v7526_v58 }
 0x5c7   :  { %5267 = vmatpush1.bf16.msra.mxu0 %v6520_v62 }
 0x5c8   :  { %5269 = vmatprep.subr.bf16.mxu0 %v6558_v49 }
 0x5c9   :  { %5241 = vmatpush3.bf16.msra.mxu1 %v6479_v23 }
 0x5ca   :  { %5242 = vmatprep.subr.bf16.mxu1 %v7526_v58 }
 0x5cb   :  { %5271 = vmatpush1.bf16.msra.mxu0 %v6562_v57 }
 0x5cc   :  { %5273 = vmatprep.subr.bf16.mxu0 %v6570_v4 }
 0x5cd   :  { %5244 = vmatpush3.bf16.msra.mxu1 %v6483_v26 }
 0x5ce   :  { %5245 = vmatprep.subr.bf16.mxu1 %v7526_v58 }
 0x5cf   :  { %5275 = vmatpush1.bf16.msra.mxu0 %v6574_v15 }
 0x5d0   :  { %5277 = vmatprep.subr.bf16.mxu0 %v6581_v32 }
 0x5d1   :  { %5247 = vmatpush3.bf16.msra.mxu1 %v6488_v29 }
 0x5d2   :  { %5281 = vmatprep.subr.bf16.mxu1 %v6493_v37 }
 0x5d3   :  { %5279 = vmatpush1.bf16.msra.mxu0 %v6586_v45 }
 0x5d4   :  { %5313 = vmatprep.subr.bf16.mxu0 %v7531_v5 }
 0x687   :  { %v4176_v9 = vpop.f32.mrb[8].mxu1 }
 0x688   :  { %v4211_v22 = vpop.f32.mrb[18].mxu0  ;;  %v4177_v40 = vpop.f32.mrb[9].mxu1 }
 0x689   :  { %v4178_v60 = vadd.f32 %v4177_v40, %v4176_v9  ;;  %v4212_v3 = vpop.f32.mrb[19].mxu0  ;;  %v7577_v9 = vld [vmem:[#allocation28_spill] sm:$0xff]  ;;  %v7579_v40 = vld [vmem:[#allocation30_spill] sm:$0xff] }
 0x68a   :  { %v4213_v6 = vadd.f32 %v4212_v3, %v4211_v22  ;;  %v7578_v22 = vld [vmem:[#allocation29_spill] sm:$0xff]  ;;  %v7581_v3 = vld [vmem:[#allocation32_spill] sm:$0xff] }
 0x68c   :  { %v1409_v0 = vadd.f32 %v4213_v6, %v4178_v60  ;;  %v7580_v60 = vld [vmem:[#allocation31_spill] sm:$0xff]  ;;  %v7582_v6 = vld [vmem:[#allocation33_spill] sm:$0xff] }
 0x68e   :  { %v6877_v16 = vadd.f32 %v1409_v0, %v6774_v31  ;;  %v7583_v0 = vld [vmem:[#allocation34_spill] sm:$0xff]  ;;  %v7589_v31 = vld [vmem:[#allocation39_spill] sm:$0xff] }
 0x690   :  { %7571 = vst [vmem:[#allocation21_spill] sm:$0xff] %v6877_v16  ;;  %4759 = vmatmul.mubr.f32.vlgmr.msra.gmra.mrb[10].mxu1 %v6877_v16 }
 0x691   :  { %5283 = vmatpush1.bf16.msra.mxu1 %v6527_v7  ;;  %1626 = vmatprep.mubr.f32.mxu1 %v7495_v10 }
 0x692   :  { %5285 = vmatprep.subr.bf16.mxu1 %v6531_v12 }
 0x695   :  { %5287 = vmatpush1.bf16.msra.mxu1 %v6535_v19 }
 0x696   :  { %5289 = vmatprep.subr.bf16.mxu1 %v6539_v21 }
 0x699   :  { %5291 = vmatpush1.bf16.msra.mxu1 %v6542_v28 }
 0x69a   :  { %5293 = vmatprep.subr.bf16.mxu1 %v6545_v30 }
 0x69d   :  { %5295 = vmatpush1.bf16.msra.mxu1 %v6548_v36 }
 0x69e   :  { %5297 = vmatprep.subr.bf16.mxu1 %v6551_v39 }
 0x6a1   :  { %5299 = vmatpush1.bf16.msra.mxu1 %v6554_v43 }
 0x6a2   :  { %5301 = vmatprep.subr.bf16.mxu1 %v6560_v55 }
 0x6a5   :  { %5303 = vmatpush1.bf16.msra.mxu1 %v6565_v61 }
 0x6a6   :  { %5305 = vmatprep.subr.bf16.mxu1 %v6572_v13 }
 0x6a9   :  { %5307 = vmatpush1.bf16.msra.mxu1 %v6577_v24 }
 0x6aa   :  { %5309 = vmatprep.subr.bf16.mxu1 %v6583_v34 }
 0x6ad   :  { %5311 = vmatpush1.bf16.msra.mxu1 %v6590_v48 }
 0x6ae   :  { %5353 = vmatprep.subr.bf16.mxu1 %v7537_v63 }
 0x763   :  { %v1486_v51 = vpop.f32.mrb[10].mxu1 }
 0x764   :  { %v1487_v1 = vadd.f32 %v7572_v42, %v1486_v51  ;;  %v4760_v33 = vpop.f32.mrb[11].mxu1  ;;  %v7584_v51 = vld [vmem:[#allocation35_spill] sm:$0xff]  ;;  %v7585_v42 = vld [vmem:[#allocation36_spill] sm:$0xff] }
 0x765   :  { %v7587_v33 = vld [vmem:[#allocation38_spill] sm:$0xff] }
 0x766   :  { %6062 = vtanh.f32 %v1487_v1  ;;  %v7586_v1 = vld [vmem:[#allocation37_spill] sm:$0xff] }
 0x770   :  { %v6063_v54 = vpop.eup %6062 }
 0x771   :  { %1556 = vmatmul.mubr.f32.vlgmr.msra.gmra.mrb[20].mxu0 %v6063_v54  ;;  %1627 = vmatmul.mubr.f32.vlgmr.msra.gmra.mrb[12].mxu1 %v6063_v54  ;;  %v7588_v54 = vld [vmem:[#allocation43_spill] sm:$0xff] }
 0x772   :  { %5315 = vmatpush1.bf16.msra.mxu0 %v7573_v46  ;;  %1706 = vmatprep.mubr.f32.mxu0 %v7495_v10 }
 0x773   :  { %5317 = vmatprep.subr.bf16.mxu0 %v7574_v25  ;;  %5355 = vmatpush3.bf16.msra.mxu1 %v7575_v27 }
 0x774   :  { %5357 = vmatprep.subr.bf16.mxu1 %v7576_v52 }
 0x775   :  { %4027 = vmatmul.mubr.msk.f32.vlgmr.msra.gmra.mrb[22].mxu0 %vm131_vm1, %v1638_v2 }
 0x776   :  { %5319 = vmatpush1.bf16.msra.mxu0 %v7577_v9  ;;  %1777 = vmatprep.mubr.f32.mxu0 %v7495_v10 }
 0x777   :  { %5321 = vmatprep.subr.bf16.mxu0 %v7578_v22  ;;  %5359 = vmatpush3.bf16.msra.mxu1 %v7579_v40 }
 0x778   :  { %5361 = vmatprep.subr.bf16.mxu1 %v7580_v60  ;;  %v7590_v60 = vld [vmem:[#allocation40_spill] sm:$0xff] }
 0x779   :  { %4028 = vmatmul.mubr.msk.f32.vlgmr.msra.gmra.mrb[24].mxu0 %vm131_vm1, %v1638_v2  ;;  %v7591_v2 = vld [vmem:[#allocation45_spill] sm:$0xff] }
 0x77a   :  { %5323 = vmatpush3.bf16.msra.mxu0 %v7581_v3  ;;  %v7592_v3 = vld [vmem:[#allocation47_spill] sm:$0xff] }
 0x77b   :  { %5325 = vmatprep.subr.bf16.mxu0 %v7582_v6  ;;  %5363 = vmatpush3.bf16.msra.mxu1 %v7583_v0  ;;  %v7593_v6 = vld [vmem:[#allocation41_spill] sm:$0xff]  ;;  %v7594_v0 = vld [vmem:[#allocation42_spill] sm:$0xff] }
 0x77c   :  { %5365 = vmatprep.subr.bf16.mxu1 %v7584_v51  ;;  %v7595_v51 = vld [vmem:[#allocation49_spill] sm:$0xff] }
 0x77e   :  { %5327 = vmatpush3.bf16.msra.mxu0 %v7585_v42  ;;  %v7596_v42 = vld [vmem:[#allocation51_spill] sm:$0xff] }
 0x77f   :  { %5329 = vmatprep.subr.bf16.mxu0 %v7586_v1  ;;  %5367 = vmatpush3.bf16.msra.mxu1 %v7587_v33  ;;  %v7597_v1 = vld [vmem:[#allocation44_spill] sm:$0xff]  ;;  %v7598_v33 = vld [vmem:[#allocation46_spill] sm:$0xff] }
 0x780   :  { %5369 = vmatprep.subr.bf16.mxu1 %v7588_v54  ;;  %v7599_v54 = vld [vmem:[#allocation53_spill] sm:$0xff] }
 0x782   :  { %5331 = vmatpush3.bf16.msra.mxu0 %v7589_v31  ;;  %v7600_v31 = vld [vmem:[#allocation55_spill] sm:$0xff] }
 0x783   :  { %5333 = vmatprep.subr.bf16.mxu0 %v7590_v60  ;;  %5371 = vmatpush3.bf16.msra.mxu1 %v7591_v2  ;;  %v7601_v60 = vld [vmem:[#allocation48_spill] sm:$0xff]  ;;  %v7602_v2 = vld [vmem:[#allocation50_spill] sm:$0xff] }
 0x784   :  { %5373 = vmatprep.subr.bf16.mxu1 %v7592_v3  ;;  %v7603_v3 = vld [vmem:[#allocation57_spill] sm:$0xff] }
 0x786   :  { %5335 = vmatpush3.bf16.msra.mxu0 %v7593_v6  ;;  %v7604_v6 = vld [vmem:[#allocation19_spill] sm:$0xff] }
 0x787   :  { %5337 = vmatprep.subr.bf16.mxu0 %v7594_v0  ;;  %5375 = vmatpush3.bf16.msra.mxu1 %v7595_v51  ;;  %v7605_v0 = vld [vmem:[#allocation52_spill] sm:$0xff]  ;;  %v7606_v51 = vld [vmem:[#allocation54_spill] sm:$0xff] }
 0x788   :  { %5377 = vmatprep.subr.bf16.mxu1 %v7596_v42  ;;  %v7607_v42 = vld [vmem:[#allocation56_spill] sm:$0xff] }
 0x78a   :  { %5339 = vmatpush3.bf16.msra.mxu0 %v7597_v1 }
 0x78b   :  { %5341 = vmatprep.subr.bf16.mxu0 %v7598_v33  ;;  %5379 = vmatpush3.bf16.msra.mxu1 %v7599_v54  ;;  %v7608_v33 = vld [vmem:[#allocation58_spill] sm:$0xff]  ;;  %v7609_v54 = vmov 0  }
 0x78c   :  { %5381 = vmatprep.subr.bf16.mxu1 %v7600_v31  ;;  %vm1929_vm4 = vcmp.eq.s32.totalorder %v7608_v33, 3 }
 0x78d   :  { %v1930_v31 = vsel %vm1929_vm4, 1, %v7609_v54 }
 0x78e   :  { %5343 = vmatpush3.bf16.msra.mxu0 %v7601_v60  ;;  %1932 = vperm.xlu1 %6041, %v1930_v31  }
 0x78f   :  { %5345 = vmatprep.subr.bf16.mxu0 %v7602_v2  ;;  %5383 = vmatpush3.bf16.msra.mxu1 %v7603_v3  ;;  %v7610_v2 = vld [vmem:[#allocation59_spill] sm:$0xff]  ;;  %v7611_v3 = vld [vmem:[#allocation60_spill] sm:$0xff] }
 0x790   :  { %5409 = vmatprep.subr.bf16.mxu1 %v7604_v6 }
 0x792   :  { %5347 = vmatpush3.bf16.msra.mxu0 %v7605_v0 }
 0x793   :  { %5349 = vmatprep.subr.bf16.mxu0 %v7606_v51 }
 0x796   :  { %5351 = vmatpush3.bf16.msra.mxu0 %v7607_v42 }
 0x797   :  { %5384 = vmatprep.subr.bf16.mxu0 %v7526_v58 }
 0x844   :  { %v1557_v60 = vpop.f32.mrb[20].mxu0  ;;  %v1628_v1 = vpop.f32.mrb[12].mxu1 }
 0x845   :  { %v1558_v40 = vadd.f32 %v1557_v60, %v7610_v2  ;;  %v1629_v22 = vadd.f32 %v1628_v1, %v7611_v3  ;;  %v1559_v6 = vpop.f32.mrb[21].mxu0  ;;  %v1630_v9 = vpop.f32.mrb[13].mxu1 }
 0x846   :  { %v1560_v0 = vadd.f32 %v1559_v6, %v6730_v35  ;;  %v1631_v51 = vadd.f32 %v1630_v9, %v6732_v18 }
 0x847   :  { %6064 = vtanh.f32 %v1558_v40 }
 0x848   :  { %6066 = vtanh.f32 %v1629_v22  ;;  %v1708_v42 = vpop.f32.mrb[22].mxu0 }
 0x849   :  { %6068 = vtanh.f32 %v1560_v0  ;;  %v1710_v33 = vpop.f32.mrb[23].mxu0  ;;  %v7003_v0 = vld [vmem:[%s7385_s6] ss:$0 sm:$0xff]  ;;  %s6292_s6 = smov [#allocation13]  }
 0x84a   :  { %6070 = vtanh.f32 %v1631_v51  ;;  %7613 = vst [vmem:[#allocation23_spill] sm:$0xff] %v7003_v0  ;;  %s4007_s3 = sshll.u32 %s6292_s6, 4  ;;  %s4008_s3 = int_to_ptr.vmem [resolvable:$true] %s4007_s3 }
 0x84b   :  { %s6245_s26 = scalar_lea.vmem %s4008_s3, 32  ;;  %p6250_p7 = scmp.lt.s32.totalorder %s4008_s3, %s4008_s3 }
 0x84c   :  { %v1779_v54 = vpop.f32.mrb[24].mxu0  ;;  %p6246_p6 = scmp.ne.s32.totalorder %s4008_s3, %s6245_s26  ;;  %p6251_p8 = scmp.lt.s32.totalorder %s6245_s26, %s6245_s26 }
 0x84d   :  { %v1781_v31 = vpop.f32.mrb[25].mxu0 }
 0x84e   :  { %p6252_p9 = por %p6251_p8, %p6250_p7 }
 0x850   :  { %p6253_p10 = pnand %p6252_p9, %p6246_p6 }
 0x851   :  { %v6065_v52 = vpop.eup %6064 }
 0x852   :  { %v6067_v27 = vpop.eup %6066  ;;  %v1784_v25 = vmul.f32 %v6065_v52, %v1708_v42 }
 0x853   :  { %v6069_v60 = vpop.eup %6068  ;;  %v1786_v2 = vmul.f32 %v6067_v27, %v1779_v54  ;;  %v7614_v54 = vld [vmem:[#allocation24_spill] sm:$0xff] }
 0x854   :  { %v6071_v1 = vpop.eup %6070  ;;  %v1785_v3 = vmul.f32 %v6069_v60, %v1710_v33  ;;  %v7616_v60 = vld [vmem:[#allocation26_spill] sm:$0xff] }
 0x855   :  { %v1787_v46 = vmul.f32 %v6071_v1, %v1781_v31  ;;  %v7615_v31 = vld [vmem:[#allocation25_spill] sm:$0xff]  ;;  %v7617_v1 = vld [vmem:[#allocation27_spill] sm:$0xff] }
 0x856   :  { %1852 = vmatprep.mubr.f32.mxu0 %v1785_v3 }
 0x857   :  { %1922 = vmatprep.mubr.f32.mxu1 %v1787_v46  ;;  %1853 = vmatmul.mubr.f32.vlgmr.msra.gmra.mrb[26].mxu0 %v1784_v25 }
 0x858   :  { %1923 = vmatmul.mubr.f32.vlgmr.msra.gmra.mrb[14].mxu1 %v1786_v2  ;;  %5386 = vmatpush3.bf16.msra.mxu0 %v6455_v8  ;;  %v2154_v2 = vld [vmem:[#allocation2 + $0x8] sm:$0x3] }
 0x859   :  { %5387 = vmatprep.subr.bf16.mxu0 %v7526_v58  ;;  %4793 = vmatprep.mubr.msk.f32.mxu0 %vm6289_vm0, %v7495_v10 }
 0x85a   :  { %5411 = vmatpush1.bf16.msra.mxu1 %v6495_v38  ;;  %2071 = vmatprep.mubr.f32.mxu1 %v7495_v10 }
 0x85b   :  { %5413 = vmatprep.subr.bf16.mxu1 %v6500_v41 }
 0x85c   :  { %5389 = vmatpush3.bf16.msra.mxu0 %v6461_v11 }
 0x85d   :  { %5390 = vmatprep.subr.bf16.mxu0 %v7526_v58 }
 0x85e   :  { %5415 = vmatpush1.bf16.msra.mxu1 %v6502_v44 }
 0x85f   :  { %5417 = vmatprep.subr.bf16.mxu1 %v6505_v47 }
 0x860   :  { %5392 = vmatpush3.bf16.msra.mxu0 %v6467_v14 }
 0x861   :  { %5393 = vmatprep.subr.bf16.mxu0 %v7526_v58 }
 0x862   :  { %5419 = vmatpush1.bf16.msra.mxu1 %v6508_v50 }
 0x863   :  { %5421 = vmatprep.subr.bf16.mxu1 %v6511_v53 }
 0x864   :  { %5395 = vmatpush3.bf16.msra.mxu0 %v6471_v17 }
 0x865   :  { %5396 = vmatprep.subr.bf16.mxu0 %v7526_v58 }
 0x866   :  { %5423 = vmatpush1.bf16.msra.mxu1 %v6514_v56 }
 0x867   :  { %5425 = vmatprep.subr.bf16.mxu1 %v6517_v59 }
 0x868   :  { %5398 = vmatpush3.bf16.msra.mxu0 %v6475_v20 }
 0x869   :  { %5399 = vmatprep.subr.bf16.mxu0 %v7526_v58 }
 0x86a   :  { %5427 = vmatpush1.bf16.msra.mxu1 %v6520_v62 }
 0x86b   :  { %5429 = vmatprep.subr.bf16.mxu1 %v6558_v49 }
 0x86c   :  { %5401 = vmatpush3.bf16.msra.mxu0 %v6479_v23 }
 0x86d   :  { %5402 = vmatprep.subr.bf16.mxu0 %v7526_v58 }
 0x86e   :  { %5431 = vmatpush1.bf16.msra.mxu1 %v6562_v57 }
 0x86f   :  { %5433 = vmatprep.subr.bf16.mxu1 %v6570_v4 }
 0x870   :  { %5404 = vmatpush3.bf16.msra.mxu0 %v6483_v26 }
 0x871   :  { %5405 = vmatprep.subr.bf16.mxu0 %v7526_v58 }
 0x872   :  { %5435 = vmatpush1.bf16.msra.mxu1 %v6574_v15 }
 0x873   :  { %5437 = vmatprep.subr.bf16.mxu1 %v6581_v32 }
 0x874   :  { %5407 = vmatpush3.bf16.msra.mxu0 %v6488_v29 }
 0x875   :  { %5441 = vmatprep.subr.bf16.mxu0 %v6493_v37 }
 0x876   :  { %5439 = vmatpush1.bf16.msra.mxu1 %v6586_v45 }
 0x877   :  { %5473 = vmatprep.subr.bf16.mxu1 %v7531_v5 }
 0x92a   :  { %v4263_v46 = vpop.f32.mrb[26].mxu0 }
 0x92b   :  { %v4298_v25 = vpop.f32.mrb[14].mxu1  ;;  %v4264_v27 = vpop.f32.mrb[27].mxu0 }
 0x92c   :  { %v4265_v52 = vadd.f32 %v4264_v27, %v4263_v46  ;;  %v4299_v9 = vpop.f32.mrb[15].mxu1  ;;  %v7618_v46 = vld [vmem:[#allocation28_spill] sm:$0xff]  ;;  %v7620_v27 = vld [vmem:[#allocation30_spill] sm:$0xff] }
 0x92d   :  { %v4300_v22 = vadd.f32 %v4299_v9, %v4298_v25  ;;  %v7619_v25 = vld [vmem:[#allocation29_spill] sm:$0xff]  ;;  %v7622_v9 = vld [vmem:[#allocation32_spill] sm:$0xff] }
 0x92f   :  { %v1925_v40 = vadd.f32 %v4300_v22, %v4265_v52  ;;  %v7621_v52 = vld [vmem:[#allocation31_spill] sm:$0xff]  ;;  %v7623_v22 = vld [vmem:[#allocation33_spill] sm:$0xff] }
 0x931   :  { %v6980_v3 = vadd.f32 %v1925_v40, %v6877_v16  ;;  %v7624_v40 = vld [vmem:[#allocation34_spill] sm:$0xff]  ;;  %v7629_v16 = vld [vmem:[#allocation43_spill] sm:$0xff] }
 0x933   :  { %7612 = vst [vmem:[#allocation22_spill] sm:$0xff] %v6980_v3  ;;  %4794 = vmatmul.mubr.f32.vlgmr.msra.gmra.mrb[28].mxu0 %v6980_v3 }
 0x934   :  { %5443 = vmatpush1.bf16.msra.mxu0 %v6527_v7  ;;  %2142 = vmatprep.mubr.f32.mxu0 %v7495_v10 }
 0x935   :  { %5445 = vmatprep.subr.bf16.mxu0 %v6531_v12 }
 0x938   :  { %5447 = vmatpush1.bf16.msra.mxu0 %v6535_v19 }
 0x939   :  { %5449 = vmatprep.subr.bf16.mxu0 %v6539_v21 }
 0x93c   :  { %5451 = vmatpush1.bf16.msra.mxu0 %v6542_v28 }
 0x93d   :  { %5453 = vmatprep.subr.bf16.mxu0 %v6545_v30 }
 0x940   :  { %5455 = vmatpush1.bf16.msra.mxu0 %v6548_v36 }
 0x941   :  { %5457 = vmatprep.subr.bf16.mxu0 %v6551_v39 }
 0x944   :  { %5459 = vmatpush1.bf16.msra.mxu0 %v6554_v43 }
 0x945   :  { %5461 = vmatprep.subr.bf16.mxu0 %v6560_v55 }
 0x948   :  { %5463 = vmatpush1.bf16.msra.mxu0 %v6565_v61 }
 0x949   :  { %5465 = vmatprep.subr.bf16.mxu0 %v6572_v13 }
 0x94c   :  { %5467 = vmatpush1.bf16.msra.mxu0 %v6577_v24 }
 0x94d   :  { %5469 = vmatprep.subr.bf16.mxu0 %v6583_v34 }
 0x950   :  { %5471 = vmatpush1.bf16.msra.mxu0 %v6590_v48 }
 0x951   :  { %5513 = vmatprep.subr.bf16.mxu0 %v7537_v63 }
 0xa06   :  { %v2002_v6 = vpop.f32.mrb[28].mxu0 }
 0xa07   :  { %v2003_v51 = vadd.f32 %v7003_v0, %v2002_v6  ;;  %v4795_v42 = vpop.f32.mrb[29].mxu0  ;;  %v7625_v6 = vld [vmem:[#allocation35_spill] sm:$0xff] }
 0xa08   :  { %v7627_v42 = vld [vmem:[#allocation37_spill] sm:$0xff] }
 0xa09   :  { %6072 = vtanh.f32 %v2003_v51  ;;  %v7626_v51 = vld [vmem:[#allocation36_spill] sm:$0xff] }
 0xa13   :  { %v6073_v33 = vpop.eup %6072 }
 0xa14   :  { %2072 = vmatmul.mubr.f32.vlgmr.msra.gmra.mrb[16].mxu1 %v6073_v33  ;;  %2143 = vmatmul.mubr.f32.vlgmr.msra.gmra.mrb[30].mxu0 %v6073_v33  ;;  %v7628_v33 = vld [vmem:[#allocation38_spill] sm:$0xff] }
 0xa15   :  { %5475 = vmatpush1.bf16.msra.mxu1 %v7614_v54  ;;  %2222 = vmatprep.mubr.f32.mxu1 %v7495_v10 }
 0xa16   :  { %5477 = vmatprep.subr.bf16.mxu1 %v7615_v31  ;;  %5515 = vmatpush3.bf16.msra.mxu0 %v7616_v60 }
 0xa17   :  { %5517 = vmatprep.subr.bf16.mxu0 %v7617_v1 }
 0xa18   :  { %4029 = vmatmul.mubr.msk.f32.vlgmr.msra.gmra.mrb[18].mxu1 %vm131_vm1, %v2154_v2 }
 0xa19   :  { %5479 = vmatpush1.bf16.msra.mxu1 %v7618_v46  ;;  %2293 = vmatprep.mubr.f32.mxu1 %v7495_v10 }
 0xa1a   :  { %5481 = vmatprep.subr.bf16.mxu1 %v7619_v25  ;;  %5519 = vmatpush3.bf16.msra.mxu0 %v7620_v27  ;;  %v7630_v27 = vld [vmem:[#allocation39_spill] sm:$0xff] }
 0xa1b   :  { %5521 = vmatprep.subr.bf16.mxu0 %v7621_v52  ;;  %v7631_v52 = vld [vmem:[#allocation40_spill] sm:$0xff] }
 0xa1c   :  { %4030 = vmatmul.mubr.msk.f32.vlgmr.msra.gmra.mrb[20].mxu1 %vm131_vm1, %v2154_v2  ;;  %v7632_v2 = vld [vmem:[#allocation45_spill] sm:$0xff] }
 0xa1d   :  { %5483 = vmatpush3.bf16.msra.mxu1 %v7622_v9  ;;  %v7633_v9 = vld [vmem:[#allocation47_spill] sm:$0xff] }
 0xa1e   :  { %5485 = vmatprep.subr.bf16.mxu1 %v7623_v22  ;;  %5523 = vmatpush3.bf16.msra.mxu0 %v7624_v40  ;;  %v7634_v22 = vld [vmem:[#allocation41_spill] sm:$0xff]  ;;  %v7635_v40 = vld [vmem:[#allocation42_spill] sm:$0xff] }
 0xa1f   :  { %5525 = vmatprep.subr.bf16.mxu0 %v7625_v6  ;;  %v7636_v6 = vld [vmem:[#allocation49_spill] sm:$0xff] }
 0xa21   :  { %5487 = vmatpush3.bf16.msra.mxu1 %v7626_v51  ;;  %v7637_v51 = vld [vmem:[#allocation51_spill] sm:$0xff] }
 0xa22   :  { %5489 = vmatprep.subr.bf16.mxu1 %v7627_v42  ;;  %5527 = vmatpush3.bf16.msra.mxu0 %v7628_v33  ;;  %v7638_v42 = vld [vmem:[#allocation44_spill] sm:$0xff]  ;;  %v7639_v33 = vld [vmem:[#allocation46_spill] sm:$0xff] }
 0xa23   :  { %5529 = vmatprep.subr.bf16.mxu0 %v7629_v16  ;;  %v7640_v16 = vld [vmem:[#allocation53_spill] sm:$0xff] }
 0xa25   :  { %5491 = vmatpush3.bf16.msra.mxu1 %v7630_v27  ;;  %v7641_v27 = vld [vmem:[#allocation55_spill] sm:$0xff] }
 0xa26   :  { %5493 = vmatprep.subr.bf16.mxu1 %v7631_v52  ;;  %5531 = vmatpush3.bf16.msra.mxu0 %v7632_v2  ;;  %v7642_v52 = vld [vmem:[#allocation48_spill] sm:$0xff]  ;;  %v7643_v2 = vld [vmem:[#allocation50_spill] sm:$0xff] }
 0xa27   :  { %5533 = vmatprep.subr.bf16.mxu0 %v7633_v9  ;;  %v7644_v9 = vld [vmem:[#allocation57_spill] sm:$0xff] }
 0xa29   :  { %5495 = vmatpush3.bf16.msra.mxu1 %v7634_v22  ;;  %v7645_v22 = vld [vmem:[#allocation19_spill] sm:$0xff] }
 0xa2a   :  { %5497 = vmatprep.subr.bf16.mxu1 %v7635_v40  ;;  %5535 = vmatpush3.bf16.msra.mxu0 %v7636_v6  ;;  %v7646_v40 = vld [vmem:[#allocation52_spill] sm:$0xff]  ;;  %v7647_v6 = vld [vmem:[#allocation54_spill] sm:$0xff] }
 0xa2b   :  { %5537 = vmatprep.subr.bf16.mxu0 %v7637_v51  ;;  %v7648_v51 = vld [vmem:[#allocation56_spill] sm:$0xff] }
 0xa2d   :  { %5499 = vmatpush3.bf16.msra.mxu1 %v7638_v42 }
 0xa2e   :  { %5501 = vmatprep.subr.bf16.mxu1 %v7639_v33  ;;  %5539 = vmatpush3.bf16.msra.mxu0 %v7640_v16  ;;  %v7649_v33 = vld [vmem:[#allocation58_spill] sm:$0xff]  ;;  %v7650_v16 = vmov 0  }
 0xa2f   :  { %5541 = vmatprep.subr.bf16.mxu0 %v7641_v27  ;;  %vm2445_vm5 = vcmp.eq.s32.totalorder %v7649_v33, 4 }
 0xa30   :  { %v2446_v27 = vsel %vm2445_vm5, 1, %v7650_v16 }
 0xa31   :  { %5503 = vmatpush3.bf16.msra.mxu1 %v7642_v52  ;;  %2448 = vperm.xlu1 %6041, %v2446_v27  }
 0xa32   :  { %5505 = vmatprep.subr.bf16.mxu1 %v7643_v2  ;;  %5543 = vmatpush3.bf16.msra.mxu0 %v7644_v9  ;;  %v7651_v2 = vld [vmem:[#allocation59_spill] sm:$0xff]  ;;  %v7652_v9 = vld [vmem:[#allocation60_spill] sm:$0xff] }
 0xa33   :  { %5569 = vmatprep.subr.bf16.mxu0 %v7645_v22 }
 0xa35   :  { %5507 = vmatpush3.bf16.msra.mxu1 %v7646_v40 }
 0xa36   :  { %5509 = vmatprep.subr.bf16.mxu1 %v7647_v6 }
 0xa39   :  { %5511 = vmatpush3.bf16.msra.mxu1 %v7648_v51 }
 0xa3a   :  { %5544 = vmatprep.subr.bf16.mxu1 %v7526_v58 }
 0xae7   :  { %v2073_v52 = vpop.f32.mrb[16].mxu1  ;;  %v2144_v42 = vpop.f32.mrb[30].mxu0 }
 0xae8   :  { %v2074_v25 = vadd.f32 %v2073_v52, %v7651_v2  ;;  %v2145_v46 = vadd.f32 %v2144_v42, %v7652_v9  ;;  %v2075_v22 = vpop.f32.mrb[17].mxu1  ;;  %v2146_v1 = vpop.f32.mrb[31].mxu0 }
 0xae9   :  { %v2076_v40 = vadd.f32 %v2075_v22, %v6730_v35  ;;  %v2147_v6 = vadd.f32 %v2146_v1, %v6732_v18  ;;  %v7654_v22 = vld [vmem:[#allocation23_spill] sm:$0xff] }
 0xaea   :  { %6074 = vtanh.f32 %v2074_v25 }
 0xaeb   :  { %6076 = vtanh.f32 %v2145_v46  ;;  %v2224_v51 = vpop.f32.mrb[18].mxu1 }
 0xaec   :  { %6078 = vtanh.f32 %v2076_v40  ;;  %v2226_v33 = vpop.f32.mrb[19].mxu1 }
 0xaed   :  { %6080 = vtanh.f32 %v2147_v6 }
 0xaef   :  { %v2295_v16 = vpop.f32.mrb[20].mxu1 }
 0xaf0   :  { %v2297_v27 = vpop.f32.mrb[21].mxu1 }
 0xaf4   :  { %v6075_v60 = vpop.eup %6074 }
 0xaf5   :  { %v6077_v31 = vpop.eup %6076  ;;  %v2300_v54 = vmul.f32 %v6075_v60, %v2224_v51 }
 0xaf6   :  { %v6079_v52 = vpop.eup %6078  ;;  %v2302_v2 = vmul.f32 %v6077_v31, %v2295_v16 }
 0xaf7   :  { %v6081_v42 = vpop.eup %6080  ;;  %v2301_v9 = vmul.f32 %v6079_v52, %v2226_v33  ;;  %v7655_v33 = vld [vmem:[#allocation24_spill] sm:$0xff]  ;;  %v7657_v52 = vld [vmem:[#allocation26_spill] sm:$0xff] }
 0xaf8   :  { %v2303_v0 = vmul.f32 %v6081_v42, %v2297_v27  ;;  %v7656_v27 = vld [vmem:[#allocation25_spill] sm:$0xff]  ;;  %v7658_v42 = vld [vmem:[#allocation27_spill] sm:$0xff] }
 0xaf9   :  { %2368 = vmatprep.mubr.f32.mxu1 %v2301_v9 }
 0xafa   :  { %2438 = vmatprep.mubr.f32.mxu0 %v2303_v0  ;;  %2369 = vmatmul.mubr.f32.vlgmr.msra.gmra.mrb[22].mxu1 %v2300_v54 }
 0xafb   :  { %2439 = vmatmul.mubr.f32.vlgmr.msra.gmra.mrb[32].mxu0 %v2302_v2  ;;  %5546 = vmatpush3.bf16.msra.mxu1 %v6455_v8  ;;  %v2670_v2 = vld [vmem:[#allocation2 + $0xa] sm:$0x3] }
 0xafc   :  { %5547 = vmatprep.subr.bf16.mxu1 %v7526_v58  ;;  %4828 = vmatprep.mubr.msk.f32.mxu1 %vm6289_vm0, %v7495_v10 }
 0xafd   :  { %5571 = vmatpush1.bf16.msra.mxu0 %v6495_v38  ;;  %2587 = vmatprep.mubr.f32.mxu0 %v7495_v10 }
 0xafe   :  { %5573 = vmatprep.subr.bf16.mxu0 %v6500_v41 }
 0xaff   :  { %5549 = vmatpush3.bf16.msra.mxu1 %v6461_v11 }
 0xb00   :  { %5550 = vmatprep.subr.bf16.mxu1 %v7526_v58 }
 0xb01   :  { %5575 = vmatpush1.bf16.msra.mxu0 %v6502_v44 }
 0xb02   :  { %5577 = vmatprep.subr.bf16.mxu0 %v6505_v47 }
 0xb03   :  { %5552 = vmatpush3.bf16.msra.mxu1 %v6467_v14 }
 0xb04   :  { %5553 = vmatprep.subr.bf16.mxu1 %v7526_v58 }
 0xb05   :  { %5579 = vmatpush1.bf16.msra.mxu0 %v6508_v50 }
 0xb06   :  { %5581 = vmatprep.subr.bf16.mxu0 %v6511_v53 }
 0xb07   :  { %5555 = vmatpush3.bf16.msra.mxu1 %v6471_v17 }
 0xb08   :  { %5556 = vmatprep.subr.bf16.mxu1 %v7526_v58 }
 0xb09   :  { %5583 = vmatpush1.bf16.msra.mxu0 %v6514_v56 }
 0xb0a   :  { %5585 = vmatprep.subr.bf16.mxu0 %v6517_v59 }
 0xb0b   :  { %5558 = vmatpush3.bf16.msra.mxu1 %v6475_v20 }
 0xb0c   :  { %5559 = vmatprep.subr.bf16.mxu1 %v7526_v58 }
 0xb0d   :  { %5587 = vmatpush1.bf16.msra.mxu0 %v6520_v62 }
 0xb0e   :  { %5589 = vmatprep.subr.bf16.mxu0 %v6558_v49 }
 0xb0f   :  { %5561 = vmatpush3.bf16.msra.mxu1 %v6479_v23 }
 0xb10   :  { %5562 = vmatprep.subr.bf16.mxu1 %v7526_v58 }
 0xb11   :  { %5591 = vmatpush1.bf16.msra.mxu0 %v6562_v57 }
 0xb12   :  { %5593 = vmatprep.subr.bf16.mxu0 %v6570_v4 }
 0xb13   :  { %5564 = vmatpush3.bf16.msra.mxu1 %v6483_v26 }
 0xb14   :  { %5565 = vmatprep.subr.bf16.mxu1 %v7526_v58 }
 0xb15   :  { %5595 = vmatpush1.bf16.msra.mxu0 %v6574_v15 }
 0xb16   :  { %5597 = vmatprep.subr.bf16.mxu0 %v6581_v32 }
 0xb17   :  { %5567 = vmatpush3.bf16.msra.mxu1 %v6488_v29 }
 0xb18   :  { %5601 = vmatprep.subr.bf16.mxu1 %v6493_v37 }
 0xb19   :  { %5599 = vmatpush1.bf16.msra.mxu0 %v6586_v45 }
 0xb1a   :  { %5633 = vmatprep.subr.bf16.mxu0 %v7531_v5 }
 0xbcd   :  { %v4350_v16 = vpop.f32.mrb[22].mxu1 }
 0xbce   :  { %v4385_v0 = vpop.f32.mrb[32].mxu0  ;;  %v4351_v54 = vpop.f32.mrb[23].mxu1 }
 0xbcf   :  { %v4352_v31 = vadd.f32 %v4351_v54, %v4350_v16  ;;  %v4386_v60 = vpop.f32.mrb[33].mxu0  ;;  %v7659_v16 = vld [vmem:[#allocation28_spill] sm:$0xff]  ;;  %v7661_v54 = vld [vmem:[#allocation30_spill] sm:$0xff] }
 0xbd0   :  { %v4387_v1 = vadd.f32 %v4386_v60, %v4385_v0  ;;  %v7660_v0 = vld [vmem:[#allocation29_spill] sm:$0xff]  ;;  %v7663_v60 = vld [vmem:[#allocation32_spill] sm:$0xff] }
 0xbd2   :  { %v2441_v46 = vadd.f32 %v4387_v1, %v4352_v31  ;;  %v7662_v31 = vld [vmem:[#allocation31_spill] sm:$0xff]  ;;  %v7664_v1 = vld [vmem:[#allocation33_spill] sm:$0xff] }
 0xbd4   :  { %v7088_v25 = vadd.f32 %v2441_v46, %v6980_v3  ;;  %v7665_v46 = vld [vmem:[#allocation34_spill] sm:$0xff]  ;;  %v7670_v3 = vld [vmem:[#allocation43_spill] sm:$0xff] }
 0xbd6   :  { %7653 = vst [vmem:[#allocation62_spill] sm:$0xff] %v7088_v25  ;;  %4829 = vmatmul.mubr.f32.vlgmr.msra.gmra.mrb[24].mxu1 %v7088_v25 }
 0xbd7   :  { %5603 = vmatpush1.bf16.msra.mxu1 %v6527_v7  ;;  %2658 = vmatprep.mubr.f32.mxu1 %v7495_v10 }
 0xbd8   :  { %5605 = vmatprep.subr.bf16.mxu1 %v6531_v12 }
 0xbdb   :  { %5607 = vmatpush1.bf16.msra.mxu1 %v6535_v19 }
 0xbdc   :  { %5609 = vmatprep.subr.bf16.mxu1 %v6539_v21 }
 0xbdf   :  { %5611 = vmatpush1.bf16.msra.mxu1 %v6542_v28 }
 0xbe0   :  { %5613 = vmatprep.subr.bf16.mxu1 %v6545_v30 }
 0xbe3   :  { %5615 = vmatpush1.bf16.msra.mxu1 %v6548_v36 }
 0xbe4   :  { %5617 = vmatprep.subr.bf16.mxu1 %v6551_v39 }
 0xbe7   :  { %5619 = vmatpush1.bf16.msra.mxu1 %v6554_v43 }
 0xbe8   :  { %5621 = vmatprep.subr.bf16.mxu1 %v6560_v55 }
 0xbeb   :  { %5623 = vmatpush1.bf16.msra.mxu1 %v6565_v61 }
 0xbec   :  { %5625 = vmatprep.subr.bf16.mxu1 %v6572_v13 }
 0xbef   :  { %5627 = vmatpush1.bf16.msra.mxu1 %v6577_v24 }
 0xbf0   :  { %5629 = vmatprep.subr.bf16.mxu1 %v6583_v34 }
 0xbf3   :  { %5631 = vmatpush1.bf16.msra.mxu1 %v6590_v48 }
 0xbf4   :  { %5673 = vmatprep.subr.bf16.mxu1 %v7537_v63 }
 0xca9   :  { %v2518_v9 = vpop.f32.mrb[24].mxu1 }
 0xcaa   :  { %v2519_v40 = vadd.f32 %v7654_v22, %v2518_v9  ;;  %v4830_v6 = vpop.f32.mrb[25].mxu1  ;;  %v7666_v9 = vld [vmem:[#allocation35_spill] sm:$0xff] }
 0xcab   :  { %v7668_v6 = vld [vmem:[#allocation37_spill] sm:$0xff] }
 0xcac   :  { %6082 = vtanh.f32 %v2519_v40  ;;  %v7667_v40 = vld [vmem:[#allocation36_spill] sm:$0xff] }
 0xcb6   :  { %v6083_v51 = vpop.eup %6082 }
 0xcb7   :  { %2588 = vmatmul.mubr.f32.vlgmr.msra.gmra.mrb[34].mxu0 %v6083_v51  ;;  %2659 = vmatmul.mubr.f32.vlgmr.msra.gmra.mrb[26].mxu1 %v6083_v51  ;;  %v7669_v51 = vld [vmem:[#allocation38_spill] sm:$0xff] }
 0xcb8   :  { %5635 = vmatpush1.bf16.msra.mxu0 %v7655_v33  ;;  %2738 = vmatprep.mubr.f32.mxu0 %v7495_v10 }
 0xcb9   :  { %5637 = vmatprep.subr.bf16.mxu0 %v7656_v27  ;;  %5675 = vmatpush3.bf16.msra.mxu1 %v7657_v52 }
 0xcba   :  { %5677 = vmatprep.subr.bf16.mxu1 %v7658_v42 }
 0xcbb   :  { %4031 = vmatmul.mubr.msk.f32.vlgmr.msra.gmra.mrb[36].mxu0 %vm131_vm1, %v2670_v2 }
 0xcbc   :  { %5639 = vmatpush1.bf16.msra.mxu0 %v7659_v16  ;;  %2809 = vmatprep.mubr.f32.mxu0 %v7495_v10 }
 0xcbd   :  { %5641 = vmatprep.subr.bf16.mxu0 %v7660_v0  ;;  %5679 = vmatpush3.bf16.msra.mxu1 %v7661_v54  ;;  %v7671_v54 = vld [vmem:[#allocation39_spill] sm:$0xff] }
 0xcbe   :  { %5681 = vmatprep.subr.bf16.mxu1 %v7662_v31  ;;  %v7672_v31 = vld [vmem:[#allocation40_spill] sm:$0xff] }
 0xcbf   :  { %4032 = vmatmul.mubr.msk.f32.vlgmr.msra.gmra.mrb[38].mxu0 %vm131_vm1, %v2670_v2  ;;  %v7673_v2 = vld [vmem:[#allocation45_spill] sm:$0xff] }
 0xcc0   :  { %5643 = vmatpush3.bf16.msra.mxu0 %v7663_v60  ;;  %v7674_v60 = vld [vmem:[#allocation47_spill] sm:$0xff] }
 0xcc1   :  { %5645 = vmatprep.subr.bf16.mxu0 %v7664_v1  ;;  %5683 = vmatpush3.bf16.msra.mxu1 %v7665_v46  ;;  %v7675_v1 = vld [vmem:[#allocation41_spill] sm:$0xff]  ;;  %v7676_v46 = vld [vmem:[#allocation42_spill] sm:$0xff] }
 0xcc2   :  { %5685 = vmatprep.subr.bf16.mxu1 %v7666_v9  ;;  %v7677_v9 = vld [vmem:[#allocation49_spill] sm:$0xff] }
 0xcc4   :  { %5647 = vmatpush3.bf16.msra.mxu0 %v7667_v40  ;;  %v7678_v40 = vld [vmem:[#allocation51_spill] sm:$0xff] }
 0xcc5   :  { %5649 = vmatprep.subr.bf16.mxu0 %v7668_v6  ;;  %5687 = vmatpush3.bf16.msra.mxu1 %v7669_v51  ;;  %v7679_v6 = vld [vmem:[#allocation44_spill] sm:$0xff]  ;;  %v7680_v51 = vld [vmem:[#allocation46_spill] sm:$0xff] }
 0xcc6   :  { %5689 = vmatprep.subr.bf16.mxu1 %v7670_v3  ;;  %v7681_v3 = vld [vmem:[#allocation53_spill] sm:$0xff] }
 0xcc8   :  { %5651 = vmatpush3.bf16.msra.mxu0 %v7671_v54  ;;  %v7682_v54 = vld [vmem:[#allocation55_spill] sm:$0xff] }
 0xcc9   :  { %5653 = vmatprep.subr.bf16.mxu0 %v7672_v31  ;;  %5691 = vmatpush3.bf16.msra.mxu1 %v7673_v2  ;;  %v7683_v31 = vld [vmem:[#allocation48_spill] sm:$0xff]  ;;  %v7684_v2 = vld [vmem:[#allocation50_spill] sm:$0xff] }
 0xcca   :  { %5693 = vmatprep.subr.bf16.mxu1 %v7674_v60  ;;  %v7685_v60 = vld [vmem:[#allocation57_spill] sm:$0xff] }
 0xccc   :  { %5655 = vmatpush3.bf16.msra.mxu0 %v7675_v1  ;;  %v7686_v1 = vld [vmem:[#allocation19_spill] sm:$0xff] }
 0xccd   :  { %5657 = vmatprep.subr.bf16.mxu0 %v7676_v46  ;;  %5695 = vmatpush3.bf16.msra.mxu1 %v7677_v9  ;;  %v7687_v46 = vld [vmem:[#allocation52_spill] sm:$0xff]  ;;  %v7688_v9 = vld [vmem:[#allocation54_spill] sm:$0xff] }
 0xcce   :  { %5697 = vmatprep.subr.bf16.mxu1 %v7678_v40  ;;  %v7689_v40 = vld [vmem:[#allocation56_spill] sm:$0xff] }
 0xcd0   :  { %5659 = vmatpush3.bf16.msra.mxu0 %v7679_v6 }
 0xcd1   :  { %5661 = vmatprep.subr.bf16.mxu0 %v7680_v51  ;;  %5699 = vmatpush3.bf16.msra.mxu1 %v7681_v3  ;;  %v7690_v51 = vld [vmem:[#allocation58_spill] sm:$0xff]  ;;  %v7691_v3 = vmov 0  }
 0xcd2   :  { %5701 = vmatprep.subr.bf16.mxu1 %v7682_v54  ;;  %vm2961_vm6 = vcmp.eq.s32.totalorder %v7690_v51, 5 }
 0xcd3   :  { %v2962_v54 = vsel %vm2961_vm6, 1, %v7691_v3 }
 0xcd4   :  { %5663 = vmatpush3.bf16.msra.mxu0 %v7683_v31  ;;  %2964 = vperm.xlu0 %6040, %v2962_v54  }
 0xcd5   :  { %5665 = vmatprep.subr.bf16.mxu0 %v7684_v2  ;;  %5703 = vmatpush3.bf16.msra.mxu1 %v7685_v60  ;;  %v7692_v2 = vld [vmem:[#allocation59_spill] sm:$0xff]  ;;  %v7693_v60 = vld [vmem:[#allocation60_spill] sm:$0xff] }
 0xcd6   :  { %5729 = vmatprep.subr.bf16.mxu1 %v7686_v1 }
 0xcd8   :  { %5667 = vmatpush3.bf16.msra.mxu0 %v7687_v46 }
 0xcd9   :  { %5669 = vmatprep.subr.bf16.mxu0 %v7688_v9 }
 0xcdc   :  { %5671 = vmatpush3.bf16.msra.mxu0 %v7689_v40 }
 0xcdd   :  { %5704 = vmatprep.subr.bf16.mxu0 %v7526_v58 }
 0xd8a   :  { %v2589_v31 = vpop.f32.mrb[34].mxu0  ;;  %v2660_v6 = vpop.f32.mrb[26].mxu1 }
 0xd8b   :  { %v2590_v0 = vadd.f32 %v2589_v31, %v7692_v2  ;;  %v2661_v16 = vadd.f32 %v2660_v6, %v7693_v60  ;;  %v2591_v1 = vpop.f32.mrb[35].mxu0  ;;  %v2662_v42 = vpop.f32.mrb[27].mxu1 }
 0xd8c   :  { %v2592_v46 = vadd.f32 %v2591_v1, %v6730_v35  ;;  %v2663_v9 = vadd.f32 %v2662_v42, %v6732_v18  ;;  %v7694_v1 = vld [vmem:[#allocation23_spill] sm:$0xff] }
 0xd8d   :  { %6084 = vtanh.f32 %v2590_v0 }
 0xd8e   :  { %6086 = vtanh.f32 %v2661_v16  ;;  %v2740_v40 = vpop.f32.mrb[36].mxu0 }
 0xd8f   :  { %6088 = vtanh.f32 %v2592_v46  ;;  %v2742_v51 = vpop.f32.mrb[37].mxu0 }
 0xd90   :  { %6090 = vtanh.f32 %v2663_v9 }
 0xd92   :  { %v2811_v3 = vpop.f32.mrb[38].mxu0 }
 0xd93   :  { %v2813_v54 = vpop.f32.mrb[39].mxu0 }
 0xd97   :  { %v6085_v52 = vpop.eup %6084 }
 0xd98   :  { %v6087_v27 = vpop.eup %6086  ;;  %v2816_v33 = vmul.f32 %v6085_v52, %v2740_v40 }
 0xd99   :  { %v6089_v31 = vpop.eup %6088  ;;  %v2818_v2 = vmul.f32 %v6087_v27, %v2811_v3 }
 0xd9a   :  { %v6091_v6 = vpop.eup %6090  ;;  %v2817_v60 = vmul.f32 %v6089_v31, %v2742_v51  ;;  %v7695_v51 = vld [vmem:[#allocation24_spill] sm:$0xff]  ;;  %v7697_v31 = vld [vmem:[#allocation26_spill] sm:$0xff] }
 0xd9b   :  { %v2819_v22 = vmul.f32 %v6091_v6, %v2813_v54  ;;  %v7696_v54 = vld [vmem:[#allocation25_spill] sm:$0xff]  ;;  %v7698_v6 = vld [vmem:[#allocation27_spill] sm:$0xff] }
 0xd9c   :  { %2884 = vmatprep.mubr.f32.mxu0 %v2817_v60 }
 0xd9d   :  { %2954 = vmatprep.mubr.f32.mxu1 %v2819_v22  ;;  %2885 = vmatmul.mubr.f32.vlgmr.msra.gmra.mrb[40].mxu0 %v2816_v33 }
 0xd9e   :  { %2955 = vmatmul.mubr.f32.vlgmr.msra.gmra.mrb[28].mxu1 %v2818_v2  ;;  %5706 = vmatpush3.bf16.msra.mxu0 %v6455_v8  ;;  %v3186_v2 = vld [vmem:[#allocation2 + $0xc] sm:$0x3] }
 0xd9f   :  { %5707 = vmatprep.subr.bf16.mxu0 %v7526_v58  ;;  %4863 = vmatprep.mubr.msk.f32.mxu0 %vm6289_vm0, %v7495_v10 }
 0xda0   :  { %5731 = vmatpush1.bf16.msra.mxu1 %v6495_v38  ;;  %3103 = vmatprep.mubr.f32.mxu1 %v7495_v10 }
 0xda1   :  { %5733 = vmatprep.subr.bf16.mxu1 %v6500_v41 }
 0xda2   :  { %5709 = vmatpush3.bf16.msra.mxu0 %v6461_v11 }
 0xda3   :  { %5710 = vmatprep.subr.bf16.mxu0 %v7526_v58 }
 0xda4   :  { %5735 = vmatpush1.bf16.msra.mxu1 %v6502_v44 }
 0xda5   :  { %5737 = vmatprep.subr.bf16.mxu1 %v6505_v47 }
 0xda6   :  { %5712 = vmatpush3.bf16.msra.mxu0 %v6467_v14 }
 0xda7   :  { %5713 = vmatprep.subr.bf16.mxu0 %v7526_v58 }
 0xda8   :  { %5739 = vmatpush1.bf16.msra.mxu1 %v6508_v50 }
 0xda9   :  { %5741 = vmatprep.subr.bf16.mxu1 %v6511_v53 }
 0xdaa   :  { %5715 = vmatpush3.bf16.msra.mxu0 %v6471_v17 }
 0xdab   :  { %5716 = vmatprep.subr.bf16.mxu0 %v7526_v58 }
 0xdac   :  { %5743 = vmatpush1.bf16.msra.mxu1 %v6514_v56 }
 0xdad   :  { %5745 = vmatprep.subr.bf16.mxu1 %v6517_v59 }
 0xdae   :  { %5718 = vmatpush3.bf16.msra.mxu0 %v6475_v20 }
 0xdaf   :  { %5719 = vmatprep.subr.bf16.mxu0 %v7526_v58 }
 0xdb0   :  { %5747 = vmatpush1.bf16.msra.mxu1 %v6520_v62 }
 0xdb1   :  { %5749 = vmatprep.subr.bf16.mxu1 %v6558_v49 }
 0xdb2   :  { %5721 = vmatpush3.bf16.msra.mxu0 %v6479_v23 }
 0xdb3   :  { %5722 = vmatprep.subr.bf16.mxu0 %v7526_v58 }
 0xdb4   :  { %5751 = vmatpush1.bf16.msra.mxu1 %v6562_v57 }
 0xdb5   :  { %5753 = vmatprep.subr.bf16.mxu1 %v6570_v4 }
 0xdb6   :  { %5724 = vmatpush3.bf16.msra.mxu0 %v6483_v26 }
 0xdb7   :  { %5725 = vmatprep.subr.bf16.mxu0 %v7526_v58 }
 0xdb8   :  { %5755 = vmatpush1.bf16.msra.mxu1 %v6574_v15 }
 0xdb9   :  { %5757 = vmatprep.subr.bf16.mxu1 %v6581_v32 }
 0xdba   :  { %5727 = vmatpush3.bf16.msra.mxu0 %v6488_v29 }
 0xdbb   :  { %5761 = vmatprep.subr.bf16.mxu0 %v6493_v37 }
 0xdbc   :  { %5759 = vmatpush1.bf16.msra.mxu1 %v6586_v45 }
 0xdbd   :  { %5793 = vmatprep.subr.bf16.mxu1 %v7531_v5 }
 0xe70   :  { %v4437_v3 = vpop.f32.mrb[40].mxu0 }
 0xe71   :  { %v4472_v22 = vpop.f32.mrb[28].mxu1  ;;  %v4438_v33 = vpop.f32.mrb[41].mxu0 }
 0xe72   :  { %v4439_v27 = vadd.f32 %v4438_v33, %v4437_v3  ;;  %v4473_v52 = vpop.f32.mrb[29].mxu1  ;;  %v7699_v3 = vld [vmem:[#allocation28_spill] sm:$0xff]  ;;  %v7701_v33 = vld [vmem:[#allocation30_spill] sm:$0xff] }
 0xe73   :  { %v4474_v42 = vadd.f32 %v4473_v52, %v4472_v22  ;;  %v7700_v22 = vld [vmem:[#allocation29_spill] sm:$0xff]  ;;  %v7703_v52 = vld [vmem:[#allocation32_spill] sm:$0xff] }
 0xe75   :  { %v2957_v16 = vadd.f32 %v4474_v42, %v4439_v27  ;;  %v7702_v27 = vld [vmem:[#allocation31_spill] sm:$0xff]  ;;  %v7704_v42 = vld [vmem:[#allocation33_spill] sm:$0xff] }
 0xe77   :  { %v7191_v0 = vadd.f32 %v2957_v16, %v7088_v25  ;;  %v7705_v16 = vld [vmem:[#allocation34_spill] sm:$0xff]  ;;  %v7710_v25 = vld [vmem:[#allocation43_spill] sm:$0xff] }
 0xe79   :  { %4864 = vmatmul.mubr.f32.vlgmr.msra.gmra.mrb[42].mxu0 %v7191_v0 }
 0xe7a   :  { %5763 = vmatpush1.bf16.msra.mxu0 %v6527_v7  ;;  %3174 = vmatprep.mubr.f32.mxu0 %v7495_v10 }
 0xe7b   :  { %5765 = vmatprep.subr.bf16.mxu0 %v6531_v12 }
 0xe7e   :  { %5767 = vmatpush1.bf16.msra.mxu0 %v6535_v19 }
 0xe7f   :  { %5769 = vmatprep.subr.bf16.mxu0 %v6539_v21 }
 0xe82   :  { %5771 = vmatpush1.bf16.msra.mxu0 %v6542_v28 }
 0xe83   :  { %5773 = vmatprep.subr.bf16.mxu0 %v6545_v30 }
 0xe86   :  { %5775 = vmatpush1.bf16.msra.mxu0 %v6548_v36 }
 0xe87   :  { %5777 = vmatprep.subr.bf16.mxu0 %v6551_v39 }
 0xe8a   :  { %5779 = vmatpush1.bf16.msra.mxu0 %v6554_v43 }
 0xe8b   :  { %5781 = vmatprep.subr.bf16.mxu0 %v6560_v55 }
 0xe8e   :  { %5783 = vmatpush1.bf16.msra.mxu0 %v6565_v61 }
 0xe8f   :  { %5785 = vmatprep.subr.bf16.mxu0 %v6572_v13 }
 0xe92   :  { %5787 = vmatpush1.bf16.msra.mxu0 %v6577_v24 }
 0xe93   :  { %5789 = vmatprep.subr.bf16.mxu0 %v6583_v34 }
 0xe96   :  { %5791 = vmatpush1.bf16.msra.mxu0 %v6590_v48 }
 0xe97   :  { %5833 = vmatprep.subr.bf16.mxu0 %v7537_v63 }
 0xf4c   :  { %v3034_v60 = vpop.f32.mrb[42].mxu0 }
 0xf4d   :  { %v3035_v46 = vadd.f32 %v7694_v1, %v3034_v60  ;;  %v4865_v9 = vpop.f32.mrb[43].mxu0  ;;  %v7706_v60 = vld [vmem:[#allocation35_spill] sm:$0xff] }
 0xf4e   :  { %v7708_v9 = vld [vmem:[#allocation37_spill] sm:$0xff] }
 0xf4f   :  { %6092 = vtanh.f32 %v3035_v46  ;;  %v7707_v46 = vld [vmem:[#allocation36_spill] sm:$0xff] }
 0xf59   :  { %v6093_v40 = vpop.eup %6092 }
 0xf5a   :  { %3104 = vmatmul.mubr.f32.vlgmr.msra.gmra.mrb[30].mxu1 %v6093_v40  ;;  %3175 = vmatmul.mubr.f32.vlgmr.msra.gmra.mrb[44].mxu0 %v6093_v40  ;;  %v7709_v40 = vld [vmem:[#allocation38_spill] sm:$0xff] }
 0xf5b   :  { %5795 = vmatpush1.bf16.msra.mxu1 %v7695_v51  ;;  %3254 = vmatprep.mubr.f32.mxu1 %v7495_v10 }
 0xf5c   :  { %5797 = vmatprep.subr.bf16.mxu1 %v7696_v54  ;;  %5835 = vmatpush3.bf16.msra.mxu0 %v7697_v31 }
 0xf5d   :  { %5837 = vmatprep.subr.bf16.mxu0 %v7698_v6 }
 0xf5e   :  { %4033 = vmatmul.mubr.msk.f32.vlgmr.msra.gmra.mrb[32].mxu1 %vm131_vm1, %v3186_v2 }
 0xf5f   :  { %5799 = vmatpush1.bf16.msra.mxu1 %v7699_v3  ;;  %3325 = vmatprep.mubr.f32.mxu1 %v7495_v10 }
 0xf60   :  { %5801 = vmatprep.subr.bf16.mxu1 %v7700_v22  ;;  %5839 = vmatpush3.bf16.msra.mxu0 %v7701_v33  ;;  %v7711_v33 = vld [vmem:[#allocation39_spill] sm:$0xff] }
 0xf61   :  { %5841 = vmatprep.subr.bf16.mxu0 %v7702_v27  ;;  %v7712_v27 = vld [vmem:[#allocation40_spill] sm:$0xff] }
 0xf62   :  { %4034 = vmatmul.mubr.msk.f32.vlgmr.msra.gmra.mrb[34].mxu1 %vm131_vm1, %v3186_v2  ;;  %v7713_v2 = vld [vmem:[#allocation45_spill] sm:$0xff] }
 0xf63   :  { %5803 = vmatpush3.bf16.msra.mxu1 %v7703_v52  ;;  %v7714_v52 = vld [vmem:[#allocation47_spill] sm:$0xff] }
 0xf64   :  { %5805 = vmatprep.subr.bf16.mxu1 %v7704_v42  ;;  %5843 = vmatpush3.bf16.msra.mxu0 %v7705_v16  ;;  %v7715_v42 = vld [vmem:[#allocation41_spill] sm:$0xff]  ;;  %v7716_v16 = vld [vmem:[#allocation42_spill] sm:$0xff] }
 0xf65   :  { %5845 = vmatprep.subr.bf16.mxu0 %v7706_v60  ;;  %v7717_v60 = vld [vmem:[#allocation49_spill] sm:$0xff] }
 0xf67   :  { %5807 = vmatpush3.bf16.msra.mxu1 %v7707_v46  ;;  %v7718_v46 = vld [vmem:[#allocation51_spill] sm:$0xff] }
 0xf68   :  { %5809 = vmatprep.subr.bf16.mxu1 %v7708_v9  ;;  %5847 = vmatpush3.bf16.msra.mxu0 %v7709_v40  ;;  %v7719_v9 = vld [vmem:[#allocation44_spill] sm:$0xff]  ;;  %v7720_v40 = vld [vmem:[#allocation46_spill] sm:$0xff] }
 0xf69   :  { %5849 = vmatprep.subr.bf16.mxu0 %v7710_v25  ;;  %v7721_v25 = vld [vmem:[#allocation53_spill] sm:$0xff] }
 0xf6b   :  { %5811 = vmatpush3.bf16.msra.mxu1 %v7711_v33  ;;  %v7722_v33 = vld [vmem:[#allocation55_spill] sm:$0xff] }
 0xf6c   :  { %5813 = vmatprep.subr.bf16.mxu1 %v7712_v27  ;;  %5851 = vmatpush3.bf16.msra.mxu0 %v7713_v2  ;;  %v7723_v27 = vld [vmem:[#allocation48_spill] sm:$0xff]  ;;  %v7724_v2 = vld [vmem:[#allocation50_spill] sm:$0xff] }
 0xf6d   :  { %5853 = vmatprep.subr.bf16.mxu0 %v7714_v52  ;;  %v7725_v52 = vld [vmem:[#allocation57_spill] sm:$0xff] }
 0xf6f   :  { %5815 = vmatpush3.bf16.msra.mxu1 %v7715_v42  ;;  %v7726_v42 = vld [vmem:[#allocation19_spill] sm:$0xff] }
 0xf70   :  { %5817 = vmatprep.subr.bf16.mxu1 %v7716_v16  ;;  %5855 = vmatpush3.bf16.msra.mxu0 %v7717_v60  ;;  %v7727_v16 = vld [vmem:[#allocation52_spill] sm:$0xff]  ;;  %v7728_v60 = vld [vmem:[#allocation54_spill] sm:$0xff] }
 0xf71   :  { %5857 = vmatprep.subr.bf16.mxu0 %v7718_v46  ;;  %v7729_v46 = vld [vmem:[#allocation56_spill] sm:$0xff] }
 0xf73   :  { %5819 = vmatpush3.bf16.msra.mxu1 %v7719_v9 }
 0xf74   :  { %5821 = vmatprep.subr.bf16.mxu1 %v7720_v40  ;;  %5859 = vmatpush3.bf16.msra.mxu0 %v7721_v25  ;;  %v7730_v40 = vld [vmem:[#allocation58_spill] sm:$0xff]  ;;  %v7731_v25 = vmov 0  }
 0xf75   :  { %5861 = vmatprep.subr.bf16.mxu0 %v7722_v33  ;;  %vm3477_vm7 = vcmp.eq.s32.totalorder %v7730_v40, 6 }
 0xf76   :  { %v3478_v33 = vsel %vm3477_vm7, 1, %v7731_v25 }
 0xf77   :  { %5823 = vmatpush3.bf16.msra.mxu1 %v7723_v27  ;;  %3480 = vperm.xlu1 %6041, %v3478_v33  }
 0xf78   :  { %5825 = vmatprep.subr.bf16.mxu1 %v7724_v2  ;;  %5863 = vmatpush3.bf16.msra.mxu0 %v7725_v52  ;;  %v7732_v2 = vld [vmem:[#allocation59_spill] sm:$0xff]  ;;  %v7733_v52 = vld [vmem:[#allocation60_spill] sm:$0xff] }
 0xf79   :  { %5889 = vmatprep.subr.bf16.mxu0 %v7726_v42 }
 0xf7b   :  { %5827 = vmatpush3.bf16.msra.mxu1 %v7727_v16 }
 0xf7c   :  { %5829 = vmatprep.subr.bf16.mxu1 %v7728_v60 }
 0xf7f   :  { %5831 = vmatpush3.bf16.msra.mxu1 %v7729_v46 }
 0xf80   :  { %5864 = vmatprep.subr.bf16.mxu1 %v7526_v58 }
0x102d   :  { %v3105_v27 = vpop.f32.mrb[30].mxu1  ;;  %v3176_v9 = vpop.f32.mrb[44].mxu0 }
0x102e   :  { %v3106_v22 = vadd.f32 %v3105_v27, %v7732_v2  ;;  %v3177_v3 = vadd.f32 %v3176_v9, %v7733_v52  ;;  %v3107_v42 = vpop.f32.mrb[31].mxu1  ;;  %v3178_v6 = vpop.f32.mrb[45].mxu0 }
0x102f   :  { %v3108_v16 = vadd.f32 %v3107_v42, %v6730_v35  ;;  %v3179_v60 = vadd.f32 %v3178_v6, %v6732_v18  ;;  %v7769_v6 = vld [vmem:[#allocation58_spill] sm:$0xff] }
0x1030   :  { %6094 = vtanh.f32 %v3106_v22  ;;  %vm3993_vm8 = vcmp.eq.s32.totalorder %v7769_v6, 7 }
0x1031   :  { %6096 = vtanh.f32 %v3177_v3  ;;  %v3256_v46 = vpop.f32.mrb[32].mxu1  ;;  %v7770_v3 = vmov 0  }
0x1032   :  { %6098 = vtanh.f32 %v3108_v16  ;;  %v3258_v40 = vpop.f32.mrb[33].mxu1  ;;  %v3994_v22 = vsel %vm3993_vm8, 1, %v7770_v3 }
0x1033   :  { %6100 = vtanh.f32 %v3179_v60  ;;  %3996 = vperm.xlu0 %6040, %v3994_v22   ;;  %v7771_v60 = vld [vmem:[#allocation59_spill] sm:$0xff] }
0x1035   :  { %v3327_v25 = vpop.f32.mrb[34].mxu1 }
0x1036   :  { %v3329_v33 = vpop.f32.mrb[35].mxu1 }
0x103a   :  { %v6095_v31 = vpop.eup %6094 }
0x103b   :  { %v6097_v54 = vpop.eup %6096  ;;  %v3332_v51 = vmul.f32 %v6095_v31, %v3256_v46  ;;  %v7768_v31 = vld [vmem:[#allocation56_spill] sm:$0xff] }
0x103c   :  { %v6099_v27 = vpop.eup %6098  ;;  %v3334_v2 = vmul.f32 %v6097_v54, %v3327_v25  ;;  %v7764_v25 = vld [vmem:[#allocation50_spill] sm:$0xff] }
0x103d   :  { %v6101_v9 = vpop.eup %6100  ;;  %v3333_v52 = vmul.f32 %v6099_v27, %v3258_v40  ;;  %v7767_v54 = vld [vmem:[#allocation54_spill] sm:$0xff]  ;;  %v7772_v40 = vld [vmem:[#allocation60_spill] sm:$0xff] }
0x103e   :  { %v3335_v1 = vmul.f32 %v6101_v9, %v3329_v33 }
0x103f   :  { %3400 = vmatprep.mubr.f32.mxu1 %v3333_v52 }
0x1040   :  { %3470 = vmatprep.mubr.f32.mxu0 %v3335_v1  ;;  %3401 = vmatmul.mubr.f32.vlgmr.msra.gmra.mrb[36].mxu1 %v3332_v51  ;;  %v7765_v1 = vld [vmem:[#allocation57_spill] sm:$0xff]  ;;  %v7766_v51 = vld [vmem:[#allocation52_spill] sm:$0xff] }
0x1041   :  { %3471 = vmatmul.mubr.f32.vlgmr.msra.gmra.mrb[46].mxu0 %v3334_v2  ;;  %5866 = vmatpush3.bf16.msra.mxu1 %v6455_v8 }
0x1042   :  { %5867 = vmatprep.subr.bf16.mxu1 %v7526_v58  ;;  %4898 = vmatprep.mubr.msk.f32.mxu1 %vm6289_vm0, %v7495_v10 }
0x1043   :  { %5891 = vmatpush1.bf16.msra.mxu0 %v6495_v38  ;;  %3619 = vmatprep.mubr.f32.mxu0 %v7495_v10 }
0x1044   :  { %5893 = vmatprep.subr.bf16.mxu0 %v6500_v41 }
0x1045   :  { %5869 = vmatpush3.bf16.msra.mxu1 %v6461_v11 }
0x1046   :  { %5870 = vmatprep.subr.bf16.mxu1 %v7526_v58 }
0x1047   :  { %5895 = vmatpush1.bf16.msra.mxu0 %v6502_v44 }
0x1048   :  { %5897 = vmatprep.subr.bf16.mxu0 %v6505_v47 }
0x1049   :  { %5872 = vmatpush3.bf16.msra.mxu1 %v6467_v14 }
0x104a   :  { %5873 = vmatprep.subr.bf16.mxu1 %v7526_v58 }
0x104b   :  { %5899 = vmatpush1.bf16.msra.mxu0 %v6508_v50  ;;  %v7735_v50 = vld [vmem:[#allocation24_spill] sm:$0xff] }
0x104c   :  { %5901 = vmatprep.subr.bf16.mxu0 %v6511_v53  ;;  %v3702_v53 = vld [vmem:[#allocation2 + $0xe] sm:$0x3] }
0x104d   :  { %5875 = vmatpush3.bf16.msra.mxu1 %v6471_v17 }
0x104e   :  { %5876 = vmatprep.subr.bf16.mxu1 %v7526_v58 }
0x104f   :  { %5903 = vmatpush1.bf16.msra.mxu0 %v6514_v56  ;;  %v7736_v56 = vld [vmem:[#allocation25_spill] sm:$0xff] }
0x1050   :  { %5905 = vmatprep.subr.bf16.mxu0 %v6517_v59  ;;  %v7737_v59 = vld [vmem:[#allocation26_spill] sm:$0xff] }
0x1051   :  { %5878 = vmatpush3.bf16.msra.mxu1 %v6475_v20 }
0x1052   :  { %5879 = vmatprep.subr.bf16.mxu1 %v7526_v58 }
0x1053   :  { %5907 = vmatpush1.bf16.msra.mxu0 %v6520_v62  ;;  %v7738_v62 = vld [vmem:[#allocation27_spill] sm:$0xff] }
0x1054   :  { %5909 = vmatprep.subr.bf16.mxu0 %v6558_v49  ;;  %v7748_v49 = vld [vmem:[#allocation37_spill] sm:$0xff] }
0x1055   :  { %5881 = vmatpush3.bf16.msra.mxu1 %v6479_v23 }
0x1056   :  { %5882 = vmatprep.subr.bf16.mxu1 %v7526_v58 }
0x1057   :  { %5911 = vmatpush1.bf16.msra.mxu0 %v6562_v57  ;;  %v7750_v57 = vld [vmem:[#allocation43_spill] sm:$0xff] }
0x1058   :  { %5913 = vmatprep.subr.bf16.mxu0 %v6570_v4  ;;  %v7752_v4 = vld [vmem:[#allocation40_spill] sm:$0xff] }
0x1059   :  { %5884 = vmatpush3.bf16.msra.mxu1 %v6483_v26 }
0x105a   :  { %5885 = vmatprep.subr.bf16.mxu1 %v7526_v58  ;;  %v7761_v58 = vld [vmem:[#allocation53_spill] sm:$0xff] }
0x105b   :  { %5915 = vmatpush1.bf16.msra.mxu0 %v6574_v15  ;;  %v7754_v15 = vld [vmem:[#allocation47_spill] sm:$0xff] }
0x105c   :  { %5917 = vmatprep.subr.bf16.mxu0 %v6581_v32  ;;  %v7756_v32 = vld [vmem:[#allocation42_spill] sm:$0xff] }
0x105d   :  { %5887 = vmatpush3.bf16.msra.mxu1 %v6488_v29 }
0x105e   :  { %5921 = vmatprep.subr.bf16.mxu1 %v6493_v37  ;;  %v7734_v37 = vld [vmem:[#allocation23_spill] sm:$0xff] }
0x105f   :  { %5919 = vmatpush1.bf16.msra.mxu0 %v6586_v45  ;;  %v7758_v45 = vld [vmem:[#allocation51_spill] sm:$0xff] }
0x1060   :  { %5953 = vmatprep.subr.bf16.mxu0 %v7531_v5  ;;  %v7762_v5 = vld [vmem:[#allocation55_spill] sm:$0xff] }
0x1113   :  { %v4524_v8 = vpop.f32.mrb[36].mxu1 }
0x1114   :  { %v4559_v11 = vpop.f32.mrb[46].mxu0  ;;  %v4525_v14 = vpop.f32.mrb[37].mxu1 }
0x1115   :  { %v4526_v17 = vadd.f32 %v4525_v14, %v4524_v8  ;;  %v4560_v20 = vpop.f32.mrb[47].mxu0 }
0x1116   :  { %v4561_v23 = vadd.f32 %v4560_v20, %v4559_v11 }
0x1118   :  { %v3473_v26 = vadd.f32 %v4561_v23, %v4526_v17 }
0x111a   :  { %v7294_v38 = vadd.f32 %v3473_v26, %v7191_v0 }
0x111c   :  { %4899 = vmatmul.mubr.f32.vlgmr.msra.gmra.mrb[38].mxu1 %v7294_v38 }
0x111d   :  { %5923 = vmatpush1.bf16.msra.mxu1 %v6527_v7  ;;  %3690 = vmatprep.mubr.f32.mxu1 %v7495_v10  ;;  %v7739_v7 = vld [vmem:[#allocation28_spill] sm:$0xff] }
0x111e   :  { %5925 = vmatprep.subr.bf16.mxu1 %v6531_v12  ;;  %v7740_v12 = vld [vmem:[#allocation29_spill] sm:$0xff] }
0x1121   :  { %5927 = vmatpush1.bf16.msra.mxu1 %v6535_v19  ;;  %v7741_v19 = vld [vmem:[#allocation30_spill] sm:$0xff] }
0x1122   :  { %5929 = vmatprep.subr.bf16.mxu1 %v6539_v21  ;;  %v7742_v21 = vld [vmem:[#allocation31_spill] sm:$0xff] }
0x1125   :  { %5931 = vmatpush1.bf16.msra.mxu1 %v6542_v28  ;;  %v7743_v28 = vld [vmem:[#allocation32_spill] sm:$0xff] }
0x1126   :  { %5933 = vmatprep.subr.bf16.mxu1 %v6545_v30  ;;  %v7744_v30 = vld [vmem:[#allocation33_spill] sm:$0xff] }
0x1129   :  { %5935 = vmatpush1.bf16.msra.mxu1 %v6548_v36  ;;  %v7745_v36 = vld [vmem:[#allocation34_spill] sm:$0xff] }
0x112a   :  { %5937 = vmatprep.subr.bf16.mxu1 %v6551_v39  ;;  %v7746_v39 = vld [vmem:[#allocation35_spill] sm:$0xff] }
0x112d   :  { %5939 = vmatpush1.bf16.msra.mxu1 %v6554_v43  ;;  %v7747_v43 = vld [vmem:[#allocation36_spill] sm:$0xff] }
0x112e   :  { %5941 = vmatprep.subr.bf16.mxu1 %v6560_v55  ;;  %v7749_v55 = vld [vmem:[#allocation38_spill] sm:$0xff] }
0x1131   :  { %5943 = vmatpush1.bf16.msra.mxu1 %v6565_v61  ;;  %v7751_v61 = vld [vmem:[#allocation39_spill] sm:$0xff] }
0x1132   :  { %5945 = vmatprep.subr.bf16.mxu1 %v6572_v13  ;;  %v7753_v13 = vld [vmem:[#allocation45_spill] sm:$0xff] }
0x1135   :  { %5947 = vmatpush1.bf16.msra.mxu1 %v6577_v24  ;;  %v7755_v24 = vld [vmem:[#allocation41_spill] sm:$0xff] }
0x1136   :  { %5949 = vmatprep.subr.bf16.mxu1 %v6583_v34  ;;  %v7757_v34 = vld [vmem:[#allocation49_spill] sm:$0xff] }
0x1139   :  { %5951 = vmatpush1.bf16.msra.mxu1 %v6590_v48  ;;  %v7759_v48 = vld [vmem:[#allocation44_spill] sm:$0xff] }
0x113a   :  { %5993 = vmatprep.subr.bf16.mxu1 %v7537_v63  ;;  %v7763_v63 = vld [vmem:[#allocation48_spill] sm:$0xff] }
0x11ef   :  { %v3550_v29 = vpop.f32.mrb[38].mxu1 }
0x11f0   :  { %v3551_v41 = vadd.f32 %v7734_v37, %v3550_v29  ;;  %v4900_v44 = vpop.f32.mrb[39].mxu1 }
0x11f2   :  { %6102 = vtanh.f32 %v3551_v41 }
0x11fc   :  { %v6103_v47 = vpop.eup %6102 }
0x11fd   :  { %3620 = vmatmul.mubr.f32.vlgmr.msra.gmra.mrb[48].mxu0 %v6103_v47  ;;  %3691 = vmatmul.mubr.f32.vlgmr.msra.gmra.mrb[40].mxu1 %v6103_v47 }
0x11fe   :  { %5955 = vmatpush1.bf16.msra.mxu0 %v7735_v50  ;;  %3770 = vmatprep.mubr.f32.mxu0 %v7495_v10 }
0x11ff   :  { %5957 = vmatprep.subr.bf16.mxu0 %v7736_v56  ;;  %5995 = vmatpush3.bf16.msra.mxu1 %v7737_v59 }
0x1200   :  { %5997 = vmatprep.subr.bf16.mxu1 %v7738_v62 }
0x1201   :  { %4035 = vmatmul.mubr.msk.f32.vlgmr.msra.gmra.mrb[50].mxu0 %vm131_vm1, %v3702_v53 }
0x1202   :  { %5959 = vmatpush1.bf16.msra.mxu0 %v7739_v7  ;;  %3841 = vmatprep.mubr.f32.mxu0 %v7495_v10  ;;  %v7760_v10 = vld [vmem:[#allocation46_spill] sm:$0xff] }
0x1203   :  { %5961 = vmatprep.subr.bf16.mxu0 %v7740_v12  ;;  %5999 = vmatpush3.bf16.msra.mxu1 %v7741_v19 }
0x1204   :  { %6001 = vmatprep.subr.bf16.mxu1 %v7742_v21 }
0x1205   :  { %4036 = vmatmul.mubr.msk.f32.vlgmr.msra.gmra.mrb[52].mxu0 %vm131_vm1, %v3702_v53 }
0x1206   :  { %5963 = vmatpush3.bf16.msra.mxu0 %v7743_v28  ;;  %v7773_v28 = vld [vmem:[#allocation20_spill] sm:$0xff] }
0x1207   :  { %5965 = vmatprep.subr.bf16.mxu0 %v7744_v30  ;;  %6003 = vmatpush3.bf16.msra.mxu1 %v7745_v36  ;;  %v7774_v30 = vld [vmem:[#allocation61_spill] sm:$0xff] }
0x1208   :  { %6005 = vmatprep.subr.bf16.mxu1 %v7746_v39 }
0x120a   :  { %5967 = vmatpush3.bf16.msra.mxu0 %v7747_v43  ;;  %v7775_v43 = vld [vmem:[#allocation21_spill] sm:$0xff] }
0x120b   :  { %5969 = vmatprep.subr.bf16.mxu0 %v7748_v49  ;;  %6007 = vmatpush3.bf16.msra.mxu1 %v7749_v55  ;;  %v7776_v55 = vld [vmem:[#allocation22_spill] sm:$0xff] }
0x120c   :  { %6009 = vmatprep.subr.bf16.mxu1 %v7750_v57 }
0x120e   :  { %5971 = vmatpush3.bf16.msra.mxu0 %v7751_v61 }
0x120f   :  { %5973 = vmatprep.subr.bf16.mxu0 %v7752_v4  ;;  %6011 = vmatpush3.bf16.msra.mxu1 %v7753_v13  ;;  %v7777_v13 = vld [vmem:[#allocation62_spill] sm:$0xff] }
0x1210   :  { %6013 = vmatprep.subr.bf16.mxu1 %v7754_v15 }
0x1212   :  { %5975 = vmatpush3.bf16.msra.mxu0 %v7755_v24 }
0x1213   :  { %5977 = vmatprep.subr.bf16.mxu0 %v7756_v32  ;;  %6015 = vmatpush3.bf16.msra.mxu1 %v7757_v34 }
0x1214   :  { %6017 = vmatprep.subr.bf16.mxu1 %v7758_v45 }
0x1216   :  { %5979 = vmatpush3.bf16.msra.mxu0 %v7759_v48 }
0x1217   :  { %5981 = vmatprep.subr.bf16.mxu0 %v7760_v10  ;;  %6019 = vmatpush3.bf16.msra.mxu1 %v7761_v58 }
0x1218   :  { %6021 = vmatprep.subr.bf16.mxu1 %v7762_v5 }
0x121a   :  { %5983 = vmatpush3.bf16.msra.mxu0 %v7763_v63 }
0x121b   :  { %5985 = vmatprep.subr.bf16.mxu0 %v7764_v25  ;;  %6023 = vmatpush3.bf16.msra.mxu1 %v7765_v1 }
0x121e   :  { %5987 = vmatpush3.bf16.msra.mxu0 %v7766_v51 }
0x121f   :  { %5989 = vmatprep.subr.bf16.mxu0 %v7767_v54 }
0x1222   :  { %5991 = vmatpush3.bf16.msra.mxu0 %v7768_v31 }
0x12d0   :  { %v3621_v52 = vpop.f32.mrb[48].mxu0  ;;  %v3692_v16 = vpop.f32.mrb[40].mxu1 }
0x12d1   :  { %v3622_v46 = vadd.f32 %v3621_v52, %v7771_v60  ;;  %v3693_v2 = vadd.f32 %v3692_v16, %v7772_v40  ;;  %v3623_v42 = vpop.f32.mrb[49].mxu0  ;;  %v3694_v33 = vpop.f32.mrb[41].mxu1 }
0x12d2   :  { %v3624_v27 = vadd.f32 %v3623_v42, %v6730_v35  ;;  %v3695_v9 = vadd.f32 %v3694_v33, %v6732_v18  ;;  %v901_v35 = vpop.permute.xlu0 %900  ;;  %v1933_v18 = vpop.permute.xlu1 %1932 }
0x12d3   :  { %6104 = vtanh.f32 %v3622_v46  ;;  %vm902_vm9 = vcmp.eq.s32.totalorder %v901_v35, 1  ;;  %vm1934_vm11 = vcmp.eq.s32.totalorder %v1933_v18, 1 }
0x12d4   :  { %6106 = vtanh.f32 %v3693_v2  ;;  %v3772_v8 = vpop.f32.mrb[50].mxu0  ;;  %v903_v36 = vsel %vm902_vm9, %v7774_v30, %v7773_v28 }
0x12d5   :  { %6108 = vtanh.f32 %v3624_v27  ;;  %v3774_v11 = vpop.f32.mrb[51].mxu0 }
0x12d6   :  { %6110 = vtanh.f32 %v3695_v9  ;;  %v1417_v50 = vpop.permute.xlu0 %1416  ;;  %v2449_v53 = vpop.permute.xlu1 %2448 }
0x12d7   :  { %vm1418_vm10 = vcmp.eq.s32.totalorder %v1417_v50, 1  ;;  %vm2450_vm12 = vcmp.eq.s32.totalorder %v2449_v53, 1 }
0x12d8   :  { %v3843_v14 = vpop.f32.mrb[52].mxu0  ;;  %v1419_v49 = vsel %vm1418_vm10, %v7775_v43, %v903_v36 }
0x12d9   :  { %v3845_v17 = vpop.f32.mrb[53].mxu0  ;;  %v1935_v57 = vsel %vm1934_vm11, %v7776_v55, %v1419_v49 }
0x12da   :  { %v2965_v56 = vpop.permute.xlu0 %2964  ;;  %v3481_v12 = vpop.permute.xlu1 %3480  ;;  %v2451_v15 = vsel %vm2450_vm12, %v7777_v13, %v1935_v57 }
0x12db   :  { %vm2966_vm13 = vcmp.eq.s32.totalorder %v2965_v56, 1  ;;  %vm3482_vm14 = vcmp.eq.s32.totalorder %v3481_v12, 1 }
0x12dc   :  { %v2967_v24 = vsel %vm2966_vm13, %v7191_v0, %v2451_v15 }
0x12dd   :  { %v6105_v20 = vpop.eup %6104  ;;  %v3483_v34 = vsel %vm3482_vm14, %v7294_v38, %v2967_v24 }
0x12de   :  { %v6107_v23 = vpop.eup %6106  ;;  %v3848_v26 = vmul.f32 %v6105_v20, %v3772_v8  ;;  %v3997_v61 = vpop.permute.xlu0 %3996 }
0x12df   :  { %v6109_v29 = vpop.eup %6108  ;;  %v3850_v37 = vmul.f32 %v6107_v23, %v3843_v14  ;;  %vm3998_vm15 = vcmp.eq.s32.totalorder %v3997_v61, 1 }
0x12e0   :  { %v6111_v41 = vpop.eup %6110  ;;  %v3849_v44 = vmul.f32 %v6109_v29, %v3774_v11 }
0x12e1   :  { %v3851_v47 = vmul.f32 %v6111_v41, %v3845_v17 }
0x12e2   :  { %3916 = vmatprep.mubr.f32.mxu0 %v3849_v44 }
0x12e3   :  { %3986 = vmatprep.mubr.f32.mxu1 %v3851_v47  ;;  %3917 = vmatmul.mubr.f32.vlgmr.msra.gmra.mrb[54].mxu0 %v3848_v26 }
0x12e4   :  { %3987 = vmatmul.mubr.f32.vlgmr.msra.gmra.mrb[42].mxu1 %v3850_v37 }
0x13b6   :  { %v4611_v59 = vpop.f32.mrb[54].mxu0 }
0x13b7   :  { %v4646_v62 = vpop.f32.mrb[42].mxu1  ;;  %v4612_v7 = vpop.f32.mrb[55].mxu0 }
0x13b8   :  { %v4613_v19 = vadd.f32 %v4612_v7, %v4611_v59  ;;  %v4647_v21 = vpop.f32.mrb[43].mxu1 }
0x13b9   :  { %v4648_v39 = vadd.f32 %v4647_v21, %v4646_v62 }
0x13bb   :  { %v3989_v4 = vadd.f32 %v4648_v39, %v4613_v19 }
0x13bd   :  { %v3992_v32 = vadd.f32 %v3989_v4, %v7294_v38 }
0x13bf   :  { %v3999_v45 = vsel %vm3998_vm15, %v3992_v32, %v3483_v34 }
0x13c0   :  { %4000 = vst [vmem:[#allocation13] sm:$0x3] %v3999_v45 }
0x13c1   :  { %6256 = shalt.err (!%p6253_p10)
}
0x13c2   :  { %s6257_s23 = scalar_lea.hbm %s7390_s11, 32 }
0x13c3   :  { %p6258_p11 = scmp.ne.s32.totalorder %s7390_s11, %s6257_s23  ;;  %p6261_p12 = scmp.lt.u32.totalorder %s6257_s23, %s7390_s11 }
0x13c5   :  { %p6263_p13 = pnand %p6261_p12, %p6258_p11 }
0x13c7   :  { %6266 = shalt.err (!%p6263_p13)
}
0x13c8   :  { %4010 = dma.vmem_to_hbm [thread:$0]  %s4008_s3, 32, %s7390_s11, [#allocation4]  }
0x13c9   :  { %6275 = dma.done.wait [#allocation4], 32  }
0x13ca   :  { %6276 = vsyncadd [#allocation4], 4294967264 }
0x13cb   :  { %4014 = vsyncpa [#allocation3], 1 }
0x13cc   :  { %4015 = vsyncpa [#allocation6], 1 }
0x13cd   :  { %4016 = vsyncpa [#allocation9], 1 }
0x13ce   :  { %4017 = vsyncpa [#allocation12], 1 }
0x13cf   :  { %4018 = vsyncpa [#allocation4], 1 }

</bundles_post_ra>
